<compile_context>
chip_gen: v6e
topology: v6e:2x2x1
jax: 0.10.0
libtpu: 0.0.40
codegen_flags: <defaults>
</compile_context>

<pallas_src>
import functools
import math

import numpy as np
import jax
import jax.numpy as jnp
from jax import lax
from jax.experimental import pallas as pl
from jax.experimental.pallas import tpu as pltpu

LOG_STD_MAX = 2.0
LOG_STD_MIN = -20.0
BN_EPS = 1e-5
KSIZE = 5          # conv kernel size
STRIDE = 2         # conv stride

# Whole-array blocks resident in VMEM (block == full array, so the (8,128)
# divisibility rule does not apply).
VMEM = pl.BlockSpec(memory_space=pltpu.MemorySpace.VMEM)


def _conv_out(x):
    return (x - KSIZE) // STRIDE + 1


# ----------------------------- Pallas kernels ------------------------------

def _conv_bn_kernel(p_ref, w_ref, g_ref, b_ref, o_ref):
    """Fused conv-as-matmul + BatchNorm2d (training mode, batch statistics).

    p: (R, Cin*K*K) im2col patches (rows = (n, h, w)); w: (Cin*K*K, Cout) bf16;
    g/b: (1, Cout) BN affine params.  The conv bias is omitted: training-mode
    BN subtracts the batch mean, which cancels it exactly.  BN is applied as a
    single FMA with a pre-folded scale (scale = gamma * rsqrt(var + eps)).
    """
    y = jnp.dot(p_ref[...].astype(jnp.bfloat16), w_ref[...],
                preferred_element_type=jnp.float32)
    mean = jnp.mean(y, axis=0, keepdims=True)
    var = jnp.mean((y - mean) ** 2, axis=0, keepdims=True)       # biased (torch train)
    scale = g_ref[...] * lax.rsqrt(var + BN_EPS)
    o_ref[...] = (y * scale + (b_ref[...] - mean * scale)).astype(o_ref.dtype)


def _tail_kernel(p2_ref, w2_ref, g2_ref, b2_ref, s3_ref, w3_ref, g3_ref, b3_ref,
                 fc1w_ref, fc1b_ref, fc2w_ref, fc2b_ref, hw_ref, hb_ref, blk_ref,
                 eps_ref, out_ref, z_scr, y3_scr, x_scr, *, act_limit):
    """conv2+BN2, conv3+BN3 (in-kernel im2col), layout flip, MLP, squashed head."""
    f32 = jnp.float32
    bf16 = jnp.bfloat16

    n_rows3, c3 = y3_scr.shape               # conv3 output rows (n, wo) / channels
    n_z, c2 = z_scr.shape                    # gathered rows / conv2 channels
    n_taps = n_z // n_rows3                  # K*K
    obs_dim, n_cols = x_scr.shape            # MLP feature dim / samples (= N*C)
    n_batch = n_cols // c3

    # ---- conv2 + BatchNorm2 (bias dropped, scale pre-folded) ----------------
    y2 = jnp.dot(p2_ref[...].astype(bf16), w2_ref[...],
                 preferred_element_type=f32)                       # (R2, C2)
    m2 = jnp.mean(y2, axis=0, keepdims=True)
    v2 = jnp.mean((y2 - m2) ** 2, axis=0, keepdims=True)
    sc2 = g2_ref[...] * lax.rsqrt(v2 + BN_EPS)
    y2 = y2 * sc2 + (b2_ref[...] - m2 * sc2)

    # ---- conv3: in-kernel im2col -------------------------------------------
    # The stride-2 patch gather is a one-hot row-gather matmul (s3, tap-major
    # row order); each 5x5 tap is then contracted with its own (C2, C3) weight
    # block of w3.  Only 2-D matmuls and ref slicing -> no strided slices or
    # exotic reshapes inside the kernel.
    z_scr[...] = jnp.dot(s3_ref[...], y2.astype(bf16),
                         preferred_element_type=f32).astype(bf16)
    y3 = jnp.dot(z_scr[0:n_rows3, :], w3_ref[0:c2, :],
                 preferred_element_type=f32)
    for t in range(1, n_taps):
        y3 = y3 + jnp.dot(z_scr[t * n_rows3:(t + 1) * n_rows3, :],
                          w3_ref[t * c2:(t + 1) * c2, :],
                          preferred_element_type=f32)              # (N*W3, C3)

    # BatchNorm3 (training mode, batch statistics over the (n, wo) rows).
    m3 = jnp.mean(y3, axis=0, keepdims=True)
    v3 = jnp.mean((y3 - m3) ** 2, axis=0, keepdims=True)
    sc3 = g3_ref[...] * lax.rsqrt(v3 + BN_EPS)
    y3_scr[...] = y3 * sc3 + (b3_ref[...] - m3 * sc3)

    # ---- layout flip: rows (n, wo) x cols c -> rows wo x cols (n, c) --------
    # torch applies nn.Linear over the last NCHW axis (W = obs_dim), so MLP
    # samples are the (n, channel) pairs.  Transposed orientation keeps all
    # downstream tensors lane-dense.
    for n in range(n_batch):
        x_scr[:, n * c3:(n + 1) * c3] = y3_scr[n * obs_dim:(n + 1) * obs_dim, :]
    x = x_scr[...].astype(bf16)                                    # (obs_dim, N*C)

    # ---- MLP: Linear(obs_dim,32)+ReLU, Linear(32,32)+ReLU -------------------
    h = jnp.dot(fc1w_ref[...], x, preferred_element_type=f32) + fc1b_ref[...]
    h = jnp.maximum(h, 0.0)
    h = jnp.dot(fc2w_ref[...], h.astype(bf16),
                preferred_element_type=f32) + fc2b_ref[...]
    h = jnp.maximum(h, 0.0)                                        # (32, N*C)

    # ---- merged mu / log_std head: one (2,32) matmul -------------------------
    ml = jnp.dot(hw_ref[...], h.astype(bf16),
                 preferred_element_type=f32) + hb_ref[...]         # (2, N*C)
    mu = ml[0:1, :]
    log_std = jnp.clip(ml[1:2, :], LOG_STD_MIN, LOG_STD_MAX)       # torch.clamp
    std = jnp.exp(log_std)

    eps = eps_ref[...]
    pi = mu + std * eps                                            # Normal.rsample
    # Normal(mu, std).log_prob(pi) = -(pi-mu)^2/(2 std^2) - log_std - 0.5*log(2*pi)
    #                              = -0.5*eps^2            - log_std - 0.5*log(2*pi)
    logp = -0.5 * eps * eps - log_std - 0.5 * math.log(2.0 * math.pi)

    # logp_pi -= (2*(log 2 - pi - softplus(-2 pi))).sum(axis=1)   [axis=1 == C]
    # Vectorized segmented sum over the C channels of each batch element: one
    # matmul against a block-ones matrix (no per-batch loop / partial stores).
    zneg = -2.0 * pi
    softplus = jnp.maximum(zneg, 0.0) + jnp.log1p(jnp.exp(-jnp.abs(zneg)))
    term = 2.0 * (math.log(2.0) - pi - softplus)                   # (1, N*C)
    corr = jnp.dot(term, blk_ref[...], preferred_element_type=f32)

    out_ref[0:1, :] = act_limit * jnp.tanh(pi)                     # squash + scale
    out_ref[1:2, :] = logp - corr


# ------------------------------- wrappers -----------------------------------

def _conv_bn(p2d, w, g, b):
    rows, cout = p2d.shape[0], w.shape[1]
    return pl.pallas_call(
        _conv_bn_kernel,
        out_shape=jax.ShapeDtypeStruct((rows, cout), jnp.float32),
        in_specs=[VMEM] * 4,
        out_specs=VMEM,
    )(p2d, w, g, b)


def _tail(prep, p2_2d, eps_row, act_limit):
    n_cols = eps_row.shape[1]                    # N * C
    c2 = prep["w2"].shape[1]                     # conv2 out / conv3 in channels
    c3 = prep["w3"].shape[1]                     # conv3 out channels
    n_taps = KSIZE * KSIZE
    n_rows3 = prep["s3"].shape[0] // n_taps      # N * W3
    obs_dim = prep["fc1_w"].shape[1]             # conv3 output width (= 5)
    return pl.pallas_call(
        functools.partial(_tail_kernel, act_limit=act_limit),
        out_shape=jax.ShapeDtypeStruct((2, n_cols), jnp.float32),
        in_specs=[VMEM] * 16,
        out_specs=VMEM,
        scratch_shapes=[
            pltpu.VMEM((n_taps * n_rows3, c2), jnp.bfloat16),  # gathered conv3 rows
            pltpu.VMEM((n_rows3, c3), jnp.float32),            # conv3 + BN3 output
            pltpu.VMEM((obs_dim, n_cols), jnp.float32),        # flipped MLP input
        ],
    )(p2_2d, prep["w2"], prep["g2"], prep["b2"], prep["s3"], prep["w3"],
      prep["g3"], prep["b3"], prep["fc1_w"], prep["fc1_b"], prep["fc2_w"],
      prep["fc2_b"], prep["head_w"], prep["head_b"], prep["blk"], eps_row)


def actor_forward(prep, obs, eps, *, act_limit):
    """Matches SquashedGaussianMLPActor.forward(obs) with the default flags
    (deterministic=False, with_logprob=True); rsample noise is the eps input."""
    n = obs.shape[0]
    c = eps.shape[1]                             # conv feature channels (32)

    # conv1 im2col on the raw NCHW obs: the first of only two external XLA ops.
    p1 = lax.conv_general_dilated_patches(
        obs, (KSIZE, KSIZE), (STRIDE, STRIDE), "VALID",
        dimension_numbers=("NCHW", "OIHW", "NHWC"))
    _, h1, w1, f1 = p1.shape
    y1 = _conv_bn(p1.reshape(n * h1 * w1, f1), prep["w1"], prep["g1"], prep["b1"])

    # conv2 im2col on conv1's channels-last output: the second external XLA op.
    p2 = lax.conv_general_dilated_patches(
        y1.reshape(n, h1, w1, -1), (KSIZE, KSIZE), (STRIDE, STRIDE), "VALID",
        dimension_numbers=("NHWC", "OIHW", "NHWC"))
    _, h2, w2, f2 = p2.shape

    # Everything else (conv2, conv3, MLP, head) is one fused Pallas kernel.
    out = _tail(prep, p2.reshape(n * h2 * w2, f2), eps.reshape(1, n * c), act_limit)

    pi_action = out[0].reshape(n, c, 1, 1)       # (N, 32, 1, act_dim)
    logp_pi = out[1].reshape(n, c, 1)            # (N, 32, 1)
    return pi_action, logp_pi


# --------------------------- parameter preparation --------------------------

def _conv3_gather_onehot(n_batch, h2, w2):
    """One-hot (K*K*N*W3, N*H2*W2) matrix gathering conv3's im2col rows.

    Row (t, n, wo), tap-major with t = kh*K + kj, selects conv2-output row
    (n, h = kh, w = STRIDE*wo + kj).  Requires conv3 output height == 1.
    """
    h3, w3 = _conv_out(h2), _conv_out(w2)
    assert h3 == 1, "shape family requires conv output H == 1"
    rows3 = n_batch * w3
    g = np.zeros((KSIZE * KSIZE * rows3, n_batch * h2 * w2), np.float32)
    for kh in range(KSIZE):
        for kj in range(KSIZE):
            t = kh * KSIZE + kj
            for n in range(n_batch):
                for wo in range(w3):
                    g[t * rows3 + n * w3 + wo,
                      n * h2 * w2 + kh * w2 + STRIDE * wo + kj] = 1.0
    return g


def prepare_params(params, n_batch, obs_hw):
    """Pre-lay-out all parameters in kernel layout, once, outside jit.

    Conv biases are intentionally dropped: training-mode BatchNorm subtracts
    the batch mean, which cancels them exactly.
    """
    f32, bf16 = jnp.float32, jnp.bfloat16
    h1, w1 = _conv_out(obs_hw[0]), _conv_out(obs_hw[1])
    h2, w2 = _conv_out(h1), _conv_out(w1)
    c_out = params["conv3_w"].shape[0]

    def bn(pfx):
        return (params[f"{pfx}_g"].reshape(1, -1).astype(f32),
                params[f"{pfx}_b"].reshape(1, -1).astype(f32))

    g1, b1 = bn("bn1")
    g2, b2 = bn("bn2")
    g3, b3 = bn("bn3")
    w3t = params["conv3_w"]
    w3_taps = jnp.concatenate(                      # (K*K*Cin, Cout), tap-major
        [w3t[:, :, kh, kj].T for kh in range(KSIZE) for kj in range(KSIZE)], axis=0)

    return {
        "w1": params["conv1_w"].reshape(params["conv1_w"].shape[0], -1).T.astype(bf16),
        "g1": g1, "b1": b1,
        "w2": params["conv2_w"].reshape(params["conv2_w"].shape[0], -1).T.astype(bf16),
        "g2": g2, "b2": b2,
        "s3": jnp.asarray(_conv3_gather_onehot(n_batch, h2, w2), bf16),
        "w3": w3_taps.astype(bf16),
        "g3": g3, "b3": b3,
        "fc1_w": params["fc1_w"].astype(bf16),      # torch (out,in) layout is native
        "fc1_b": params["fc1_b"].reshape(-1, 1).astype(f32),
        "fc2_w": params["fc2_w"].astype(bf16),
        "fc2_b": params["fc2_b"].reshape(-1, 1).astype(f32),
        "head_w": jnp.concatenate([params["mu_w"], params["ls_w"]], axis=0).astype(bf16),
        "head_b": jnp.concatenate([params["mu_b"], params["ls_b"]], axis=0)
                    .reshape(2, 1).astype(f32),
        "blk": jnp.asarray(np.kron(np.eye(n_batch), np.ones((c_out, c_out))), f32),
    }


def init_params(key):
    ks = jax.random.split(key, 20)
    nrm = lambda k, s, sc=0.1: sc * jax.random.normal(k, s, dtype=jnp.float32)
    # conv biases are part of the module but dead in the forward (training-mode
    # BN mean subtraction cancels them exactly), so prepare_params ignores them.
    return {
        "conv1_w": nrm(ks[0], (16, 3, 5, 5)),        "conv1_b": nrm(ks[1], (16,)),
        "bn1_g": 1.0 + nrm(ks[2], (16,), 0.05),      "bn1_b": nrm(ks[3], (16,), 0.05),
        "conv2_w": nrm(ks[4], (32, 16, 5, 5), 0.05), "conv2_b": nrm(ks[5], (32,)),
        "bn2_g": 1.0 + nrm(ks[6], (32,), 0.05),      "bn2_b": nrm(ks[7], (32,), 0.05),
        "conv3_w": nrm(ks[8], (32, 32, 5, 5), 0.05), "conv3_b": nrm(ks[9], (32,)),
        "bn3_g": 1.0 + nrm(ks[10], (32,), 0.05),     "bn3_b": nrm(ks[11], (32,), 0.05),
        "fc1_w": nrm(ks[12], (32, 5), 0.2),          "fc1_b": nrm(ks[13], (32,)),   # Linear(obs_dim=5, 32)
        "fc2_w": nrm(ks[14], (32, 32), 0.2),         "fc2_b": nrm(ks[15], (32,)),   # Linear(32, 32)
        "mu_w": nrm(ks[16], (1, 32), 0.2),           "mu_b": nrm(ks[17], (1,)),     # Linear(32, act_dim=1)
        "ls_w": nrm(ks[18], (1, 32), 0.2),           "ls_b": nrm(ks[19], (1,)),     # Linear(32, act_dim=1)
    }


if __name__ == "__main__":
    key = jax.random.PRNGKey(0)
    k_obs, k_eps, k_par = jax.random.split(key, 3)

    # obs NCHW: three (k=5, s=2) convs map (29, 61) -> (1, 5); obs_dim = 5.
    N, H, W = 2, 29, 61
    act_dim, act_limit = 1, 2.0
    obs = jax.random.normal(k_obs, (N, 3, H, W), dtype=jnp.float32)
    # Reparameterization noise for Normal.rsample (torch RNG not reproducible).
    eps = jax.random.normal(k_eps, (N, 32, 1, act_dim), dtype=jnp.float32)

    params = init_params(k_par)
    prep = prepare_params(params, n_batch=N, obs_hw=(H, W))   # once, outside jit

    fwd = jax.jit(functools.partial(actor_forward, act_limit=act_limit))
    pi_action, logp_pi = fwd(prep, obs, eps)
    jax.block_until_ready((pi_action, logp_pi))

    assert pi_action.shape == (N, 32, 1, act_dim)
    assert logp_pi.shape == (N, 32, 1)
    assert bool(jnp.all(jnp.abs(pi_action) <= act_limit))
    assert bool(jnp.all(jnp.isfinite(logp_pi)))
    print("KERNEL_OK")
</pallas_src>

<mosaic_0001>
module attributes {stable_mosaic.version = 11 : i64} {
  func.func @_conv_bn_kernel(%arg0: memref<754x75xf32, #tpu.memory_space<vmem>>, %arg1: memref<75x16xbf16, #tpu.memory_space<vmem>>, %arg2: memref<1x16xf32, #tpu.memory_space<vmem>>, %arg3: memref<1x16xf32, #tpu.memory_space<vmem>>, %arg4: memref<754x16xf32, #tpu.memory_space<vmem>>) attributes {dimension_semantics = [], scalar_prefetch = 0 : i64, scratch_operands = 0 : i64, tpu.core_type = #tpu.core_type<tc>} {
    %c0 = arith.constant 0 : index
    %c0_0 = arith.constant 0 : index
    %0 = vector.load %arg0[%c0, %c0_0] : memref<754x75xf32, #tpu.memory_space<vmem>>, vector<754x75xf32>
    %1 = arith.truncf %0 : vector<754x75xf32> to vector<754x75xbf16>
    %c0_1 = arith.constant 0 : index
    %c0_2 = arith.constant 0 : index
    %2 = vector.load %arg1[%c0_1, %c0_2] : memref<75x16xbf16, #tpu.memory_space<vmem>>, vector<75x16xbf16>
    %cst = arith.constant dense<0.000000e+00> : vector<754x16xf32>
    %3 = tpu.matmul %1, %2, %cst {dimension_numbers = #tpu.dot_dimension_numbers<[1], [0], [0], [1], [0, 0, 1, 1], [], []>} : vector<754x75xbf16>, vector<75x16xbf16>, vector<754x16xf32> -> vector<754x16xf32>
    %cst_3 = arith.constant dense<0.000000e+00> : vector<16xf32>
    %4 = vector.multi_reduction <add>, %3, %cst_3 [0] : vector<754x16xf32> to vector<16xf32>
    %5 = vector.shape_cast %4 : vector<16xf32> to vector<1x16xf32>
    %cst_4 = arith.constant 7.540000e+02 : f32
    %6 = vector.broadcast %cst_4 : f32 to vector<1x16xf32>
    %7 = arith.divf %5, %6 : vector<1x16xf32>
    %8 = vector.broadcast %7 : vector<1x16xf32> to vector<754x16xf32>
    %9 = arith.subf %3, %8 : vector<754x16xf32>
    %10 = arith.mulf %9, %9 : vector<754x16xf32>
    %cst_5 = arith.constant dense<0.000000e+00> : vector<16xf32>
    %11 = vector.multi_reduction <add>, %10, %cst_5 [0] : vector<754x16xf32> to vector<16xf32>
    %12 = vector.shape_cast %11 : vector<16xf32> to vector<1x16xf32>
    %cst_6 = arith.constant 7.540000e+02 : f32
    %13 = vector.broadcast %cst_6 : f32 to vector<1x16xf32>
    %14 = arith.divf %12, %13 : vector<1x16xf32>
    %c0_7 = arith.constant 0 : index
    %c0_8 = arith.constant 0 : index
    %15 = vector.load %arg2[%c0_7, %c0_8] : memref<1x16xf32, #tpu.memory_space<vmem>>, vector<1x16xf32>
    %cst_9 = arith.constant 9.99999974E-6 : f32
    %16 = vector.broadcast %cst_9 : f32 to vector<1x16xf32>
    %17 = arith.addf %14, %16 : vector<1x16xf32>
    %18 = math.rsqrt %17 : vector<1x16xf32>
    %19 = arith.mulf %15, %18 : vector<1x16xf32>
    %20 = vector.broadcast %19 : vector<1x16xf32> to vector<754x16xf32>
    %21 = arith.mulf %3, %20 : vector<754x16xf32>
    %c0_10 = arith.constant 0 : index
    %c0_11 = arith.constant 0 : index
    %22 = vector.load %arg3[%c0_10, %c0_11] : memref<1x16xf32, #tpu.memory_space<vmem>>, vector<1x16xf32>
    %23 = arith.mulf %7, %19 : vector<1x16xf32>
    %24 = arith.subf %22, %23 : vector<1x16xf32>
    %25 = vector.broadcast %24 : vector<1x16xf32> to vector<754x16xf32>
    %26 = arith.addf %21, %25 : vector<754x16xf32>
    %c0_12 = arith.constant 0 : index
    %c0_13 = arith.constant 0 : index
    %27 = vector.load %arg4[%c0_12, %c0_13] : memref<754x16xf32, #tpu.memory_space<vmem>>, vector<754x16xf32>
    tpu.vector_store %arg4[%c0_12, %c0_13], %26 {strides = array<i32>} : memref<754x16xf32, #tpu.memory_space<vmem>>, vector<754x16xf32>,
    return
  }
}

module attributes {stable_mosaic.version = 11 : i64} {
  func.func @_tail_kernel(%arg0: memref<130x400xf32, #tpu.memory_space<vmem>>, %arg1: memref<400x32xbf16, #tpu.memory_space<vmem>>, %arg2: memref<1x32xf32, #tpu.memory_space<vmem>>, %arg3: memref<1x32xf32, #tpu.memory_space<vmem>>, %arg4: memref<250x130xbf16, #tpu.memory_space<vmem>>, %arg5: memref<800x32xbf16, #tpu.memory_space<vmem>>, %arg6: memref<1x32xf32, #tpu.memory_space<vmem>>, %arg7: memref<1x32xf32, #tpu.memory_space<vmem>>, %arg8: memref<32x5xbf16, #tpu.memory_space<vmem>>, %arg9: memref<32x1xf32, #tpu.memory_space<vmem>>, %arg10: memref<32x32xbf16, #tpu.memory_space<vmem>>, %arg11: memref<32x1xf32, #tpu.memory_space<vmem>>, %arg12: memref<2x32xbf16, #tpu.memory_space<vmem>>, %arg13: memref<2x1xf32, #tpu.memory_space<vmem>>, %arg14: memref<64x64xf32, #tpu.memory_space<vmem>>, %arg15: memref<1x64xf32, #tpu.memory_space<vmem>>, %arg16: memref<2x64xf32, #tpu.memory_space<vmem>>, %arg17: memref<250x32xbf16, #tpu.memory_space<vmem>>, %arg18: memref<10x32xf32, #tpu.memory_space<vmem>>, %arg19: memref<5x64xf32, #tpu.memory_space<vmem>>) attributes {dimension_semantics = [], scalar_prefetch = 0 : i64, scratch_operands = 3 : i64, tpu.core_type = #tpu.core_type<tc>} {
    %c0 = arith.constant 0 : index
    %c0_0 = arith.constant 0 : index
    %0 = vector.load %arg0[%c0, %c0_0] : memref<130x400xf32, #tpu.memory_space<vmem>>, vector<130x400xf32>
    %1 = arith.truncf %0 : vector<130x400xf32> to vector<130x400xbf16>
    %c0_1 = arith.constant 0 : index
    %c0_2 = arith.constant 0 : index
    %2 = vector.load %arg1[%c0_1, %c0_2] : memref<400x32xbf16, #tpu.memory_space<vmem>>, vector<400x32xbf16>
    %cst = arith.constant dense<0.000000e+00> : vector<130x32xf32>
    %3 = tpu.matmul %1, %2, %cst {dimension_numbers = #tpu.dot_dimension_numbers<[1], [0], [0], [1], [0, 0, 1, 1], [], []>} : vector<130x400xbf16>, vector<400x32xbf16>, vector<130x32xf32> -> vector<130x32xf32>
    %cst_3 = arith.constant dense<0.000000e+00> : vector<32xf32>
    %4 = vector.multi_reduction <add>, %3, %cst_3 [0] : vector<130x32xf32> to vector<32xf32>
    %5 = vector.shape_cast %4 : vector<32xf32> to vector<1x32xf32>
    %cst_4 = arith.constant 1.300000e+02 : f32
    %6 = vector.broadcast %cst_4 : f32 to vector<1x32xf32>
    %7 = arith.divf %5, %6 : vector<1x32xf32>
    %8 = vector.broadcast %7 : vector<1x32xf32> to vector<130x32xf32>
    %9 = arith.subf %3, %8 : vector<130x32xf32>
    %10 = arith.mulf %9, %9 : vector<130x32xf32>
    %cst_5 = arith.constant dense<0.000000e+00> : vector<32xf32>
    %11 = vector.multi_reduction <add>, %10, %cst_5 [0] : vector<130x32xf32> to vector<32xf32>
    %12 = vector.shape_cast %11 : vector<32xf32> to vector<1x32xf32>
    %cst_6 = arith.constant 1.300000e+02 : f32
    %13 = vector.broadcast %cst_6 : f32 to vector<1x32xf32>
    %14 = arith.divf %12, %13 : vector<1x32xf32>
    %c0_7 = arith.constant 0 : index
    %c0_8 = arith.constant 0 : index
    %15 = vector.load %arg2[%c0_7, %c0_8] : memref<1x32xf32, #tpu.memory_space<vmem>>, vector<1x32xf32>
    %cst_9 = arith.constant 9.99999974E-6 : f32
    %16 = vector.broadcast %cst_9 : f32 to vector<1x32xf32>
    %17 = arith.addf %14, %16 : vector<1x32xf32>
    %18 = math.rsqrt %17 : vector<1x32xf32>
    %19 = arith.mulf %15, %18 : vector<1x32xf32>
    %20 = vector.broadcast %19 : vector<1x32xf32> to vector<130x32xf32>
    %21 = arith.mulf %3, %20 : vector<130x32xf32>
    %c0_10 = arith.constant 0 : index
    %c0_11 = arith.constant 0 : index
    %22 = vector.load %arg3[%c0_10, %c0_11] : memref<1x32xf32, #tpu.memory_space<vmem>>, vector<1x32xf32>
    %23 = arith.mulf %7, %19 : vector<1x32xf32>
    %24 = arith.subf %22, %23 : vector<1x32xf32>
    %25 = vector.broadcast %24 : vector<1x32xf32> to vector<130x32xf32>
    %26 = arith.addf %21, %25 : vector<130x32xf32>
    %c0_12 = arith.constant 0 : index
    %c0_13 = arith.constant 0 : index
    %27 = vector.load %arg4[%c0_12, %c0_13] : memref<250x130xbf16, #tpu.memory_space<vmem>>, vector<250x130xbf16>
    %28 = arith.truncf %26 : vector<130x32xf32> to vector<130x32xbf16>
    %cst_14 = arith.constant dense<0.000000e+00> : vector<250x32xf32>
    %29 = tpu.matmul %27, %28, %cst_14 {dimension_numbers = #tpu.dot_dimension_numbers<[1], [0], [0], [1], [0, 0, 1, 1], [], []>} : vector<250x130xbf16>, vector<130x32xbf16>, vector<250x32xf32> -> vector<250x32xf32>
    %30 = arith.truncf %29 : vector<250x32xf32> to vector<250x32xbf16>
    %c0_15 = arith.constant 0 : index
    %c0_16 = arith.constant 0 : index
    %31 = vector.load %arg17[%c0_15, %c0_16] : memref<250x32xbf16, #tpu.memory_space<vmem>>, vector<250x32xbf16>
    tpu.vector_store %arg17[%c0_15, %c0_16], %30 {strides = array<i32>} : memref<250x32xbf16, #tpu.memory_space<vmem>>, vector<250x32xbf16>,
    %c0_17 = arith.constant 0 : index
    %c0_18 = arith.constant 0 : index
    %32 = vector.load %arg17[%c0_17, %c0_18] : memref<250x32xbf16, #tpu.memory_space<vmem>>, vector<10x32xbf16>
    %c0_19 = arith.constant 0 : index
    %c0_20 = arith.constant 0 : index
    %33 = vector.load %arg5[%c0_19, %c0_20] : memref<800x32xbf16, #tpu.memory_space<vmem>>, vector<32x32xbf16>
    %cst_21 = arith.constant dense<0.000000e+00> : vector<10x32xf32>
    %34 = tpu.matmul %32, %33, %cst_21 {dimension_numbers = #tpu.dot_dimension_numbers<[1], [0], [0], [1], [0, 0, 1, 1], [], []>} : vector<10x32xbf16>, vector<32x32xbf16>, vector<10x32xf32> -> vector<10x32xf32>
    %c10 = arith.constant 10 : index
    %c0_22 = arith.constant 0 : index
    %35 = vector.load %arg17[%c10, %c0_22] : memref<250x32xbf16, #tpu.memory_space<vmem>>, vector<10x32xbf16>
    %c32 = arith.constant 32 : index
    %c0_23 = arith.constant 0 : index
    %36 = vector.load %arg5[%c32, %c0_23] : memref<800x32xbf16, #tpu.memory_space<vmem>>, vector<32x32xbf16>
    %cst_24 = arith.constant dense<0.000000e+00> : vector<10x32xf32>
    %37 = tpu.matmul %35, %36, %cst_24 {dimension_numbers = #tpu.dot_dimension_numbers<[1], [0], [0], [1], [0, 0, 1, 1], [], []>} : vector<10x32xbf16>, vector<32x32xbf16>, vector<10x32xf32> -> vector<10x32xf32>
    %38 = arith.addf %34, %37 : vector<10x32xf32>
    %c20 = arith.constant 20 : index
    %c0_25 = arith.constant 0 : index
    %39 = vector.load %arg17[%c20, %c0_25] : memref<250x32xbf16, #tpu.memory_space<vmem>>, vector<10x32xbf16>
    %c64 = arith.constant 64 : index
    %c0_26 = arith.constant 0 : index
    %40 = vector.load %arg5[%c64, %c0_26] : memref<800x32xbf16, #tpu.memory_space<vmem>>, vector<32x32xbf16>
    %cst_27 = arith.constant dense<0.000000e+00> : vector<10x32xf32>
    %41 = tpu.matmul %39, %40, %cst_27 {dimension_numbers = #tpu.dot_dimension_numbers<[1], [0], [0], [1], [0, 0, 1, 1], [], []>} : vector<10x32xbf16>, vector<32x32xbf16>, vector<10x32xf32> -> vector<10x32xf32>
    %42 = arith.addf %38, %41 : vector<10x32xf32>
    %c30 = arith.constant 30 : index
    %c0_28 = arith.constant 0 : index
    %43 = vector.load %arg17[%c30, %c0_28] : memref<250x32xbf16, #tpu.memory_space<vmem>>, vector<10x32xbf16>
    %c96 = arith.constant 96 : index
    %c0_29 = arith.constant 0 : index
    %44 = vector.load %arg5[%c96, %c0_29] : memref<800x32xbf16, #tpu.memory_space<vmem>>, vector<32x32xbf16>
    %cst_30 = arith.constant dense<0.000000e+00> : vector<10x32xf32>
    %45 = tpu.matmul %43, %44, %cst_30 {dimension_numbers = #tpu.dot_dimension_numbers<[1], [0], [0], [1], [0, 0, 1, 1], [], []>} : vector<10x32xbf16>, vector<32x32xbf16>, vector<10x32xf32> -> vector<10x32xf32>
    %46 = arith.addf %42, %45 : vector<10x32xf32>
    %c40 = arith.constant 40 : index
    %c0_31 = arith.constant 0 : index
    %47 = vector.load %arg17[%c40, %c0_31] : memref<250x32xbf16, #tpu.memory_space<vmem>>, vector<10x32xbf16>
    %c128 = arith.constant 128 : index
    %c0_32 = arith.constant 0 : index
    %48 = vector.load %arg5[%c128, %c0_32] : memref<800x32xbf16, #tpu.memory_space<vmem>>, vector<32x32xbf16>
    %cst_33 = arith.constant dense<0.000000e+00> : vector<10x32xf32>
    %49 = tpu.matmul %47, %48, %cst_33 {dimension_numbers = #tpu.dot_dimension_numbers<[1], [0], [0], [1], [0, 0, 1, 1], [], []>} : vector<10x32xbf16>, vector<32x32xbf16>, vector<10x32xf32> -> vector<10x32xf32>
    %50 = arith.addf %46, %49 : vector<10x32xf32>
    %c50 = arith.constant 50 : index
    %c0_34 = arith.constant 0 : index
    %51 = vector.load %arg17[%c50, %c0_34] : memref<250x32xbf16, #tpu.memory_space<vmem>>, vector<10x32xbf16>
    %c160 = arith.constant 160 : index
    %c0_35 = arith.constant 0 : index
    %52 = vector.load %arg5[%c160, %c0_35] : memref<800x32xbf16, #tpu.memory_space<vmem>>, vector<32x32xbf16>
    %cst_36 = arith.constant dense<0.000000e+00> : vector<10x32xf32>
    %53 = tpu.matmul %51, %52, %cst_36 {dimension_numbers = #tpu.dot_dimension_numbers<[1], [0], [0], [1], [0, 0, 1, 1], [], []>} : vector<10x32xbf16>, vector<32x32xbf16>, vector<10x32xf32> -> vector<10x32xf32>
    %54 = arith.addf %50, %53 : vector<10x32xf32>
    %c60 = arith.constant 60 : index
    %c0_37 = arith.constant 0 : index
    %55 = vector.load %arg17[%c60, %c0_37] : memref<250x32xbf16, #tpu.memory_space<vmem>>, vector<10x32xbf16>
    %c192 = arith.constant 192 : index
    %c0_38 = arith.constant 0 : index
    %56 = vector.load %arg5[%c192, %c0_38] : memref<800x32xbf16, #tpu.memory_space<vmem>>, vector<32x32xbf16>
    %cst_39 = arith.constant dense<0.000000e+00> : vector<10x32xf32>
    %57 = tpu.matmul %55, %56, %cst_39 {dimension_numbers = #tpu.dot_dimension_numbers<[1], [0], [0], [1], [0, 0, 1, 1], [], []>} : vector<10x32xbf16>, vector<32x32xbf16>, vector<10x32xf32> -> vector<10x32xf32>
    %58 = arith.addf %54, %57 : vector<10x32xf32>
    %c70 = arith.constant 70 : index
    %c0_40 = arith.constant 0 : index
    %59 = vector.load %arg17[%c70, %c0_40] : memref<250x32xbf16, #tpu.memory_space<vmem>>, vector<10x32xbf16>
    %c224 = arith.constant 224 : index
    %c0_41 = arith.constant 0 : index
    %60 = vector.load %arg5[%c224, %c0_41] : memref<800x32xbf16, #tpu.memory_space<vmem>>, vector<32x32xbf16>
    %cst_42 = arith.constant dense<0.000000e+00> : vector<10x32xf32>
    %61 = tpu.matmul %59, %60, %cst_42 {dimension_numbers = #tpu.dot_dimension_numbers<[1], [0], [0], [1], [0, 0, 1, 1], [], []>} : vector<10x32xbf16>, vector<32x32xbf16>, vector<10x32xf32> -> vector<10x32xf32>
    %62 = arith.addf %58, %61 : vector<10x32xf32>
    %c80 = arith.constant 80 : index
    %c0_43 = arith.constant 0 : index
    %63 = vector.load %arg17[%c80, %c0_43] : memref<250x32xbf16, #tpu.memory_space<vmem>>, vector<10x32xbf16>
    %c256 = arith.constant 256 : index
    %c0_44 = arith.constant 0 : index
    %64 = vector.load %arg5[%c256, %c0_44] : memref<800x32xbf16, #tpu.memory_space<vmem>>, vector<32x32xbf16>
    %cst_45 = arith.constant dense<0.000000e+00> : vector<10x32xf32>
    %65 = tpu.matmul %63, %64, %cst_45 {dimension_numbers = #tpu.dot_dimension_numbers<[1], [0], [0], [1], [0, 0, 1, 1], [], []>} : vector<10x32xbf16>, vector<32x32xbf16>, vector<10x32xf32> -> vector<10x32xf32>
    %66 = arith.addf %62, %65 : vector<10x32xf32>
    %c90 = arith.constant 90 : index
    %c0_46 = arith.constant 0 : index
    %67 = vector.load %arg17[%c90, %c0_46] : memref<250x32xbf16, #tpu.memory_space<vmem>>, vector<10x32xbf16>
    %c288 = arith.constant 288 : index
    %c0_47 = arith.constant 0 : index
    %68 = vector.load %arg5[%c288, %c0_47] : memref<800x32xbf16, #tpu.memory_space<vmem>>, vector<32x32xbf16>
    %cst_48 = arith.constant dense<0.000000e+00> : vector<10x32xf32>
    %69 = tpu.matmul %67, %68, %cst_48 {dimension_numbers = #tpu.dot_dimension_numbers<[1], [0], [0], [1], [0, 0, 1, 1], [], []>} : vector<10x32xbf16>, vector<32x32xbf16>, vector<10x32xf32> -> vector<10x32xf32>
    %70 = arith.addf %66, %69 : vector<10x32xf32>
    %c100 = arith.constant 100 : index
    %c0_49 = arith.constant 0 : index
    %71 = vector.load %arg17[%c100, %c0_49] : memref<250x32xbf16, #tpu.memory_space<vmem>>, vector<10x32xbf16>
    %c320 = arith.constant 320 : index
    %c0_50 = arith.constant 0 : index
    %72 = vector.load %arg5[%c320, %c0_50] : memref<800x32xbf16, #tpu.memory_space<vmem>>, vector<32x32xbf16>
    %cst_51 = arith.constant dense<0.000000e+00> : vector<10x32xf32>
    %73 = tpu.matmul %71, %72, %cst_51 {dimension_numbers = #tpu.dot_dimension_numbers<[1], [0], [0], [1], [0, 0, 1, 1], [], []>} : vector<10x32xbf16>, vector<32x32xbf16>, vector<10x32xf32> -> vector<10x32xf32>
    %74 = arith.addf %70, %73 : vector<10x32xf32>
    %c110 = arith.constant 110 : index
    %c0_52 = arith.constant 0 : index
    %75 = vector.load %arg17[%c110, %c0_52] : memref<250x32xbf16, #tpu.memory_space<vmem>>, vector<10x32xbf16>
    %c352 = arith.constant 352 : index
    %c0_53 = arith.constant 0 : index
    %76 = vector.load %arg5[%c352, %c0_53] : memref<800x32xbf16, #tpu.memory_space<vmem>>, vector<32x32xbf16>
    %cst_54 = arith.constant dense<0.000000e+00> : vector<10x32xf32>
    %77 = tpu.matmul %75, %76, %cst_54 {dimension_numbers = #tpu.dot_dimension_numbers<[1], [0], [0], [1], [0, 0, 1, 1], [], []>} : vector<10x32xbf16>, vector<32x32xbf16>, vector<10x32xf32> -> vector<10x32xf32>
    %78 = arith.addf %74, %77 : vector<10x32xf32>
    %c120 = arith.constant 120 : index
    %c0_55 = arith.constant 0 : index
    %79 = vector.load %arg17[%c120, %c0_55] : memref<250x32xbf16, #tpu.memory_space<vmem>>, vector<10x32xbf16>
    %c384 = arith.constant 384 : index
    %c0_56 = arith.constant 0 : index
    %80 = vector.load %arg5[%c384, %c0_56] : memref<800x32xbf16, #tpu.memory_space<vmem>>, vector<32x32xbf16>
    %cst_57 = arith.constant dense<0.000000e+00> : vector<10x32xf32>
    %81 = tpu.matmul %79, %80, %cst_57 {dimension_numbers = #tpu.dot_dimension_numbers<[1], [0], [0], [1], [0, 0, 1, 1], [], []>} : vector<10x32xbf16>, vector<32x32xbf16>, vector<10x32xf32> -> vector<10x32xf32>
    %82 = arith.addf %78, %81 : vector<10x32xf32>
    %c130 = arith.constant 130 : index
    %c0_58 = arith.constant 0 : index
    %83 = vector.load %arg17[%c130, %c0_58] : memref<250x32xbf16, #tpu.memory_space<vmem>>, vector<10x32xbf16>
    %c416 = arith.constant 416 : index
    %c0_59 = arith.constant 0 : index
    %84 = vector.load %arg5[%c416, %c0_59] : memref<800x32xbf16, #tpu.memory_space<vmem>>, vector<32x32xbf16>
    %cst_60 = arith.constant dense<0.000000e+00> : vector<10x32xf32>
    %85 = tpu.matmul %83, %84, %cst_60 {dimension_numbers = #tpu.dot_dimension_numbers<[1], [0], [0], [1], [0, 0, 1, 1], [], []>} : vector<10x32xbf16>, vector<32x32xbf16>, vector<10x32xf32> -> vector<10x32xf32>
    %86 = arith.addf %82, %85 : vector<10x32xf32>
    %c140 = arith.constant 140 : index
    %c0_61 = arith.constant 0 : index
    %87 = vector.load %arg17[%c140, %c0_61] : memref<250x32xbf16, #tpu.memory_space<vmem>>, vector<10x32xbf16>
    %c448 = arith.constant 448 : index
    %c0_62 = arith.constant 0 : index
    %88 = vector.load %arg5[%c448, %c0_62] : memref<800x32xbf16, #tpu.memory_space<vmem>>, vector<32x32xbf16>
    %cst_63 = arith.constant dense<0.000000e+00> : vector<10x32xf32>
    %89 = tpu.matmul %87, %88, %cst_63 {dimension_numbers = #tpu.dot_dimension_numbers<[1], [0], [0], [1], [0, 0, 1, 1], [], []>} : vector<10x32xbf16>, vector<32x32xbf16>, vector<10x32xf32> -> vector<10x32xf32>
    %90 = arith.addf %86, %89 : vector<10x32xf32>
    %c150 = arith.constant 150 : index
    %c0_64 = arith.constant 0 : index
    %91 = vector.load %arg17[%c150, %c0_64] : memref<250x32xbf16, #tpu.memory_space<vmem>>, vector<10x32xbf16>
    %c480 = arith.constant 480 : index
    %c0_65 = arith.constant 0 : index
    %92 = vector.load %arg5[%c480, %c0_65] : memref<800x32xbf16, #tpu.memory_space<vmem>>, vector<32x32xbf16>
    %cst_66 = arith.constant dense<0.000000e+00> : vector<10x32xf32>
    %93 = tpu.matmul %91, %92, %cst_66 {dimension_numbers = #tpu.dot_dimension_numbers<[1], [0], [0], [1], [0, 0, 1, 1], [], []>} : vector<10x32xbf16>, vector<32x32xbf16>, vector<10x32xf32> -> vector<10x32xf32>
    %94 = arith.addf %90, %93 : vector<10x32xf32>
    %c160_67 = arith.constant 160 : index
    %c0_68 = arith.constant 0 : index
    %95 = vector.load %arg17[%c160_67, %c0_68] : memref<250x32xbf16, #tpu.memory_space<vmem>>, vector<10x32xbf16>
    %c512 = arith.constant 512 : index
    %c0_69 = arith.constant 0 : index
    %96 = vector.load %arg5[%c512, %c0_69] : memref<800x32xbf16, #tpu.memory_space<vmem>>, vector<32x32xbf16>
    %cst_70 = arith.constant dense<0.000000e+00> : vector<10x32xf32>
    %97 = tpu.matmul %95, %96, %cst_70 {dimension_numbers = #tpu.dot_dimension_numbers<[1], [0], [0], [1], [0, 0, 1, 1], [], []>} : vector<10x32xbf16>, vector<32x32xbf16>, vector<10x32xf32> -> vector<10x32xf32>
    %98 = arith.addf %94, %97 : vector<10x32xf32>
    %c170 = arith.constant 170 : index
    %c0_71 = arith.constant 0 : index
    %99 = vector.load %arg17[%c170, %c0_71] : memref<250x32xbf16, #tpu.memory_space<vmem>>, vector<10x32xbf16>
    %c544 = arith.constant 544 : index
    %c0_72 = arith.constant 0 : index
    %100 = vector.load %arg5[%c544, %c0_72] : memref<800x32xbf16, #tpu.memory_space<vmem>>, vector<32x32xbf16>
    %cst_73 = arith.constant dense<0.000000e+00> : vector<10x32xf32>
    %101 = tpu.matmul %99, %100, %cst_73 {dimension_numbers = #tpu.dot_dimension_numbers<[1], [0], [0], [1], [0, 0, 1, 1], [], []>} : vector<10x32xbf16>, vector<32x32xbf16>, vector<10x32xf32> -> vector<10x32xf32>
    %102 = arith.addf %98, %101 : vector<10x32xf32>
    %c180 = arith.constant 180 : index
    %c0_74 = arith.constant 0 : index
    %103 = vector.load %arg17[%c180, %c0_74] : memref<250x32xbf16, #tpu.memory_space<vmem>>, vector<10x32xbf16>
    %c576 = arith.constant 576 : index
    %c0_75 = arith.constant 0 : index
    %104 = vector.load %arg5[%c576, %c0_75] : memref<800x32xbf16, #tpu.memory_space<vmem>>, vector<32x32xbf16>
    %cst_76 = arith.constant dense<0.000000e+00> : vector<10x32xf32>
    %105 = tpu.matmul %103, %104, %cst_76 {dimension_numbers = #tpu.dot_dimension_numbers<[1], [0], [0], [1], [0, 0, 1, 1], [], []>} : vector<10x32xbf16>, vector<32x32xbf16>, vector<10x32xf32> -> vector<10x32xf32>
    %106 = arith.addf %102, %105 : vector<10x32xf32>
    %c190 = arith.constant 190 : index
    %c0_77 = arith.constant 0 : index
    %107 = vector.load %arg17[%c190, %c0_77] : memref<250x32xbf16, #tpu.memory_space<vmem>>, vector<10x32xbf16>
    %c608 = arith.constant 608 : index
    %c0_78 = arith.constant 0 : index
    %108 = vector.load %arg5[%c608, %c0_78] : memref<800x32xbf16, #tpu.memory_space<vmem>>, vector<32x32xbf16>
    %cst_79 = arith.constant dense<0.000000e+00> : vector<10x32xf32>
    %109 = tpu.matmul %107, %108, %cst_79 {dimension_numbers = #tpu.dot_dimension_numbers<[1], [0], [0], [1], [0, 0, 1, 1], [], []>} : vector<10x32xbf16>, vector<32x32xbf16>, vector<10x32xf32> -> vector<10x32xf32>
    %110 = arith.addf %106, %109 : vector<10x32xf32>
    %c200 = arith.constant 200 : index
    %c0_80 = arith.constant 0 : index
    %111 = vector.load %arg17[%c200, %c0_80] : memref<250x32xbf16, #tpu.memory_space<vmem>>, vector<10x32xbf16>
    %c640 = arith.constant 640 : index
    %c0_81 = arith.constant 0 : index
    %112 = vector.load %arg5[%c640, %c0_81] : memref<800x32xbf16, #tpu.memory_space<vmem>>, vector<32x32xbf16>
    %cst_82 = arith.constant dense<0.000000e+00> : vector<10x32xf32>
    %113 = tpu.matmul %111, %112, %cst_82 {dimension_numbers = #tpu.dot_dimension_numbers<[1], [0], [0], [1], [0, 0, 1, 1], [], []>} : vector<10x32xbf16>, vector<32x32xbf16>, vector<10x32xf32> -> vector<10x32xf32>
    %114 = arith.addf %110, %113 : vector<10x32xf32>
    %c210 = arith.constant 210 : index
    %c0_83 = arith.constant 0 : index
    %115 = vector.load %arg17[%c210, %c0_83] : memref<250x32xbf16, #tpu.memory_space<vmem>>, vector<10x32xbf16>
    %c672 = arith.constant 672 : index
    %c0_84 = arith.constant 0 : index
    %116 = vector.load %arg5[%c672, %c0_84] : memref<800x32xbf16, #tpu.memory_space<vmem>>, vector<32x32xbf16>
    %cst_85 = arith.constant dense<0.000000e+00> : vector<10x32xf32>
    %117 = tpu.matmul %115, %116, %cst_85 {dimension_numbers = #tpu.dot_dimension_numbers<[1], [0], [0], [1], [0, 0, 1, 1], [], []>} : vector<10x32xbf16>, vector<32x32xbf16>, vector<10x32xf32> -> vector<10x32xf32>
    %118 = arith.addf %114, %117 : vector<10x32xf32>
    %c220 = arith.constant 220 : index
    %c0_86 = arith.constant 0 : index
    %119 = vector.load %arg17[%c220, %c0_86] : memref<250x32xbf16, #tpu.memory_space<vmem>>, vector<10x32xbf16>
    %c704 = arith.constant 704 : index
    %c0_87 = arith.constant 0 : index
    %120 = vector.load %arg5[%c704, %c0_87] : memref<800x32xbf16, #tpu.memory_space<vmem>>, vector<32x32xbf16>
    %cst_88 = arith.constant dense<0.000000e+00> : vector<10x32xf32>
    %121 = tpu.matmul %119, %120, %cst_88 {dimension_numbers = #tpu.dot_dimension_numbers<[1], [0], [0], [1], [0, 0, 1, 1], [], []>} : vector<10x32xbf16>, vector<32x32xbf16>, vector<10x32xf32> -> vector<10x32xf32>
    %122 = arith.addf %118, %121 : vector<10x32xf32>
    %c230 = arith.constant 230 : index
    %c0_89 = arith.constant 0 : index
    %123 = vector.load %arg17[%c230, %c0_89] : memref<250x32xbf16, #tpu.memory_space<vmem>>, vector<10x32xbf16>
    %c736 = arith.constant 736 : index
    %c0_90 = arith.constant 0 : index
    %124 = vector.load %arg5[%c736, %c0_90] : memref<800x32xbf16, #tpu.memory_space<vmem>>, vector<32x32xbf16>
    %cst_91 = arith.constant dense<0.000000e+00> : vector<10x32xf32>
    %125 = tpu.matmul %123, %124, %cst_91 {dimension_numbers = #tpu.dot_dimension_numbers<[1], [0], [0], [1], [0, 0, 1, 1], [], []>} : vector<10x32xbf16>, vector<32x32xbf16>, vector<10x32xf32> -> vector<10x32xf32>
    %126 = arith.addf %122, %125 : vector<10x32xf32>
    %c240 = arith.constant 240 : index
    %c0_92 = arith.constant 0 : index
    %127 = vector.load %arg17[%c240, %c0_92] : memref<250x32xbf16, #tpu.memory_space<vmem>>, vector<10x32xbf16>
    %c768 = arith.constant 768 : index
    %c0_93 = arith.constant 0 : index
    %128 = vector.load %arg5[%c768, %c0_93] : memref<800x32xbf16, #tpu.memory_space<vmem>>, vector<32x32xbf16>
    %cst_94 = arith.constant dense<0.000000e+00> : vector<10x32xf32>
    %129 = tpu.matmul %127, %128, %cst_94 {dimension_numbers = #tpu.dot_dimension_numbers<[1], [0], [0], [1], [0, 0, 1, 1], [], []>} : vector<10x32xbf16>, vector<32x32xbf16>, vector<10x32xf32> -> vector<10x32xf32>
    %130 = arith.addf %126, %129 : vector<10x32xf32>
    %cst_95 = arith.constant dense<0.000000e+00> : vector<32xf32>
    %131 = vector.multi_reduction <add>, %130, %cst_95 [0] : vector<10x32xf32> to vector<32xf32>
    %132 = vector.shape_cast %131 : vector<32xf32> to vector<1x32xf32>
    %cst_96 = arith.constant 1.000000e+01 : f32
    %133 = vector.broadcast %cst_96 : f32 to vector<1x32xf32>
    %134 = arith.divf %132, %133 : vector<1x32xf32>
    %135 = vector.broadcast %134 : vector<1x32xf32> to vector<10x32xf32>
    %136 = arith.subf %130, %135 : vector<10x32xf32>
    %137 = arith.mulf %136, %136 : vector<10x32xf32>
    %cst_97 = arith.constant dense<0.000000e+00> : vector<32xf32>
    %138 = vector.multi_reduction <add>, %137, %cst_97 [0] : vector<10x32xf32> to vector<32xf32>
    %139 = vector.shape_cast %138 : vector<32xf32> to vector<1x32xf32>
    %cst_98 = arith.constant 1.000000e+01 : f32
    %140 = vector.broadcast %cst_98 : f32 to vector<1x32xf32>
    %141 = arith.divf %139, %140 : vector<1x32xf32>
    %c0_99 = arith.constant 0 : index
    %c0_100 = arith.constant 0 : index
    %142 = vector.load %arg6[%c0_99, %c0_100] : memref<1x32xf32, #tpu.memory_space<vmem>>, vector<1x32xf32>
    %cst_101 = arith.constant 9.99999974E-6 : f32
    %143 = vector.broadcast %cst_101 : f32 to vector<1x32xf32>
    %144 = arith.addf %141, %143 : vector<1x32xf32>
    %145 = math.rsqrt %144 : vector<1x32xf32>
    %146 = arith.mulf %142, %145 : vector<1x32xf32>
    %147 = vector.broadcast %146 : vector<1x32xf32> to vector<10x32xf32>
    %148 = arith.mulf %130, %147 : vector<10x32xf32>
    %c0_102 = arith.constant 0 : index
    %c0_103 = arith.constant 0 : index
    %149 = vector.load %arg7[%c0_102, %c0_103] : memref<1x32xf32, #tpu.memory_space<vmem>>, vector<1x32xf32>
    %150 = arith.mulf %134, %146 : vector<1x32xf32>
    %151 = arith.subf %149, %150 : vector<1x32xf32>
    %152 = vector.broadcast %151 : vector<1x32xf32> to vector<10x32xf32>
    %153 = arith.addf %148, %152 : vector<10x32xf32>
    %c0_104 = arith.constant 0 : index
    %c0_105 = arith.constant 0 : index
    %154 = vector.load %arg18[%c0_104, %c0_105] : memref<10x32xf32, #tpu.memory_space<vmem>>, vector<10x32xf32>
    tpu.vector_store %arg18[%c0_104, %c0_105], %153 {strides = array<i32>} : memref<10x32xf32, #tpu.memory_space<vmem>>, vector<10x32xf32>,
    %c0_106 = arith.constant 0 : index
    %c0_107 = arith.constant 0 : index
    %155 = vector.load %arg18[%c0_106, %c0_107] : memref<10x32xf32, #tpu.memory_space<vmem>>, vector<5x32xf32>
    %c0_108 = arith.constant 0 : index
    %c0_109 = arith.constant 0 : index
    %156 = vector.load %arg19[%c0_108, %c0_109] : memref<5x64xf32, #tpu.memory_space<vmem>>, vector<5x32xf32>
    tpu.vector_store %arg19[%c0_108, %c0_109], %155 {strides = array<i32>} : memref<5x64xf32, #tpu.memory_space<vmem>>, vector<5x32xf32>,
    %c5 = arith.constant 5 : index
    %c0_110 = arith.constant 0 : index
    %157 = vector.load %arg18[%c5, %c0_110] : memref<10x32xf32, #tpu.memory_space<vmem>>, vector<5x32xf32>
    %c0_111 = arith.constant 0 : index
    %c32_112 = arith.constant 32 : index
    %158 = vector.load %arg19[%c0_111, %c32_112] : memref<5x64xf32, #tpu.memory_space<vmem>>, vector<5x32xf32>
    tpu.vector_store %arg19[%c0_111, %c32_112], %157 {strides = array<i32>} : memref<5x64xf32, #tpu.memory_space<vmem>>, vector<5x32xf32>,
    %c0_113 = arith.constant 0 : index
    %c0_114 = arith.constant 0 : index
    %159 = vector.load %arg19[%c0_113, %c0_114] : memref<5x64xf32, #tpu.memory_space<vmem>>, vector<5x64xf32>
    %160 = arith.truncf %159 : vector<5x64xf32> to vector<5x64xbf16>
    %c0_115 = arith.constant 0 : index
    %c0_116 = arith.constant 0 : index
    %161 = vector.load %arg8[%c0_115, %c0_116] : memref<32x5xbf16, #tpu.memory_space<vmem>>, vector<32x5xbf16>
    %cst_117 = arith.constant dense<0.000000e+00> : vector<32x64xf32>
    %162 = tpu.matmul %161, %160, %cst_117 {dimension_numbers = #tpu.dot_dimension_numbers<[1], [0], [0], [1], [0, 0, 1, 1], [], []>} : vector<32x5xbf16>, vector<5x64xbf16>, vector<32x64xf32> -> vector<32x64xf32>
    %c0_118 = arith.constant 0 : index
    %c0_119 = arith.constant 0 : index
    %163 = vector.load %arg9[%c0_118, %c0_119] : memref<32x1xf32, #tpu.memory_space<vmem>>, vector<32x1xf32>
    %164 = vector.broadcast %163 : vector<32x1xf32> to vector<32x64xf32>
    %165 = arith.addf %162, %164 : vector<32x64xf32>
    %cst_120 = arith.constant 0.000000e+00 : f32
    %166 = vector.broadcast %cst_120 : f32 to vector<32x64xf32>
    %167 = arith.maximumf %165, %166 : vector<32x64xf32>
    %c0_121 = arith.constant 0 : index
    %c0_122 = arith.constant 0 : index
    %168 = vector.load %arg10[%c0_121, %c0_122] : memref<32x32xbf16, #tpu.memory_space<vmem>>, vector<32x32xbf16>
    %169 = arith.truncf %167 : vector<32x64xf32> to vector<32x64xbf16>
    %cst_123 = arith.constant dense<0.000000e+00> : vector<32x64xf32>
    %170 = tpu.matmul %168, %169, %cst_123 {dimension_numbers = #tpu.dot_dimension_numbers<[1], [0], [0], [1], [0, 0, 1, 1], [], []>} : vector<32x32xbf16>, vector<32x64xbf16>, vector<32x64xf32> -> vector<32x64xf32>
    %c0_124 = arith.constant 0 : index
    %c0_125 = arith.constant 0 : index
    %171 = vector.load %arg11[%c0_124, %c0_125] : memref<32x1xf32, #tpu.memory_space<vmem>>, vector<32x1xf32>
    %172 = vector.broadcast %171 : vector<32x1xf32> to vector<32x64xf32>
    %173 = arith.addf %170, %172 : vector<32x64xf32>
    %cst_126 = arith.constant 0.000000e+00 : f32
    %174 = vector.broadcast %cst_126 : f32 to vector<32x64xf32>
    %175 = arith.maximumf %173, %174 : vector<32x64xf32>
    %c0_127 = arith.constant 0 : index
    %c0_128 = arith.constant 0 : index
    %176 = vector.load %arg12[%c0_127, %c0_128] : memref<2x32xbf16, #tpu.memory_space<vmem>>, vector<2x32xbf16>
    %177 = arith.truncf %175 : vector<32x64xf32> to vector<32x64xbf16>
    %cst_129 = arith.constant dense<0.000000e+00> : vector<2x64xf32>
    %178 = tpu.matmul %176, %177, %cst_129 {dimension_numbers = #tpu.dot_dimension_numbers<[1], [0], [0], [1], [0, 0, 1, 1], [], []>} : vector<2x32xbf16>, vector<32x64xbf16>, vector<2x64xf32> -> vector<2x64xf32>
    %c0_130 = arith.constant 0 : index
    %c0_131 = arith.constant 0 : index
    %179 = vector.load %arg13[%c0_130, %c0_131] : memref<2x1xf32, #tpu.memory_space<vmem>>, vector<2x1xf32>
    %180 = vector.broadcast %179 : vector<2x1xf32> to vector<2x64xf32>
    %181 = arith.addf %178, %180 : vector<2x64xf32>
    %182 = vector.extract_strided_slice %181 {offsets = [0, 0], sizes = [1, 64], strides = [1, 1]} : vector<2x64xf32> to vector<1x64xf32>
    %183 = vector.extract_strided_slice %181 {offsets = [1, 0], sizes = [1, 64], strides = [1, 1]} : vector<2x64xf32> to vector<1x64xf32>
    %cst_132 = arith.constant -2.000000e+01 : f32
    %cst_133 = arith.constant 2.000000e+00 : f32
    %184 = vector.broadcast %cst_132 : f32 to vector<1x64xf32>
    %185 = arith.maximumf %184, %183 : vector<1x64xf32>
    %186 = vector.broadcast %cst_133 : f32 to vector<1x64xf32>
    %187 = arith.minimumf %186, %185 : vector<1x64xf32>
    %188 = math.exp %187 : vector<1x64xf32>
    %c0_134 = arith.constant 0 : index
    %c0_135 = arith.constant 0 : index
    %189 = vector.load %arg15[%c0_134, %c0_135] : memref<1x64xf32, #tpu.memory_space<vmem>>, vector<1x64xf32>
    %190 = arith.mulf %188, %189 : vector<1x64xf32>
    %191 = arith.addf %182, %190 : vector<1x64xf32>
    %cst_136 = arith.constant -5.000000e-01 : f32
    %192 = vector.broadcast %cst_136 : f32 to vector<1x64xf32>
    %193 = arith.mulf %192, %189 : vector<1x64xf32>
    %194 = arith.mulf %193, %189 : vector<1x64xf32>
    %195 = arith.subf %194, %187 : vector<1x64xf32>
    %cst_137 = arith.constant 0.918938517 : f32
    %196 = vector.broadcast %cst_137 : f32 to vector<1x64xf32>
    %197 = arith.subf %195, %196 : vector<1x64xf32>
    %cst_138 = arith.constant -2.000000e+00 : f32
    %198 = vector.broadcast %cst_138 : f32 to vector<1x64xf32>
    %199 = arith.mulf %198, %191 : vector<1x64xf32>
    %cst_139 = arith.constant 0.000000e+00 : f32
    %200 = vector.broadcast %cst_139 : f32 to vector<1x64xf32>
    %201 = arith.maximumf %199, %200 : vector<1x64xf32>
    %202 = math.absf %199 : vector<1x64xf32>
    %cst_140 = arith.constant 0.000000e+00 : f32
    %203 = vector.broadcast %cst_140 : f32 to vector<1x64xf32>
    %204 = arith.subf %203, %202 : vector<1x64xf32>
    %205 = math.exp %204 : vector<1x64xf32>
    %206 = math.log1p %205 : vector<1x64xf32>
    %207 = arith.addf %201, %206 : vector<1x64xf32>
    %cst_141 = arith.constant 0.693147182 : f32
    %208 = vector.broadcast %cst_141 : f32 to vector<1x64xf32>
    %209 = arith.subf %208, %191 : vector<1x64xf32>
    %210 = arith.subf %209, %207 : vector<1x64xf32>
    %cst_142 = arith.constant 2.000000e+00 : f32
    %211 = vector.broadcast %cst_142 : f32 to vector<1x64xf32>
    %212 = arith.mulf %211, %210 : vector<1x64xf32>
    %c0_143 = arith.constant 0 : index
    %c0_144 = arith.constant 0 : index
    %213 = vector.load %arg14[%c0_143, %c0_144] : memref<64x64xf32, #tpu.memory_space<vmem>>, vector<64x64xf32>
    %cst_145 = arith.constant dense<0.000000e+00> : vector<1x64xf32>
    %214 = tpu.matmul %212, %213, %cst_145 {dimension_numbers = #tpu.dot_dimension_numbers<[1], [0], [0], [1], [0, 0, 1, 1], [], []>} : vector<1x64xf32>, vector<64x64xf32>, vector<1x64xf32> -> vector<1x64xf32>
    %215 = math.tanh %191 : vector<1x64xf32>
    %cst_146 = arith.constant 2.000000e+00 : f32
    %216 = vector.broadcast %cst_146 : f32 to vector<1x64xf32>
    %217 = arith.mulf %216, %215 : vector<1x64xf32>
    %c0_147 = arith.constant 0 : index
    %c0_148 = arith.constant 0 : index
    %218 = vector.load %arg16[%c0_147, %c0_148] : memref<2x64xf32, #tpu.memory_space<vmem>>, vector<1x64xf32>
    tpu.vector_store %arg16[%c0_147, %c0_148], %217 {strides = array<i32>} : memref<2x64xf32, #tpu.memory_space<vmem>>, vector<1x64xf32>,
    %219 = arith.subf %197, %214 : vector<1x64xf32>
    %c1 = arith.constant 1 : index
    %c0_149 = arith.constant 0 : index
    %220 = vector.load %arg16[%c1, %c0_149] : memref<2x64xf32, #tpu.memory_space<vmem>>, vector<1x64xf32>
    tpu.vector_store %arg16[%c1, %c0_149], %219 {strides = array<i32>} : memref<2x64xf32, #tpu.memory_space<vmem>>, vector<1x64xf32>,
    return
  }
}

</mosaic_0001>

<bundles_post_ra>
// kernel: actor_forward.2
= control target key start
LH: loop header
LB: loop body
LE: loop exit
PB: predicated region body
PF: predicated region fallthrough
CT: control target
= control target key end

     0   :  { %vm345_vm0 = vcmask 1044480   ;;  %vm346_vm1 = vcmask 1045504   ;;  %v1891_v1 = vmov 65535   ;;  %vm200_vm2 = vcmask 613376   ;;  %s3903_s1 = inlined_call_operand.vmem [shape: bf16[75,16], index: 1, kind: input, shape index: {}]   ;;  %s3904_s0 = inlined_call_operand.vmem [shape: f32[754,75], index: 0, kind: input, shape index: {}]   ;;  %s3905_s2 = inlined_call_operand.vmem [shape: f32[1,16], index: 2, kind: input, shape index: {}]   ;;  %s3906_s3 = inlined_call_operand.vmem [shape: f32[1,16], index: 3, kind: input, shape index: {}]   ;;  %s3907_s4 = inlined_call_operand.vmem [shape: f32[754,16], index: 4, kind: output, shape index: {}]  }
   0x1   :  { %v1884_v0 = vld [vmem:[%s3903_s1 + $0x20] sm:$0x3f]   ;;  %v347_v2 = vsel %vm345_vm0, 4294967295, %v1891_v1  ;;  %v1885_v5 = vld [vmem:[%s3903_s1 + $0x18] sm:$0xff]   ;;  %v19_v7 = vld [vmem:[%s3904_s0 + $0x8] sm:$0xff]  ;;  %vm768_vm3 = vcmask 130048  }
   0x2   :  { %v348_v3 = vsel %vm346_vm1, %v347_v2, 0  ;;  %v18_v6 = vld [vmem:[%s3904_s0] sm:$0xff]  ;;  %v1886_v9 = vld [vmem:[%s3903_s1 + $0x10] sm:$0xff]   ;;  %v1887_v10 = vld [vmem:[%s3903_s1 + $0x8] sm:$0xff]   ;;  %vm956_vm4 = vcmask 123904  }
   0x3   :  { %v350_v4 = vand.u32 %v1884_v0, %v348_v3  ;;  %v113_v8 = vpack.c.bf16 %v19_v7, %v18_v6  ;;  %v1888_v11 = vld [vmem:[%s3903_s1] sm:$0xff]   ;;  %v20_v12 = vld [vmem:[%s3904_s0 + $0x10] sm:$0xff]  ;;  %v21_v13 = vld [vmem:[%s3904_s0 + $0x18] sm:$0xff] }
   0x4   :  { %v22_v14 = vld [vmem:[%s3904_s0 + $0x20] sm:$0xff]  ;;  %v23_v15 = vld [vmem:[%s3904_s0 + $0x28] sm:$0xff]  ;;  %v114_v16 = vpack.c.bf16 %v21_v13, %v20_v12  ;;  %v68_v19 = vld [vmem:[%s3904_s0 + $0x190] sm:$0xff] }
   0x5   :  { %1767 = vmatprep.subr.bf16.mxu0 %v350_v4  ;;  %1873 = vmatprep.subr.bf16.mxu1 %v350_v4  ;;  %v66_v17 = vld [vmem:[%s3904_s0 + $0x180] sm:$0xff]  ;;  %v67_v18 = vld [vmem:[%s3904_s0 + $0x188] sm:$0xff]  ;;  %v115_v20 = vpack.c.bf16 %v23_v15, %v22_v14  ;;  %v69_v22 = vld [vmem:[%s3904_s0 + $0x198] sm:$0xff] }
   0x6   :  { %1768 = vmatpush3.bf16.msra.mxu0 %v350_v4  ;;  %1878 = vmatpush3.bf16.msra.mxu1 %v350_v4  ;;  %v137_v21 = vpack.c.bf16 %v67_v18, %v66_v17  ;;  %v70_v23 = vld [vmem:[%s3904_s0 + $0x1a0] sm:$0xff]  ;;  %v71_v24 = vld [vmem:[%s3904_s0 + $0x1a8] sm:$0xff]  ;;  %v138_v25 = vpack.c.bf16 %v69_v22, %v68_v19  ;;  %v24_v27 = vld [vmem:[%s3904_s0 + $0x30] sm:$0xff] }
   0x7   :  { %1769 = vmatprep.subr.bf16.mxu0 %v1885_v5  ;;  %1874 = vmatprep.subr.bf16.mxu1 %v1885_v5  ;;  %v139_v26 = vpack.c.bf16 %v71_v24, %v70_v23  ;;  %v25_v28 = vld [vmem:[%s3904_s0 + $0x38] sm:$0xff]  ;;  %v26_v29 = vld [vmem:[%s3904_s0 + $0x40] sm:$0xff]  ;;  %v72_v30 = vld [vmem:[%s3904_s0 + $0x1b0] sm:$0xff] }
   0x8   :  { %1777 = vmatprep.mubr.msk.bf16.mxu0 %vm200_vm2, %v113_v8  ;;  %1825 = vmatprep.mubr.msk.bf16.mxu1 %vm200_vm2, %v137_v21  ;;  %v73_v31 = vld [vmem:[%s3904_s0 + $0x1b8] sm:$0xff]  ;;  %v27_v32 = vld [vmem:[%s3904_s0 + $0x48] sm:$0xff]  ;;  %v74_v33 = vld [vmem:[%s3904_s0 + $0x1c0] sm:$0xff]  ;;  %v116_v35 = vpack.c.bf16 %v25_v28, %v24_v27 }
   0x9   :  { %v75_v34 = vld [vmem:[%s3904_s0 + $0x1c8] sm:$0xff]  ;;  %v140_v36 = vpack.c.bf16 %v73_v31, %v72_v30  ;;  %v117_v37 = vpack.c.bf16 %v27_v32, %v26_v29  ;;  %v28_v39 = vld [vmem:[%s3904_s0 + $0x50] sm:$0xff]  ;;  %v29_v40 = vld [vmem:[%s3904_s0 + $0x58] sm:$0xff] }
   0xa   :  { %1770 = vmatpush3.bf16.msra.mxu0 %v1885_v5  ;;  %1879 = vmatpush3.bf16.msra.mxu1 %v1885_v5  ;;  %v141_v38 = vpack.c.bf16 %v75_v34, %v74_v33  ;;  %v30_v41 = vld [vmem:[%s3904_s0 + $0x60] sm:$0xff]  ;;  %v76_v42 = vld [vmem:[%s3904_s0 + $0x1d0] sm:$0xff]  ;;  %v77_v43 = vld [vmem:[%s3904_s0 + $0x1d8] sm:$0xff]  ;;  %v118_v47 = vpack.c.bf16 %v29_v40, %v28_v39 }
   0xb   :  { %1771 = vmatprep.subr.bf16.mxu0 %v1886_v9  ;;  %1875 = vmatprep.subr.bf16.mxu1 %v1886_v9  ;;  %v31_v44 = vld [vmem:[%s3904_s0 + $0x68] sm:$0xff]  ;;  %v78_v45 = vld [vmem:[%s3904_s0 + $0x1e0] sm:$0xff]  ;;  %v142_v48 = vpack.c.bf16 %v77_v43, %v76_v42  ;;  %v32_v51 = vld [vmem:[%s3904_s0 + $0x70] sm:$0xff] }
   0xc   :  { %v79_v46 = vld [vmem:[%s3904_s0 + $0x1e8] sm:$0xff]  ;;  %v119_v49 = vpack.c.bf16 %v31_v44, %v30_v41  ;;  %v33_v52 = vld [vmem:[%s3904_s0 + $0x78] sm:$0xff]  ;;  %v34_v53 = vld [vmem:[%s3904_s0 + $0x80] sm:$0xff] }
   0xd   :  { %v143_v50 = vpack.c.bf16 %v79_v46, %v78_v45  ;;  %v80_v54 = vld [vmem:[%s3904_s0 + $0x1f0] sm:$0xff]  ;;  %v81_v55 = vld [vmem:[%s3904_s0 + $0x1f8] sm:$0xff]  ;;  %v35_v56 = vld [vmem:[%s3904_s0 + $0x88] sm:$0xff]  ;;  %v120_v59 = vpack.c.bf16 %v33_v52, %v32_v51 }
   0xe   :  { %1772 = vmatpush3.bf16.msra.mxu0 %v1886_v9  ;;  %1880 = vmatpush3.bf16.msra.mxu1 %v1886_v9  ;;  %v82_v57 = vld [vmem:[%s3904_s0 + $0x200] sm:$0xff]  ;;  %v83_v58 = vld [vmem:[%s3904_s0 + $0x208] sm:$0xff]  ;;  %v144_v60 = vpack.c.bf16 %v81_v55, %v80_v54  ;;  %v121_v61 = vpack.c.bf16 %v35_v56, %v34_v53  ;;  %v36_v63 = vld [vmem:[%s3904_s0 + $0x90] sm:$0xff] }
   0xf   :  { %1773 = vmatprep.subr.bf16.mxu0 %v1887_v10  ;;  %1876 = vmatprep.subr.bf16.mxu1 %v1887_v10  ;;  %v145_v62 = vpack.c.bf16 %v83_v58, %v82_v57  ;;  %v37_v0 = vld [vmem:[%s3904_s0 + $0x98] sm:$0xff]  ;;  %v38_v1 = vld [vmem:[%s3904_s0 + $0xa0] sm:$0xff]  ;;  %v84_v2 = vld [vmem:[%s3904_s0 + $0x210] sm:$0xff] }
  0x10   :  { %v85_v3 = vld [vmem:[%s3904_s0 + $0x218] sm:$0xff]  ;;  %v39_v4 = vld [vmem:[%s3904_s0 + $0xa8] sm:$0xff]  ;;  %v86_v5 = vld [vmem:[%s3904_s0 + $0x220] sm:$0xff]  ;;  %v122_v7 = vpack.c.bf16 %v37_v0, %v36_v63 }
  0x11   :  { %v87_v6 = vld [vmem:[%s3904_s0 + $0x228] sm:$0xff]  ;;  %v146_v8 = vpack.c.bf16 %v85_v3, %v84_v2  ;;  %v123_v9 = vpack.c.bf16 %v39_v4, %v38_v1  ;;  %v41_v12 = vld [vmem:[%s3904_s0 + $0xb8] sm:$0xff]  ;;  %v42_v13 = vld [vmem:[%s3904_s0 + $0xc0] sm:$0xff] }
  0x12   :  { %1774 = vmatpush3.bf16.msra.mxu0 %v1887_v10  ;;  %1881 = vmatpush3.bf16.msra.mxu1 %v1887_v10  ;;  %v147_v10 = vpack.c.bf16 %v87_v6, %v86_v5  ;;  %v88_v14 = vld [vmem:[%s3904_s0 + $0x230] sm:$0xff]  ;;  %v89_v15 = vld [vmem:[%s3904_s0 + $0x238] sm:$0xff]  ;;  %v90_v17 = vld [vmem:[%s3904_s0 + $0x240] sm:$0xff] }
  0x13   :  { %1775 = vmatprep.subr.bf16.mxu0 %v1888_v11  ;;  %1877 = vmatprep.subr.bf16.mxu1 %v1888_v11  ;;  %v91_v18 = vld [vmem:[%s3904_s0 + $0x248] sm:$0xff]  ;;  %v44_v23 = vld [vmem:[%s3904_s0 + $0xd0] sm:$0xff]  ;;  %v45_v24 = vld [vmem:[%s3904_s0 + $0xd8] sm:$0xff] }
  0x14   :  { %v149_v22 = vpack.c.bf16 %v91_v18, %v90_v17  ;;  %v93_v27 = vld [vmem:[%s3904_s0 + $0x258] sm:$0xff]  ;;  %v47_v28 = vld [vmem:[%s3904_s0 + $0xe8] sm:$0xff]  ;;  %v94_v29 = vld [vmem:[%s3904_s0 + $0x260] sm:$0xff]  ;;  %v126_v31 = vpack.c.bf16 %v45_v24, %v44_v23 }
  0x15   :  { %v95_v30 = vld [vmem:[%s3904_s0 + $0x268] sm:$0xff]  ;;  %v97_v39 = vld [vmem:[%s3904_s0 + $0x278] sm:$0xff]  ;;  %v98_v41 = vld [vmem:[%s3904_s0 + $0x280] sm:$0xff] }
  0x16   :  { %1776 = vmatpush3.bf16.msra.mxu0 %v1888_v11  ;;  %1882 = vmatpush3.bf16.msra.mxu1 %v1888_v11  ;;  %v40_v11 = vld [vmem:[%s3904_s0 + $0xb0] sm:$0xff]  ;;  %v151_v34 = vpack.c.bf16 %v95_v30, %v94_v29  ;;  %v51_v40 = vld [vmem:[%s3904_s0 + $0x108] sm:$0xff]  ;;  %v101_v51 = vld [vmem:[%s3904_s0 + $0x298] sm:$0xff] }
  0x17   :  { %v124_v19 = vpack.c.bf16 %v41_v12, %v40_v11  ;;  %v99_v42 = vld [vmem:[%s3904_s0 + $0x288] sm:$0xff]  ;;  %v102_v53 = vld [vmem:[%s3904_s0 + $0x2a0] sm:$0xff]  ;;  %v105_v63 = vld [vmem:[%s3904_s0 + $0x2b8] sm:$0xff] }
  0x18   :  { %v153_v46 = vpack.c.bf16 %v99_v42, %v98_v41  ;;  %v55_v52 = vld [vmem:[%s3904_s0 + $0x128] sm:$0xff]  ;;  %v106_v1 = vld [vmem:[%s3904_s0 + $0x2c0] sm:$0xff]  ;;  %v109_v11 = vld [vmem:[%s3904_s0 + $0x2d8] sm:$0xff] }
  0x19   :  { %1778 = vmatmul.mubr.msk.bf16.vlgmr.msra.gmra.mxu0 %vm200_vm2, %v114_v16  ;;  %1826 = vmatmul.mubr.msk.bf16.vlgmr.msra.gmra.mxu1 %vm200_vm2, %v138_v25  ;;  %v43_v16 = vld [vmem:[%s3904_s0 + $0xc8] sm:$0xff]  ;;  %v46_v25 = vld [vmem:[%s3904_s0 + $0xe0] sm:$0xff] }
  0x1a   :  { %1781 = vmatprep.mubr.msk.bf16.mxu0 %vm200_vm2, %v115_v20  ;;  %1829 = vmatprep.mubr.msk.bf16.mxu1 %vm200_vm2, %v139_v26  ;;  %v148_v20 = vpack.c.bf16 %v89_v15, %v88_v14  ;;  %v125_v21 = vpack.c.bf16 %v43_v16, %v42_v13  ;;  %v92_v26 = vld [vmem:[%s3904_s0 + $0x250] sm:$0xff]  ;;  %v127_v33 = vpack.c.bf16 %v47_v28, %v46_v25  ;;  %v103_v54 = vld [vmem:[%s3904_s0 + $0x2a8] sm:$0xff]  ;;  %v110_v13 = vld [vmem:[%s3904_s0 + $0x2e0] sm:$0xff] }
  0x1b   :  { %v150_v32 = vpack.c.bf16 %v93_v27, %v92_v26  ;;  %v155_v58 = vpack.c.bf16 %v103_v54, %v102_v53  ;;  %v59_v0 = vld [vmem:[%s3904_s0 + $0x148] sm:$0xff] }
  0x1c   :  { %v107_v2 = vld [vmem:[%s3904_s0 + $0x2c8] sm:$0xff] }
  0x1d   :  { %v157_v6 = vpack.c.bf16 %v107_v2, %v106_v1  ;;  %v63_v12 = vld [vmem:[%s3904_s0 + $0x168] sm:$0xff] }
  0x1e   :  { %v111_v14 = vld [vmem:[%s3904_s0 + $0x2e8] sm:$0xff] }
  0x1f   :  { %v159_v18 = vpack.c.bf16 %v111_v14, %v110_v13 }
  0x21   :  { %1782 = vmatmul.mubr.msk.bf16.gmra.mxu0 %vm200_vm2, %v116_v35  ;;  %1830 = vmatmul.mubr.msk.bf16.gmra.mxu1 %vm200_vm2, %v140_v36  ;;  %v48_v35 = vld [vmem:[%s3904_s0 + $0xf0] sm:$0xff]  ;;  %v49_v36 = vld [vmem:[%s3904_s0 + $0xf8] sm:$0xff] }
  0x22   :  { %1785 = vmatprep.mubr.msk.bf16.mxu0 %vm200_vm2, %v117_v37  ;;  %1833 = vmatprep.mubr.msk.bf16.mxu1 %vm200_vm2, %v141_v38  ;;  %v50_v37 = vld [vmem:[%s3904_s0 + $0x100] sm:$0xff]  ;;  %v96_v38 = vld [vmem:[%s3904_s0 + $0x270] sm:$0xff]  ;;  %v128_v43 = vpack.c.bf16 %v49_v36, %v48_v35 }
  0x23   :  { %v152_v44 = vpack.c.bf16 %v97_v39, %v96_v38  ;;  %v129_v45 = vpack.c.bf16 %v51_v40, %v50_v37 }
  0x29   :  { %1786 = vmatmul.mubr.msk.bf16.gmra.mxu0 %vm200_vm2, %v118_v47  ;;  %1834 = vmatmul.mubr.msk.bf16.gmra.mxu1 %vm200_vm2, %v142_v48  ;;  %v52_v47 = vld [vmem:[%s3904_s0 + $0x110] sm:$0xff]  ;;  %v53_v48 = vld [vmem:[%s3904_s0 + $0x118] sm:$0xff] }
  0x2a   :  { %1789 = vmatprep.mubr.msk.bf16.mxu0 %vm200_vm2, %v119_v49  ;;  %1837 = vmatprep.mubr.msk.bf16.mxu1 %vm200_vm2, %v143_v50  ;;  %v54_v49 = vld [vmem:[%s3904_s0 + $0x120] sm:$0xff]  ;;  %v100_v50 = vld [vmem:[%s3904_s0 + $0x290] sm:$0xff]  ;;  %v130_v55 = vpack.c.bf16 %v53_v48, %v52_v47 }
  0x2b   :  { %v154_v56 = vpack.c.bf16 %v101_v51, %v100_v50  ;;  %v131_v57 = vpack.c.bf16 %v55_v52, %v54_v49 }
  0x31   :  { %1790 = vmatmul.mubr.msk.bf16.gmra.mxu0 %vm200_vm2, %v120_v59  ;;  %1838 = vmatmul.mubr.msk.bf16.gmra.mxu1 %vm200_vm2, %v144_v60  ;;  %v56_v59 = vld [vmem:[%s3904_s0 + $0x130] sm:$0xff]  ;;  %v57_v60 = vld [vmem:[%s3904_s0 + $0x138] sm:$0xff] }
  0x32   :  { %1793 = vmatprep.mubr.msk.bf16.mxu0 %vm200_vm2, %v121_v61  ;;  %1841 = vmatprep.mubr.msk.bf16.mxu1 %vm200_vm2, %v145_v62  ;;  %v58_v61 = vld [vmem:[%s3904_s0 + $0x140] sm:$0xff]  ;;  %v104_v62 = vld [vmem:[%s3904_s0 + $0x2b0] sm:$0xff]  ;;  %v132_v3 = vpack.c.bf16 %v57_v60, %v56_v59 }
  0x33   :  { %v156_v4 = vpack.c.bf16 %v105_v63, %v104_v62  ;;  %v133_v5 = vpack.c.bf16 %v59_v0, %v58_v61 }
  0x39   :  { %1794 = vmatmul.mubr.msk.bf16.gmra.mxu0 %vm200_vm2, %v122_v7  ;;  %1842 = vmatmul.mubr.msk.bf16.gmra.mxu1 %vm200_vm2, %v146_v8  ;;  %v60_v7 = vld [vmem:[%s3904_s0 + $0x150] sm:$0xff]  ;;  %v61_v8 = vld [vmem:[%s3904_s0 + $0x158] sm:$0xff] }
  0x3a   :  { %1797 = vmatprep.mubr.msk.bf16.mxu0 %vm200_vm2, %v123_v9  ;;  %1845 = vmatprep.mubr.msk.bf16.mxu1 %vm200_vm2, %v147_v10  ;;  %v62_v9 = vld [vmem:[%s3904_s0 + $0x160] sm:$0xff]  ;;  %v108_v10 = vld [vmem:[%s3904_s0 + $0x2d0] sm:$0xff]  ;;  %v134_v15 = vpack.c.bf16 %v61_v8, %v60_v7 }
  0x3b   :  { %v158_v16 = vpack.c.bf16 %v109_v11, %v108_v10  ;;  %v135_v17 = vpack.c.bf16 %v63_v12, %v62_v9 }
  0x41   :  { %1798 = vmatmul.mubr.msk.bf16.gmra.mxu0 %vm200_vm2, %v124_v19  ;;  %1846 = vmatmul.mubr.msk.bf16.gmra.mxu1 %vm200_vm2, %v148_v20  ;;  %v64_v19 = vld [vmem:[%s3904_s0 + $0x170] sm:$0xff]  ;;  %v65_v20 = vld [vmem:[%s3904_s0 + $0x178] sm:$0xff] }
  0x42   :  { %1801 = vmatprep.mubr.msk.bf16.mxu0 %vm200_vm2, %v125_v21  ;;  %1849 = vmatprep.mubr.msk.bf16.mxu1 %vm200_vm2, %v149_v22  ;;  %v112_v21 = vld [vmem:[%s3904_s0 + $0x2f0] sm:$0x3]  ;;  %v136_v22 = vpack.c.bf16 %v65_v20, %v64_v19 }
  0x43   :  { %v160_v23 = vpack.c.bf16 %v112_v21, %v112_v21 }
  0x49   :  { %1802 = vmatmul.mubr.msk.bf16.gmra.mxu0 %vm200_vm2, %v126_v31  ;;  %1850 = vmatmul.mubr.msk.bf16.gmra.mxu1 %vm200_vm2, %v150_v32 }
  0x4a   :  { %1805 = vmatprep.mubr.msk.bf16.mxu0 %vm200_vm2, %v127_v33  ;;  %1853 = vmatprep.mubr.msk.bf16.mxu1 %vm200_vm2, %v151_v34 }
  0x51   :  { %1806 = vmatmul.mubr.msk.bf16.gmra.mxu0 %vm200_vm2, %v128_v43  ;;  %1854 = vmatmul.mubr.msk.bf16.gmra.mxu1 %vm200_vm2, %v152_v44 }
  0x52   :  { %1809 = vmatprep.mubr.msk.bf16.mxu0 %vm200_vm2, %v129_v45  ;;  %1857 = vmatprep.mubr.msk.bf16.mxu1 %vm200_vm2, %v153_v46 }
  0x59   :  { %1810 = vmatmul.mubr.msk.bf16.gmra.mxu0 %vm200_vm2, %v130_v55  ;;  %1858 = vmatmul.mubr.msk.bf16.gmra.mxu1 %vm200_vm2, %v154_v56 }
  0x5a   :  { %1813 = vmatprep.mubr.msk.bf16.mxu0 %vm200_vm2, %v131_v57  ;;  %1861 = vmatprep.mubr.msk.bf16.mxu1 %vm200_vm2, %v155_v58 }
  0x61   :  { %1814 = vmatmul.mubr.msk.bf16.gmra.mxu0 %vm200_vm2, %v132_v3  ;;  %1862 = vmatmul.mubr.msk.bf16.gmra.mxu1 %vm200_vm2, %v156_v4 }
  0x62   :  { %1817 = vmatprep.mubr.msk.bf16.mxu0 %vm200_vm2, %v133_v5  ;;  %1865 = vmatprep.mubr.msk.bf16.mxu1 %vm200_vm2, %v157_v6 }
  0x69   :  { %1818 = vmatmul.mubr.msk.bf16.gmra.mxu0 %vm200_vm2, %v134_v15  ;;  %1866 = vmatmul.mubr.msk.bf16.gmra.mxu1 %vm200_vm2, %v158_v16 }
  0x6a   :  { %1821 = vmatprep.mubr.msk.bf16.mxu0 %vm200_vm2, %v135_v17  ;;  %1869 = vmatprep.mubr.msk.bf16.mxu1 %vm200_vm2, %v159_v18 }
  0x71   :  { %1822 = vmatmul.mubr.msk.bf16.gmra.mxu0 %vm200_vm2, %v136_v22  ;;  %1870 = vmatmul.mubr.msk.bf16.gmra.mxu1 %vm200_vm2, %v160_v23 }
  0xd9   :  { %v2265_v24 = vpop.f32.mrf.mxu0  ;;  %v2267_v25 = vpop.f32.mrf.mxu1 }
  0xda   :  { %4016 = vst [vmem:[#allocation2_spill] sm:$0xff] %v2265_v24  ;;  %v772_v37 = vsel %vm768_vm3, %v2265_v24, 0.0 }
  0xdb   :  { %v2269_v26 = vpop.f32.mrf.mxu0  ;;  %v2271_v27 = vpop.f32.mrf.mxu1 }
  0xdc   :  { %4017 = vst [vmem:[#allocation3_spill] sm:$0xff] %v2269_v26  ;;  %v769_v32 = vsel %vm768_vm3, %v2269_v26, 0.0 }
  0xdd   :  { %v2273_v28 = vpop.f32.mrf.mxu0  ;;  %v2275_v29 = vpop.f32.mrf.mxu1 }
  0xde   :  { %4018 = vst [vmem:[#allocation4_spill] sm:$0xff] %v2273_v28  ;;  %v774_v41 = vsel %vm768_vm3, %v2273_v28, 0.0 }
  0xdf   :  { %v2277_v30 = vpop.f32.mrf.mxu0  ;;  %v2279_v31 = vpop.f32.mrf.mxu1 }
  0xe0   :  { %4019 = vst [vmem:[#allocation5_spill] sm:$0xff] %v2277_v30  ;;  %v770_v33 = vsel %vm768_vm3, %v2277_v30, 0.0 }
  0xe1   :  { %v771_v34 = vadd.f32 %v770_v33, %v769_v32  ;;  %v2285_v35 = vpop.f32.mrf.mxu0  ;;  %v2287_v36 = vpop.f32.mrf.mxu1 }
  0xe2   :  { %4020 = vst [vmem:[#allocation6_spill] sm:$0xff] %v2285_v35  ;;  %v780_v53 = vsel %vm768_vm3, %v2285_v35, 0.0 }
  0xe3   :  { %v773_v38 = vadd.f32 %v772_v37, %v771_v34  ;;  %v2291_v39 = vpop.f32.mrf.mxu0  ;;  %v2293_v40 = vpop.f32.mrf.mxu1 }
  0xe4   :  { %4021 = vst [vmem:[#allocation7_spill] sm:$0xff] %v2291_v39  ;;  %v776_v45 = vsel %vm768_vm3, %v2291_v39, 0.0 }
  0xe5   :  { %v775_v42 = vadd.f32 %v774_v41, %v773_v38  ;;  %v2297_v43 = vpop.f32.mrf.mxu0  ;;  %v2299_v44 = vpop.f32.mrf.mxu1 }
  0xe6   :  { %4022 = vst [vmem:[#allocation8_spill] sm:$0xff] %v2297_v43  ;;  %v782_v57 = vsel %vm768_vm3, %v2297_v43, 0.0 }
  0xe7   :  { %v777_v46 = vadd.f32 %v776_v45, %v775_v42  ;;  %v2303_v47 = vpop.f32.mrf.mxu0  ;;  %v2305_v48 = vpop.f32.mrf.mxu1 }
  0xe8   :  { %4023 = vst [vmem:[#allocation9_spill] sm:$0xff] %v2303_v47  ;;  %v778_v49 = vsel %vm768_vm3, %v2303_v47, 0.0 }
  0xe9   :  { %v779_v50 = vadd.f32 %v778_v49, %v777_v46  ;;  %v2309_v51 = vpop.f32.mrf.mxu0  ;;  %v2311_v52 = vpop.f32.mrf.mxu1 }
  0xea   :  { %4024 = vst [vmem:[#allocation10_spill] sm:$0xff] %v2309_v51  ;;  %v788_v5 = vsel %vm768_vm3, %v2309_v51, 0.0 }
  0xeb   :  { %v781_v54 = vadd.f32 %v780_v53, %v779_v50  ;;  %v2315_v55 = vpop.f32.mrf.mxu0  ;;  %v2317_v56 = vpop.f32.mrf.mxu1 }
  0xec   :  { %4025 = vst [vmem:[#allocation11_spill] sm:$0xff] %v2315_v55  ;;  %v784_v61 = vsel %vm768_vm3, %v2315_v55, 0.0 }
  0xed   :  { %v783_v58 = vadd.f32 %v782_v57, %v781_v54  ;;  %v2321_v59 = vpop.f32.mrf.mxu0  ;;  %v2323_v60 = vpop.f32.mrf.mxu1 }
  0xee   :  { %4026 = vst [vmem:[#allocation12_spill] sm:$0xff] %v2321_v59  ;;  %v790_v9 = vsel %vm768_vm3, %v2321_v59, 0.0 }
  0xef   :  { %v785_v62 = vadd.f32 %v784_v61, %v783_v58  ;;  %v2327_v63 = vpop.f32.mrf.mxu0  ;;  %v2329_v0 = vpop.f32.mrf.mxu1 }
  0xf0   :  { %4027 = vst [vmem:[#allocation13_spill] sm:$0xff] %v2327_v63  ;;  %v786_v1 = vsel %vm768_vm3, %v2327_v63, 0.0 }
  0xf1   :  { %v787_v2 = vadd.f32 %v786_v1, %v785_v62  ;;  %v2333_v3 = vpop.f32.mrf.mxu0  ;;  %v2335_v4 = vpop.f32.mrf.mxu1 }
  0xf2   :  { %4028 = vst [vmem:[#allocation14_spill] sm:$0xff] %v2333_v3  ;;  %v796_v21 = vsel %vm768_vm3, %v2333_v3, 0.0 }
  0xf3   :  { %v789_v6 = vadd.f32 %v788_v5, %v787_v2  ;;  %v2339_v7 = vpop.f32.mrf.mxu0  ;;  %v2341_v8 = vpop.f32.mrf.mxu1 }
  0xf4   :  { %4029 = vst [vmem:[#allocation15_spill] sm:$0xff] %v2339_v7  ;;  %v792_v13 = vsel %vm768_vm3, %v2339_v7, 0.0 }
  0xf5   :  { %v791_v10 = vadd.f32 %v790_v9, %v789_v6  ;;  %v2345_v11 = vpop.f32.mrf.mxu0  ;;  %v2347_v12 = vpop.f32.mrf.mxu1 }
  0xf6   :  { %4030 = vst [vmem:[#allocation16_spill] sm:$0xff] %v2345_v11  ;;  %v798_v33 = vsel %vm768_vm3, %v2345_v11, 0.0 }
  0xf7   :  { %v793_v14 = vadd.f32 %v792_v13, %v791_v10  ;;  %v2351_v15 = vpop.f32.mrf.mxu0  ;;  %v2353_v16 = vpop.f32.mrf.mxu1 }
  0xf8   :  { %4031 = vst [vmem:[#allocation17_spill] sm:$0xff] %v2351_v15  ;;  %v794_v17 = vsel %vm768_vm3, %v2351_v15, 0.0 }
  0xf9   :  { %v795_v18 = vadd.f32 %v794_v17, %v793_v14  ;;  %v2357_v19 = vpop.f32.mrf.mxu0  ;;  %v2359_v20 = vpop.f32.mrf.mxu1 }
  0xfa   :  { %4032 = vst [vmem:[#allocation18_spill] sm:$0xff] %v2357_v19  ;;  %v804_v57 = vsel %vm768_vm3, %v2357_v19, 0.0 }
  0xfb   :  { %v797_v22 = vadd.f32 %v796_v21, %v795_v18  ;;  %v2363_v23 = vpop.f32.mrf.mxu0  ;;  %v2365_v32 = vpop.f32.mrf.mxu1 }
  0xfc   :  { %4033 = vst [vmem:[#allocation19_spill] sm:$0xff] %v2363_v23  ;;  %v800_v41 = vsel %vm768_vm3, %v2363_v23, 0.0 }
  0xfd   :  { %v799_v34 = vadd.f32 %v798_v33, %v797_v22  ;;  %v2369_v37 = vpop.f32.mrf.mxu0  ;;  %v2371_v38 = vpop.f32.mrf.mxu1 }
  0xfe   :  { %4034 = vst [vmem:[#allocation20_spill] sm:$0xff] %v2369_v37  ;;  %v806_v1 = vsel %vm768_vm3, %v2369_v37, 0.0 }
  0xff   :  { %v801_v42 = vadd.f32 %v800_v41, %v799_v34  ;;  %v2375_v45 = vpop.f32.mrf.mxu0  ;;  %v2377_v46 = vpop.f32.mrf.mxu1 }
 0x100   :  { %4035 = vst [vmem:[#allocation21_spill] sm:$0xff] %v2375_v45  ;;  %v802_v49 = vsel %vm768_vm3, %v2375_v45, 0.0 }
 0x101   :  { %v803_v50 = vadd.f32 %v802_v49, %v801_v42  ;;  %v2381_v53 = vpop.f32.mrf.mxu0  ;;  %v2383_v54 = vpop.f32.mrf.mxu1 }
 0x102   :  { %4036 = vst [vmem:[#allocation22_spill] sm:$0xff] %v2381_v53  ;;  %v812_v33 = vsel %vm768_vm3, %v2381_v53, 0.0 }
 0x103   :  { %v805_v58 = vadd.f32 %v804_v57, %v803_v50  ;;  %v2387_v61 = vpop.f32.mrf.mxu0  ;;  %v2389_v62 = vpop.f32.mrf.mxu1 }
 0x104   :  { %4037 = vst [vmem:[#allocation23_spill] sm:$0xff] %v2387_v61  ;;  %v808_v9 = vsel %vm768_vm3, %v2387_v61, 0.0 }
 0x105   :  { %v807_v2 = vadd.f32 %v806_v1, %v805_v58  ;;  %v2393_v5 = vpop.f32.mrf.mxu0  ;;  %v2395_v6 = vpop.f32.mrf.mxu1 }
 0x106   :  { %4038 = vst [vmem:[#allocation24_spill] sm:$0xff] %v2393_v5  ;;  %v814_v49 = vsel %vm768_vm3, %v2393_v5, 0.0 }
 0x107   :  { %v809_v10 = vadd.f32 %v808_v9, %v807_v2  ;;  %v2399_v13 = vpop.f32.mrf.mxu0  ;;  %v2401_v14 = vpop.f32.mrf.mxu1 }
 0x108   :  { %4039 = vst [vmem:[#allocation25_spill] sm:$0xff] %v2399_v13  ;;  %v810_v17 = vsel %vm768_vm3, %v2399_v13, 0.0 }
 0x109   :  { %v811_v18 = vadd.f32 %v810_v17, %v809_v10  ;;  %v2405_v21 = vpop.f32.mrf.mxu0  ;;  %v2407_v22 = vpop.f32.mrf.mxu1 }
 0x10a   :  { %4040 = vst [vmem:[#allocation26_spill] sm:$0xff] %v2405_v21 }
 0x10b   :  { %v813_v34 = vadd.f32 %v812_v33, %v811_v18  ;;  %v2411_v41 = vpop.f32.mrf.mxu0  ;;  %v2413_v42 = vpop.f32.mrf.mxu1 }
 0x10c   :  { %4041 = vst [vmem:[#allocation27_spill] sm:$0xff] %v2411_v41  ;;  %v816_v1 = vsel %vm768_vm3, %v2411_v41, 0.0 }
 0x10d   :  { %v815_v50 = vadd.f32 %v814_v49, %v813_v34  ;;  %v2417_v57 = vpop.f32.mrf.mxu0  ;;  %v2419_v58 = vpop.f32.mrf.mxu1  ;;  %v820_v34 = vsel %vm768_vm3, %v2405_v21, 0.0 }
 0x10e   :  { %4042 = vst [vmem:[#allocation28_spill] sm:$0xff] %v2417_v57 }
 0x10f   :  { %v817_v2 = vadd.f32 %v816_v1, %v815_v50  ;;  %v2423_v9 = vpop.f32.mrf.mxu0  ;;  %v2425_v10 = vpop.f32.mrf.mxu1  ;;  %v822_v50 = vsel %vm768_vm3, %v2417_v57, 0.0 }
 0x110   :  { %4043 = vst [vmem:[#allocation29_spill] sm:$0xff] %v2423_v9  ;;  %v818_v17 = vsel %vm768_vm3, %v2423_v9, 0.0 }
 0x111   :  { %v819_v18 = vadd.f32 %v818_v17, %v817_v2  ;;  %v2429_v33 = vpop.f32.mrf.mxu0  ;;  %v2431_v5 = vpop.f32.mrf.mxu1 }
 0x112   :  { %4044 = vst [vmem:[#allocation30_spill] sm:$0xff] %v2429_v33 }
 0x113   :  { %v821_v49 = vadd.f32 %v820_v34, %v819_v18  ;;  %v2435_v53 = vpop.f32.mrf.mxu0  ;;  %v2437_v41 = vpop.f32.mrf.mxu1 }
 0x114   :  { %4045 = vst [vmem:[#allocation31_spill] sm:$0xff] %v2435_v53  ;;  %v824_v2 = vsel %vm768_vm3, %v2435_v53, 0.0 }
 0x115   :  { %v823_v1 = vadd.f32 %v822_v50, %v821_v49  ;;  %v2441_v13 = vpop.f32.mrf.mxu0  ;;  %v2443_v9 = vpop.f32.mrf.mxu1  ;;  %v828_v49 = vsel %vm768_vm3, %v2429_v33, 0.0 }
 0x116   :  { %4046 = vst [vmem:[#allocation32_spill] sm:$0xff] %v2441_v13 }
 0x117   :  { %v825_v17 = vadd.f32 %v824_v2, %v823_v1  ;;  %v2447_v61 = vpop.f32.mrf.mxu0  ;;  %v2449_v21 = vpop.f32.mrf.mxu1  ;;  %v830_v1 = vsel %vm768_vm3, %v2441_v13, 0.0 }
 0x118   :  { %4047 = vst [vmem:[#allocation33_spill] sm:$0xff] %v2447_v61  ;;  %v826_v18 = vsel %vm768_vm3, %v2447_v61, 0.0 }
 0x119   :  { %v827_v34 = vadd.f32 %v826_v18, %v825_v17  ;;  %v2453_v37 = vpop.f32.mrf.mxu0  ;;  %v2455_v57 = vpop.f32.mrf.mxu1 }
 0x11a   :  { %4048 = vst [vmem:[#allocation34_spill] sm:$0xff] %v2453_v37 }
 0x11b   :  { %v829_v50 = vadd.f32 %v828_v49, %v827_v34  ;;  %v2459_v19 = vpop.f32.mrf.mxu0  ;;  %v2461_v53 = vpop.f32.mrf.mxu1 }
 0x11c   :  { %4049 = vst [vmem:[#allocation35_spill] sm:$0xff] %v2459_v19  ;;  %v832_v17 = vsel %vm768_vm3, %v2459_v19, 0.0 }
 0x11d   :  { %v831_v2 = vadd.f32 %v830_v1, %v829_v50  ;;  %v2465_v45 = vpop.f32.mrf.mxu0  ;;  %v2467_v61 = vpop.f32.mrf.mxu1  ;;  %v836_v50 = vsel %vm768_vm3, %v2453_v37, 0.0 }
 0x11e   :  { %4050 = vst [vmem:[#allocation36_spill] sm:$0xff] %v2465_v45  ;;  %4051 = vst [vmem:[#allocation37_spill] sm:$0xff] %v2467_v61 }
 0x11f   :  { %v833_v18 = vadd.f32 %v832_v17, %v831_v2  ;;  %v2471_v23 = vpop.f32.mrf.mxu0  ;;  %v2473_v33 = vpop.f32.mrf.mxu1  ;;  %v838_v2 = vsel %vm768_vm3, %v2465_v45, 0.0 }
 0x120   :  { %4052 = vst [vmem:[#allocation38_spill] sm:$0xff] %v2471_v23  ;;  %v834_v34 = vsel %vm768_vm3, %v2471_v23, 0.0 }
 0x121   :  { %v835_v49 = vadd.f32 %v834_v34, %v833_v18  ;;  %v2477_v11 = vpop.f32.mrf.mxu0  ;;  %v2479_v13 = vpop.f32.mrf.mxu1 }
 0x122   :  { %4053 = vst [vmem:[#allocation39_spill] sm:$0xff] %v2477_v11  ;;  %4054 = vst [vmem:[#allocation40_spill] sm:$0xff] %v2479_v13 }
 0x123   :  { %v837_v1 = vadd.f32 %v836_v50, %v835_v49  ;;  %v2483_v3 = vpop.f32.mrf.mxu0  ;;  %v2485_v19 = vpop.f32.mrf.mxu1 }
 0x124   :  { %4055 = vst [vmem:[#allocation41_spill] sm:$0xff] %v2483_v3  ;;  %4056 = vst [vmem:[#allocation42_spill] sm:$0xff] %v2485_v19  ;;  %v840_v18 = vsel %vm768_vm3, %v2483_v3, 0.0 }
 0x125   :  { %v839_v17 = vadd.f32 %v838_v2, %v837_v1  ;;  %v2489_v15 = vpop.f32.mrf.mxu0  ;;  %v2491_v23 = vpop.f32.mrf.mxu1  ;;  %v844_v1 = vsel %vm768_vm3, %v2477_v11, 0.0 }
 0x126   :  { %4057 = vst [vmem:[#allocation43_spill] sm:$0xff] %v2489_v15  ;;  %4058 = vst [vmem:[#allocation44_spill] sm:$0xff] %v2491_v23 }
 0x127   :  { %v841_v34 = vadd.f32 %v840_v18, %v839_v17  ;;  %v2495_v7 = vpop.f32.mrf.mxu0  ;;  %v2497_v37 = vpop.f32.mrf.mxu1  ;;  %v846_v17 = vsel %vm768_vm3, %v2489_v15, 0.0 }
 0x128   :  { %4059 = vst [vmem:[#allocation45_spill] sm:$0xff] %v2495_v7  ;;  %4060 = vst [vmem:[#allocation46_spill] sm:$0xff] %v2497_v37  ;;  %v842_v49 = vsel %vm768_vm3, %v2495_v7, 0.0 }
 0x129   :  { %v843_v50 = vadd.f32 %v842_v49, %v841_v34  ;;  %v2501_v59 = vpop.f32.mrf.mxu0  ;;  %v2503_v45 = vpop.f32.mrf.mxu1 }
 0x12a   :  { %4061 = vst [vmem:[#allocation47_spill] sm:$0xff] %v2501_v59  ;;  %4062 = vst [vmem:[#allocation48_spill] sm:$0xff] %v2503_v45 }
 0x12b   :  { %v845_v2 = vadd.f32 %v844_v1, %v843_v50  ;;  %v2507_v51 = vpop.f32.mrf.mxu0  ;;  %v2509_v3 = vpop.f32.mrf.mxu1 }
 0x12c   :  { %4063 = vst [vmem:[#allocation49_spill] sm:$0xff] %v2507_v51  ;;  %4064 = vst [vmem:[#allocation50_spill] sm:$0xff] %v2509_v3  ;;  %v848_v34 = vsel %vm768_vm3, %v2507_v51, 0.0 }
 0x12d   :  { %v847_v18 = vadd.f32 %v846_v17, %v845_v2  ;;  %v2513_v63 = vpop.f32.mrf.mxu0  ;;  %v2515_v7 = vpop.f32.mrf.mxu1  ;;  %v852_v2 = vsel %vm768_vm3, %v2501_v59, 0.0 }
 0x12e   :  { %4065 = vst [vmem:[#allocation51_spill] sm:$0xff] %v2513_v63  ;;  %4066 = vst [vmem:[#allocation52_spill] sm:$0xff] %v2515_v7 }
 0x12f   :  { %v849_v49 = vadd.f32 %v848_v34, %v847_v18  ;;  %v2519_v55 = vpop.f32.mrf.mxu0  ;;  %v2521_v11 = vpop.f32.mrf.mxu1  ;;  %v854_v18 = vsel %vm768_vm3, %v2513_v63, 0.0 }
 0x130   :  { %4067 = vst [vmem:[#allocation53_spill] sm:$0xff] %v2519_v55  ;;  %4068 = vst [vmem:[#allocation54_spill] sm:$0xff] %v2521_v11  ;;  %v850_v50 = vsel %vm768_vm3, %v2519_v55, 0.0 }
 0x131   :  { %v851_v1 = vadd.f32 %v850_v50, %v849_v49  ;;  %v2525_v43 = vpop.f32.mrf.mxu0  ;;  %v2527_v15 = vpop.f32.mrf.mxu1 }
 0x132   :  { %4069 = vst [vmem:[#allocation55_spill] sm:$0xff] %v2527_v15  ;;  %v860_v59 = vsel %vm768_vm3, %v2525_v43, 0.0 }
 0x133   :  { %v853_v17 = vadd.f32 %v852_v2, %v851_v1  ;;  %v2531_v35 = vpop.f32.mrf.mxu0  ;;  %v2533_v51 = vpop.f32.mrf.mxu1 }
 0x134   :  { %4070 = vst [vmem:[#allocation56_spill] sm:$0xff] %v2533_v51  ;;  %v856_v49 = vsel %vm768_vm3, %v2531_v35, 0.0 }
 0x135   :  { %v855_v34 = vadd.f32 %v854_v18, %v853_v17  ;;  %v2537_v47 = vpop.f32.mrf.mxu0  ;;  %v1872_v55 = vpop.f32.mrf.mxu1 }
 0x136   :  { %v862_v17 = vsel %vm768_vm3, %v2537_v47, 0.0  ;;  %v864_v55 = vsel %vm768_vm3, %v2271_v27, 0.0 }
 0x137   :  { %v857_v50 = vadd.f32 %v856_v49, %v855_v34  ;;  %v2541_v39 = vpop.f32.mrf.mxu0  ;;  %v866_v34 = vsel %vm768_vm3, %v2279_v31, 0.0 }
 0x138   :  { %4071 = vst [vmem:[#allocation57_spill] sm:$0xff] %v2541_v39  ;;  %v858_v1 = vsel %vm768_vm3, %v2541_v39, 0.0  ;;  %v868_v39 = vsel %vm768_vm3, %v2267_v25, 0.0 }
 0x139   :  { %v859_v2 = vadd.f32 %v858_v1, %v857_v50  ;;  %v870_v1 = vsel %vm768_vm3, %v2275_v29, 0.0 }
 0x13b   :  { %v861_v28 = vadd.f32 %v860_v59, %v859_v2  ;;  %v872_v2 = vsel %vm768_vm3, %v2293_v40, 0.0 }
 0x13d   :  { %v863_v18 = vadd.f32 %v862_v17, %v861_v28  ;;  %v874_v17 = vsel %vm768_vm3, %v2305_v48, 0.0 }
 0x13f   :  { %v865_v63 = vadd.f32 %v864_v55, %v863_v18  ;;  %v876_v55 = vsel %vm768_vm3, %v2287_v36, 0.0 }
 0x141   :  { %v867_v49 = vadd.f32 %v866_v34, %v865_v63  ;;  %v878_v34 = vsel %vm768_vm3, %v2299_v44, 0.0 }
 0x143   :  { %v869_v50 = vadd.f32 %v868_v39, %v867_v49  ;;  %v880_v49 = vsel %vm768_vm3, %v2317_v56, 0.0 }
 0x145   :  { %v871_v59 = vadd.f32 %v870_v1, %v869_v50  ;;  %v882_v1 = vsel %vm768_vm3, %v2329_v0, 0.0 }
 0x147   :  { %v873_v28 = vadd.f32 %v872_v2, %v871_v59  ;;  %v884_v2 = vsel %vm768_vm3, %v2311_v52, 0.0 }
 0x149   :  { %v875_v18 = vadd.f32 %v874_v17, %v873_v28  ;;  %v886_v17 = vsel %vm768_vm3, %v2323_v60, 0.0 }
 0x14b   :  { %v877_v63 = vadd.f32 %v876_v55, %v875_v18  ;;  %v888_v55 = vsel %vm768_vm3, %v2341_v8, 0.0 }
 0x14d   :  { %v879_v39 = vadd.f32 %v878_v34, %v877_v63  ;;  %v890_v34 = vsel %vm768_vm3, %v2353_v16, 0.0 }
 0x14f   :  { %v881_v50 = vadd.f32 %v880_v49, %v879_v39  ;;  %v892_v49 = vsel %vm768_vm3, %v2335_v4, 0.0 }
 0x151   :  { %v883_v59 = vadd.f32 %v882_v1, %v881_v50  ;;  %v894_v1 = vsel %vm768_vm3, %v2347_v12, 0.0 }
 0x153   :  { %v885_v28 = vadd.f32 %v884_v2, %v883_v59  ;;  %v896_v2 = vsel %vm768_vm3, %v2365_v32, 0.0 }
 0x155   :  { %v887_v18 = vadd.f32 %v886_v17, %v885_v28  ;;  %v898_v17 = vsel %vm768_vm3, %v2377_v46, 0.0 }
 0x157   :  { %v889_v63 = vadd.f32 %v888_v55, %v887_v18  ;;  %v900_v55 = vsel %vm768_vm3, %v2359_v20, 0.0 }
 0x159   :  { %v891_v39 = vadd.f32 %v890_v34, %v889_v63  ;;  %v902_v34 = vsel %vm768_vm3, %v2371_v38, 0.0 }
 0x15b   :  { %v893_v50 = vadd.f32 %v892_v49, %v891_v39  ;;  %v904_v49 = vsel %vm768_vm3, %v2389_v62, 0.0 }
 0x15d   :  { %v895_v59 = vadd.f32 %v894_v1, %v893_v50  ;;  %v906_v1 = vsel %vm768_vm3, %v2401_v14, 0.0 }
 0x15f   :  { %v897_v28 = vadd.f32 %v896_v2, %v895_v59  ;;  %v908_v2 = vsel %vm768_vm3, %v2383_v54, 0.0 }
 0x161   :  { %v899_v18 = vadd.f32 %v898_v17, %v897_v28  ;;  %v910_v17 = vsel %vm768_vm3, %v2395_v6, 0.0 }
 0x163   :  { %v901_v63 = vadd.f32 %v900_v55, %v899_v18  ;;  %v912_v55 = vsel %vm768_vm3, %v2413_v42, 0.0 }
 0x165   :  { %v903_v39 = vadd.f32 %v902_v34, %v901_v63  ;;  %v914_v34 = vsel %vm768_vm3, %v2425_v10, 0.0 }
 0x167   :  { %v905_v50 = vadd.f32 %v904_v49, %v903_v39  ;;  %v916_v49 = vsel %vm768_vm3, %v2407_v22, 0.0 }
 0x169   :  { %v907_v59 = vadd.f32 %v906_v1, %v905_v50  ;;  %v918_v1 = vsel %vm768_vm3, %v2419_v58, 0.0 }
 0x16b   :  { %v909_v28 = vadd.f32 %v908_v2, %v907_v59  ;;  %v920_v2 = vsel %vm768_vm3, %v2437_v41, 0.0 }
 0x16d   :  { %v911_v18 = vadd.f32 %v910_v17, %v909_v28  ;;  %v922_v17 = vsel %vm768_vm3, %v2449_v21, 0.0 }
 0x16f   :  { %v913_v63 = vadd.f32 %v912_v55, %v911_v18  ;;  %v924_v55 = vsel %vm768_vm3, %v2431_v5, 0.0 }
 0x171   :  { %v915_v39 = vadd.f32 %v914_v34, %v913_v63  ;;  %v926_v34 = vsel %vm768_vm3, %v2443_v9, 0.0 }
 0x173   :  { %v917_v50 = vadd.f32 %v916_v49, %v915_v39  ;;  %v928_v49 = vsel %vm768_vm3, %v2461_v53, 0.0 }
 0x175   :  { %v919_v59 = vadd.f32 %v918_v1, %v917_v50  ;;  %v930_v1 = vsel %vm768_vm3, %v2473_v33, 0.0 }
 0x177   :  { %v921_v28 = vadd.f32 %v920_v2, %v919_v59  ;;  %v932_v2 = vsel %vm768_vm3, %v2455_v57, 0.0 }
 0x179   :  { %v923_v18 = vadd.f32 %v922_v17, %v921_v28  ;;  %v934_v17 = vsel %vm768_vm3, %v2467_v61, 0.0 }
 0x17b   :  { %v925_v63 = vadd.f32 %v924_v55, %v923_v18  ;;  %v936_v55 = vsel %vm768_vm3, %v2485_v19, 0.0 }
 0x17d   :  { %v927_v39 = vadd.f32 %v926_v34, %v925_v63  ;;  %v938_v34 = vsel %vm768_vm3, %v2497_v37, 0.0 }
 0x17f   :  { %v929_v50 = vadd.f32 %v928_v49, %v927_v39  ;;  %v940_v49 = vsel %vm768_vm3, %v2479_v13, 0.0 }
 0x181   :  { %v931_v59 = vadd.f32 %v930_v1, %v929_v50  ;;  %v942_v1 = vsel %vm768_vm3, %v2491_v23, 0.0 }
 0x183   :  { %v933_v28 = vadd.f32 %v932_v2, %v931_v59  ;;  %v944_v2 = vsel %vm768_vm3, %v2509_v3, 0.0 }
 0x185   :  { %v935_v18 = vadd.f32 %v934_v17, %v933_v28  ;;  %v946_v17 = vsel %vm768_vm3, %v2521_v11, 0.0 }
 0x187   :  { %v937_v63 = vadd.f32 %v936_v55, %v935_v18  ;;  %v948_v55 = vsel %vm768_vm3, %v2503_v45, 0.0 }
 0x189   :  { %v939_v39 = vadd.f32 %v938_v34, %v937_v63  ;;  %v950_v34 = vsel %vm768_vm3, %v2515_v7, 0.0 }
 0x18b   :  { %v941_v50 = vadd.f32 %v940_v49, %v939_v39  ;;  %v952_v49 = vsel %vm768_vm3, %v2533_v51, 0.0 }
 0x18d   :  { %v943_v59 = vadd.f32 %v942_v1, %v941_v50  ;;  %v2639_v1 = vpop.f32.mrf.mxu1 }
 0x18e   :  { %4072 = vst [vmem:[#allocation58_spill] sm:$0xff] %v2639_v1 }
 0x18f   :  { %v945_v28 = vadd.f32 %v944_v2, %v943_v59  ;;  %v954_v59 = vsel %vm768_vm3, %v2639_v1, 0.0 }
 0x191   :  { %v947_v18 = vadd.f32 %v946_v17, %v945_v28  ;;  %v957_v28 = vsel %vm956_vm4, %v2527_v15, 0.0 }
 0x193   :  { %v949_v63 = vadd.f32 %v948_v55, %v947_v18 }
 0x195   :  { %v951_v39 = vadd.f32 %v950_v34, %v949_v63 }
 0x197   :  { %v953_v50 = vadd.f32 %v952_v49, %v951_v39 }
 0x199   :  { %v955_v2 = vadd.f32 %v954_v59, %v953_v50  ;;  %v4073_v59 = vld [vmem:[#allocation4_spill] sm:$0xff] }
 0x19b   :  { %v958_v17 = vadd.f32 %v957_v28, %v955_v2 }
 0x19d   :  { %v959_v18 = vrot.slane %v958_v17, 4 }
 0x19f   :  { %v960_v55 = vadd.f32 %v959_v18, %v958_v17 }
 0x1a1   :  { %v961_v45 = vrot.slane %v960_v55, 2 }
 0x1a3   :  { %v962_v7 = vadd.f32 %v961_v45, %v960_v55  ;;  %v4074_v45 = vld [vmem:[#allocation7_spill] sm:$0xff]  ;;  %v4075_v55 = vld [vmem:[#allocation9_spill] sm:$0xff] }
 0x1a5   :  { %v963_v63 = vrot.slane %v962_v7, 1 }
 0x1a7   :  { %v964_v34 = vadd.f32 %v963_v63, %v962_v7 }
 0x1a9   :  { %v2645_v11 = vmul.f32 0.0013262599, %v964_v34 }
 0x1ab   :  { %v967_v39 = vsub.f32 %v2269_v26, %v2645_v11  ;;  %v968_v49 = vsub.f32 %v2277_v30, %v2645_v11  ;;  %v969_v50 = vsub.f32 %v2265_v24, %v2645_v11  ;;  %v970_v2 = vsub.f32 %v4073_v59, %v2645_v11  ;;  %v4076_v24 = vld [vmem:[#allocation6_spill] sm:$0xff]  ;;  %v4077_v59 = vld [vmem:[#allocation8_spill] sm:$0xff] }
 0x1ac   :  { %v971_v18 = vsub.f32 %v4074_v45, %v2645_v11  ;;  %v972_v63 = vsub.f32 %v4075_v55, %v2645_v11  ;;  %v973_v1 = vsub.f32 %v4076_v24, %v2645_v11  ;;  %v974_v45 = vsub.f32 %v4077_v59, %v2645_v11 }
 0x1ad   :  { %v1062_v28 = vmul.f32 %v967_v39, %v967_v39  ;;  %v1063_v17 = vmul.f32 %v968_v49, %v968_v49  ;;  %v1064_v7 = vmul.f32 %v969_v50, %v969_v50  ;;  %v1065_v34 = vmul.f32 %v970_v2, %v970_v2  ;;  %v4078_v2 = vld [vmem:[#allocation11_spill] sm:$0xff] }
 0x1ae   :  { %v1066_v51 = vmul.f32 %v971_v18, %v971_v18  ;;  %v1067_v50 = vmul.f32 %v972_v63, %v972_v63  ;;  %v1068_v23 = vmul.f32 %v973_v1, %v973_v1  ;;  %v1069_v24 = vmul.f32 %v974_v45, %v974_v45 }
 0x1af   :  { %v1157_v26 = vsel %vm768_vm3, %v1062_v28, 0.0  ;;  %v1158_v30 = vsel %vm768_vm3, %v1063_v17, 0.0  ;;  %v1160_v39 = vsel %vm768_vm3, %v1064_v7, 0.0  ;;  %v1162_v3 = vsel %vm768_vm3, %v1065_v34, 0.0  ;;  %v4079_v17 = vld [vmem:[#allocation13_spill] sm:$0xff] }
 0x1b0   :  { %v1159_v15 = vadd.f32 %v1158_v30, %v1157_v26  ;;  %v975_v28 = vsub.f32 %v4078_v2, %v2645_v11  ;;  %v1164_v26 = vsel %vm768_vm3, %v1066_v51, 0.0  ;;  %v976_v18 = vsub.f32 %v4079_v17, %v2645_v11 }
 0x1b1   :  { %v1170_v51 = vsel %vm768_vm3, %v1069_v24, 0.0 }
 0x1b2   :  { %v1161_v49 = vadd.f32 %v1160_v39, %v1159_v15  ;;  %v1166_v15 = vsel %vm768_vm3, %v1067_v50, 0.0  ;;  %v4080_v39 = vld [vmem:[#allocation10_spill] sm:$0xff]  ;;  %v1070_v59 = vmul.f32 %v975_v28, %v975_v28  ;;  %v1071_v2 = vmul.f32 %v976_v18, %v976_v18 }
 0x1b3   :  { %v977_v63 = vsub.f32 %v4080_v39, %v2645_v11 }
 0x1b4   :  { %v1163_v55 = vadd.f32 %v1162_v3, %v1161_v49  ;;  %v1168_v3 = vsel %vm768_vm3, %v1068_v23, 0.0  ;;  %v4081_v49 = vld [vmem:[#allocation12_spill] sm:$0xff]  ;;  %v1172_v50 = vsel %vm768_vm3, %v1070_v59, 0.0  ;;  %v1174_v23 = vsel %vm768_vm3, %v1071_v2, 0.0 }
 0x1b5   :  { %v978_v1 = vsub.f32 %v4081_v49, %v2645_v11  ;;  %v1072_v17 = vmul.f32 %v977_v63, %v977_v63 }
 0x1b6   :  { %v1165_v30 = vadd.f32 %v1164_v26, %v1163_v55  ;;  %v4082_v26 = vld [vmem:[#allocation15_spill] sm:$0xff] }
 0x1b7   :  { %v979_v45 = vsub.f32 %v4082_v26, %v2645_v11  ;;  %v1073_v39 = vmul.f32 %v978_v1, %v978_v1  ;;  %v1176_v24 = vsel %vm768_vm3, %v1072_v17, 0.0 }
 0x1b8   :  { %v1167_v7 = vadd.f32 %v1166_v15, %v1165_v30  ;;  %v4083_v15 = vld [vmem:[#allocation17_spill] sm:$0xff] }
 0x1b9   :  { %v980_v28 = vsub.f32 %v4083_v15, %v2645_v11  ;;  %v1074_v49 = vmul.f32 %v979_v45, %v979_v45  ;;  %v1178_v59 = vsel %vm768_vm3, %v1073_v39, 0.0 }
 0x1ba   :  { %v1169_v34 = vadd.f32 %v1168_v3, %v1167_v7  ;;  %v4084_v3 = vld [vmem:[#allocation14_spill] sm:$0xff] }
 0x1bb   :  { %v981_v18 = vsub.f32 %v4084_v3, %v2645_v11  ;;  %v1075_v26 = vmul.f32 %v980_v28, %v980_v28  ;;  %v1180_v2 = vsel %vm768_vm3, %v1074_v49, 0.0 }
 0x1bc   :  { %v1171_v55 = vadd.f32 %v1170_v51, %v1169_v34  ;;  %v4085_v51 = vld [vmem:[#allocation16_spill] sm:$0xff] }
 0x1bd   :  { %v982_v63 = vsub.f32 %v4085_v51, %v2645_v11  ;;  %v1076_v15 = vmul.f32 %v981_v18, %v981_v18  ;;  %v1182_v17 = vsel %vm768_vm3, %v1075_v26, 0.0 }
 0x1be   :  { %v1173_v30 = vadd.f32 %v1172_v50, %v1171_v55  ;;  %v4086_v50 = vld [vmem:[#allocation19_spill] sm:$0xff] }
 0x1bf   :  { %v983_v1 = vsub.f32 %v4086_v50, %v2645_v11  ;;  %v1077_v3 = vmul.f32 %v982_v63, %v982_v63  ;;  %v1184_v39 = vsel %vm768_vm3, %v1076_v15, 0.0 }
 0x1c0   :  { %v1175_v7 = vadd.f32 %v1174_v23, %v1173_v30  ;;  %v4087_v23 = vld [vmem:[#allocation21_spill] sm:$0xff] }
 0x1c1   :  { %v984_v45 = vsub.f32 %v4087_v23, %v2645_v11  ;;  %v1078_v51 = vmul.f32 %v983_v1, %v983_v1  ;;  %v1186_v49 = vsel %vm768_vm3, %v1077_v3, 0.0 }
 0x1c2   :  { %v1177_v34 = vadd.f32 %v1176_v24, %v1175_v7  ;;  %v4088_v24 = vld [vmem:[#allocation18_spill] sm:$0xff] }
 0x1c3   :  { %v985_v28 = vsub.f32 %v4088_v24, %v2645_v11  ;;  %v1079_v50 = vmul.f32 %v984_v45, %v984_v45  ;;  %v1188_v26 = vsel %vm768_vm3, %v1078_v51, 0.0 }
 0x1c4   :  { %v1179_v55 = vadd.f32 %v1178_v59, %v1177_v34  ;;  %v4089_v59 = vld [vmem:[#allocation20_spill] sm:$0xff] }
 0x1c5   :  { %v986_v18 = vsub.f32 %v4089_v59, %v2645_v11  ;;  %v1080_v23 = vmul.f32 %v985_v28, %v985_v28  ;;  %v1190_v15 = vsel %vm768_vm3, %v1079_v50, 0.0 }
 0x1c6   :  { %v1181_v30 = vadd.f32 %v1180_v2, %v1179_v55  ;;  %v4090_v2 = vld [vmem:[#allocation23_spill] sm:$0xff] }
 0x1c7   :  { %v987_v63 = vsub.f32 %v4090_v2, %v2645_v11  ;;  %v1081_v24 = vmul.f32 %v986_v18, %v986_v18  ;;  %v1192_v3 = vsel %vm768_vm3, %v1080_v23, 0.0 }
 0x1c8   :  { %v1183_v7 = vadd.f32 %v1182_v17, %v1181_v30  ;;  %v4091_v17 = vld [vmem:[#allocation25_spill] sm:$0xff] }
 0x1c9   :  { %v988_v1 = vsub.f32 %v4091_v17, %v2645_v11  ;;  %v1082_v59 = vmul.f32 %v987_v63, %v987_v63  ;;  %v1194_v51 = vsel %vm768_vm3, %v1081_v24, 0.0 }
 0x1ca   :  { %v1185_v34 = vadd.f32 %v1184_v39, %v1183_v7  ;;  %v4092_v39 = vld [vmem:[#allocation22_spill] sm:$0xff] }
 0x1cb   :  { %v989_v45 = vsub.f32 %v4092_v39, %v2645_v11  ;;  %v1083_v2 = vmul.f32 %v988_v1, %v988_v1  ;;  %v1196_v50 = vsel %vm768_vm3, %v1082_v59, 0.0 }
 0x1cc   :  { %v1187_v55 = vadd.f32 %v1186_v49, %v1185_v34  ;;  %v4093_v49 = vld [vmem:[#allocation24_spill] sm:$0xff] }
 0x1cd   :  { %v990_v28 = vsub.f32 %v4093_v49, %v2645_v11  ;;  %v1084_v17 = vmul.f32 %v989_v45, %v989_v45  ;;  %v1198_v23 = vsel %vm768_vm3, %v1083_v2, 0.0 }
 0x1ce   :  { %v1189_v30 = vadd.f32 %v1188_v26, %v1187_v55  ;;  %v4094_v26 = vld [vmem:[#allocation27_spill] sm:$0xff] }
 0x1cf   :  { %v991_v18 = vsub.f32 %v4094_v26, %v2645_v11  ;;  %v1085_v39 = vmul.f32 %v990_v28, %v990_v28  ;;  %v1200_v24 = vsel %vm768_vm3, %v1084_v17, 0.0 }
 0x1d0   :  { %v1191_v7 = vadd.f32 %v1190_v15, %v1189_v30  ;;  %v4095_v15 = vld [vmem:[#allocation29_spill] sm:$0xff] }
 0x1d1   :  { %v992_v63 = vsub.f32 %v4095_v15, %v2645_v11  ;;  %v1086_v49 = vmul.f32 %v991_v18, %v991_v18  ;;  %v1202_v59 = vsel %vm768_vm3, %v1085_v39, 0.0 }
 0x1d2   :  { %v1193_v34 = vadd.f32 %v1192_v3, %v1191_v7  ;;  %v4096_v3 = vld [vmem:[#allocation26_spill] sm:$0xff] }
 0x1d3   :  { %v993_v1 = vsub.f32 %v4096_v3, %v2645_v11  ;;  %v1087_v26 = vmul.f32 %v992_v63, %v992_v63  ;;  %v1204_v2 = vsel %vm768_vm3, %v1086_v49, 0.0 }
 0x1d4   :  { %v1195_v55 = vadd.f32 %v1194_v51, %v1193_v34  ;;  %v4097_v51 = vld [vmem:[#allocation28_spill] sm:$0xff] }
 0x1d5   :  { %v994_v45 = vsub.f32 %v4097_v51, %v2645_v11  ;;  %v1088_v15 = vmul.f32 %v993_v1, %v993_v1  ;;  %v1206_v17 = vsel %vm768_vm3, %v1087_v26, 0.0 }
 0x1d6   :  { %v1197_v30 = vadd.f32 %v1196_v50, %v1195_v55  ;;  %v4098_v50 = vld [vmem:[#allocation31_spill] sm:$0xff] }
 0x1d7   :  { %v995_v28 = vsub.f32 %v4098_v50, %v2645_v11  ;;  %v1089_v3 = vmul.f32 %v994_v45, %v994_v45  ;;  %v1208_v39 = vsel %vm768_vm3, %v1088_v15, 0.0 }
 0x1d8   :  { %v1199_v7 = vadd.f32 %v1198_v23, %v1197_v30  ;;  %v4099_v23 = vld [vmem:[#allocation33_spill] sm:$0xff] }
 0x1d9   :  { %v996_v18 = vsub.f32 %v4099_v23, %v2645_v11  ;;  %v1090_v51 = vmul.f32 %v995_v28, %v995_v28  ;;  %v1210_v49 = vsel %vm768_vm3, %v1089_v3, 0.0 }
 0x1da   :  { %v1201_v34 = vadd.f32 %v1200_v24, %v1199_v7  ;;  %v4100_v24 = vld [vmem:[#allocation30_spill] sm:$0xff] }
 0x1db   :  { %v997_v63 = vsub.f32 %v4100_v24, %v2645_v11  ;;  %v1091_v50 = vmul.f32 %v996_v18, %v996_v18  ;;  %v1212_v26 = vsel %vm768_vm3, %v1090_v51, 0.0 }
 0x1dc   :  { %v1203_v55 = vadd.f32 %v1202_v59, %v1201_v34  ;;  %v4101_v59 = vld [vmem:[#allocation32_spill] sm:$0xff] }
 0x1dd   :  { %v998_v1 = vsub.f32 %v4101_v59, %v2645_v11  ;;  %v1092_v23 = vmul.f32 %v997_v63, %v997_v63  ;;  %v1214_v15 = vsel %vm768_vm3, %v1091_v50, 0.0 }
 0x1de   :  { %v1205_v30 = vadd.f32 %v1204_v2, %v1203_v55  ;;  %v4102_v2 = vld [vmem:[#allocation35_spill] sm:$0xff] }
 0x1df   :  { %v999_v45 = vsub.f32 %v4102_v2, %v2645_v11  ;;  %v1093_v24 = vmul.f32 %v998_v1, %v998_v1  ;;  %v1216_v3 = vsel %vm768_vm3, %v1092_v23, 0.0 }
 0x1e0   :  { %v1207_v7 = vadd.f32 %v1206_v17, %v1205_v30  ;;  %v4103_v17 = vld [vmem:[#allocation38_spill] sm:$0xff] }
 0x1e1   :  { %v1000_v28 = vsub.f32 %v4103_v17, %v2645_v11  ;;  %v1094_v59 = vmul.f32 %v999_v45, %v999_v45  ;;  %v1218_v51 = vsel %vm768_vm3, %v1093_v24, 0.0 }
 0x1e2   :  { %v1209_v34 = vadd.f32 %v1208_v39, %v1207_v7  ;;  %v4104_v39 = vld [vmem:[#allocation34_spill] sm:$0xff] }
 0x1e3   :  { %v1001_v18 = vsub.f32 %v4104_v39, %v2645_v11  ;;  %v1095_v2 = vmul.f32 %v1000_v28, %v1000_v28  ;;  %v1220_v50 = vsel %vm768_vm3, %v1094_v59, 0.0 }
 0x1e4   :  { %v1211_v55 = vadd.f32 %v1210_v49, %v1209_v34  ;;  %v4105_v49 = vld [vmem:[#allocation36_spill] sm:$0xff] }
 0x1e5   :  { %v1002_v63 = vsub.f32 %v4105_v49, %v2645_v11  ;;  %v1096_v17 = vmul.f32 %v1001_v18, %v1001_v18  ;;  %v1222_v23 = vsel %vm768_vm3, %v1095_v2, 0.0 }
 0x1e6   :  { %v1213_v30 = vadd.f32 %v1212_v26, %v1211_v55  ;;  %v4106_v26 = vld [vmem:[#allocation41_spill] sm:$0xff] }
 0x1e7   :  { %v1003_v1 = vsub.f32 %v4106_v26, %v2645_v11  ;;  %v1097_v39 = vmul.f32 %v1002_v63, %v1002_v63  ;;  %v1224_v24 = vsel %vm768_vm3, %v1096_v17, 0.0 }
 0x1e8   :  { %v1215_v7 = vadd.f32 %v1214_v15, %v1213_v30  ;;  %v4107_v15 = vld [vmem:[#allocation45_spill] sm:$0xff] }
 0x1e9   :  { %v1004_v45 = vsub.f32 %v4107_v15, %v2645_v11  ;;  %v1098_v49 = vmul.f32 %v1003_v1, %v1003_v1  ;;  %v1226_v59 = vsel %vm768_vm3, %v1097_v39, 0.0 }
 0x1ea   :  { %v1217_v34 = vadd.f32 %v1216_v3, %v1215_v7  ;;  %v4108_v3 = vld [vmem:[#allocation39_spill] sm:$0xff] }
 0x1eb   :  { %v1005_v28 = vsub.f32 %v4108_v3, %v2645_v11  ;;  %v1099_v26 = vmul.f32 %v1004_v45, %v1004_v45  ;;  %v1228_v2 = vsel %vm768_vm3, %v1098_v49, 0.0 }
 0x1ec   :  { %v1219_v55 = vadd.f32 %v1218_v51, %v1217_v34  ;;  %v4109_v51 = vld [vmem:[#allocation43_spill] sm:$0xff] }
 0x1ed   :  { %v1006_v18 = vsub.f32 %v4109_v51, %v2645_v11  ;;  %v1100_v15 = vmul.f32 %v1005_v28, %v1005_v28  ;;  %v1230_v17 = vsel %vm768_vm3, %v1099_v26, 0.0 }
 0x1ee   :  { %v1221_v30 = vadd.f32 %v1220_v50, %v1219_v55  ;;  %v4110_v50 = vld [vmem:[#allocation49_spill] sm:$0xff] }
 0x1ef   :  { %v1007_v63 = vsub.f32 %v4110_v50, %v2645_v11  ;;  %v1101_v3 = vmul.f32 %v1006_v18, %v1006_v18  ;;  %v1232_v39 = vsel %vm768_vm3, %v1100_v15, 0.0  ;;  %v1011_v18 = vsub.f32 %v2531_v35, %v2645_v11 }
 0x1f0   :  { %v1223_v7 = vadd.f32 %v1222_v23, %v1221_v30  ;;  %v4111_v23 = vld [vmem:[#allocation53_spill] sm:$0xff] }
 0x1f1   :  { %v1008_v1 = vsub.f32 %v4111_v23, %v2645_v11  ;;  %v1102_v51 = vmul.f32 %v1007_v63, %v1007_v63  ;;  %v1234_v49 = vsel %vm768_vm3, %v1101_v3, 0.0 }
 0x1f2   :  { %v1225_v34 = vadd.f32 %v1224_v24, %v1223_v7  ;;  %v4112_v24 = vld [vmem:[#allocation47_spill] sm:$0xff] }
 0x1f3   :  { %v1009_v45 = vsub.f32 %v4112_v24, %v2645_v11  ;;  %v1103_v50 = vmul.f32 %v1008_v1, %v1008_v1  ;;  %v1236_v26 = vsel %vm768_vm3, %v1102_v51, 0.0  ;;  %v1013_v1 = vsub.f32 %v2525_v43, %v2645_v11 }
 0x1f4   :  { %v1227_v55 = vadd.f32 %v1226_v59, %v1225_v34  ;;  %v4113_v59 = vld [vmem:[#allocation51_spill] sm:$0xff] }
 0x1f5   :  { %v1010_v28 = vsub.f32 %v4113_v59, %v2645_v11  ;;  %v1238_v15 = vsel %vm768_vm3, %v1103_v50, 0.0 }
 0x1f6   :  { %v1229_v30 = vadd.f32 %v1228_v2, %v1227_v55  ;;  %v1104_v2 = vmul.f32 %v1009_v45, %v1009_v45  ;;  %v1014_v45 = vsub.f32 %v2537_v47, %v2645_v11 }
 0x1f7   :  { %v1105_v24 = vmul.f32 %v1010_v28, %v1010_v28  ;;  %v1015_v28 = vsub.f32 %v2271_v27, %v2645_v11 }
 0x1f8   :  { %v1231_v7 = vadd.f32 %v1230_v17, %v1229_v30  ;;  %v4114_v17 = vld [vmem:[#allocation57_spill] sm:$0xff]  ;;  %v1240_v3 = vsel %vm768_vm3, %v1104_v2, 0.0 }
 0x1f9   :  { %v1012_v63 = vsub.f32 %v4114_v17, %v2645_v11  ;;  %v1242_v51 = vsel %vm768_vm3, %v1105_v24, 0.0 }
 0x1fa   :  { %v1233_v34 = vadd.f32 %v1232_v39, %v1231_v7  ;;  %v1106_v39 = vmul.f32 %v1011_v18, %v1011_v18  ;;  %v1016_v18 = vsub.f32 %v2279_v31, %v2645_v11 }
 0x1fc   :  { %v1235_v55 = vadd.f32 %v1234_v49, %v1233_v34  ;;  %v1107_v49 = vmul.f32 %v1012_v63, %v1012_v63  ;;  %v1244_v50 = vsel %vm768_vm3, %v1106_v39, 0.0  ;;  %v1017_v63 = vsub.f32 %v2267_v25, %v2645_v11 }
 0x1fe   :  { %v1237_v30 = vadd.f32 %v1236_v26, %v1235_v55  ;;  %v1108_v26 = vmul.f32 %v1013_v1, %v1013_v1  ;;  %v1246_v2 = vsel %vm768_vm3, %v1107_v49, 0.0  ;;  %v1018_v1 = vsub.f32 %v2275_v29, %v2645_v11 }
 0x200   :  { %v1239_v7 = vadd.f32 %v1238_v15, %v1237_v30  ;;  %v1109_v15 = vmul.f32 %v1014_v45, %v1014_v45  ;;  %v1248_v24 = vsel %vm768_vm3, %v1108_v26, 0.0  ;;  %v1019_v45 = vsub.f32 %v2293_v40, %v2645_v11 }
 0x202   :  { %v1241_v34 = vadd.f32 %v1240_v3, %v1239_v7  ;;  %v1110_v3 = vmul.f32 %v1015_v28, %v1015_v28  ;;  %v1250_v39 = vsel %vm768_vm3, %v1109_v15, 0.0  ;;  %v1020_v28 = vsub.f32 %v2305_v48, %v2645_v11 }
 0x204   :  { %v1243_v55 = vadd.f32 %v1242_v51, %v1241_v34  ;;  %v1111_v51 = vmul.f32 %v1016_v18, %v1016_v18  ;;  %v1252_v49 = vsel %vm768_vm3, %v1110_v3, 0.0  ;;  %v1021_v18 = vsub.f32 %v2287_v36, %v2645_v11 }
 0x206   :  { %v1245_v30 = vadd.f32 %v1244_v50, %v1243_v55  ;;  %v1112_v50 = vmul.f32 %v1017_v63, %v1017_v63  ;;  %v1254_v26 = vsel %vm768_vm3, %v1111_v51, 0.0  ;;  %v1022_v63 = vsub.f32 %v2299_v44, %v2645_v11 }
 0x208   :  { %v1247_v7 = vadd.f32 %v1246_v2, %v1245_v30  ;;  %v1113_v2 = vmul.f32 %v1018_v1, %v1018_v1  ;;  %v1256_v15 = vsel %vm768_vm3, %v1112_v50, 0.0  ;;  %v1023_v1 = vsub.f32 %v2317_v56, %v2645_v11 }
 0x20a   :  { %v1249_v34 = vadd.f32 %v1248_v24, %v1247_v7  ;;  %v1114_v24 = vmul.f32 %v1019_v45, %v1019_v45  ;;  %v1258_v3 = vsel %vm768_vm3, %v1113_v2, 0.0  ;;  %v1024_v45 = vsub.f32 %v2329_v0, %v2645_v11 }
 0x20c   :  { %v1251_v55 = vadd.f32 %v1250_v39, %v1249_v34  ;;  %v1115_v39 = vmul.f32 %v1020_v28, %v1020_v28  ;;  %v1260_v51 = vsel %vm768_vm3, %v1114_v24, 0.0  ;;  %v1025_v28 = vsub.f32 %v2311_v52, %v2645_v11 }
 0x20e   :  { %v1253_v30 = vadd.f32 %v1252_v49, %v1251_v55  ;;  %v1116_v49 = vmul.f32 %v1021_v18, %v1021_v18  ;;  %v1262_v50 = vsel %vm768_vm3, %v1115_v39, 0.0  ;;  %v1026_v18 = vsub.f32 %v2323_v60, %v2645_v11 }
 0x210   :  { %v1255_v7 = vadd.f32 %v1254_v26, %v1253_v30  ;;  %v1117_v26 = vmul.f32 %v1022_v63, %v1022_v63  ;;  %v1264_v2 = vsel %vm768_vm3, %v1116_v49, 0.0  ;;  %v1027_v63 = vsub.f32 %v2341_v8, %v2645_v11 }
 0x212   :  { %v1257_v34 = vadd.f32 %v1256_v15, %v1255_v7  ;;  %v1118_v15 = vmul.f32 %v1023_v1, %v1023_v1  ;;  %v1266_v24 = vsel %vm768_vm3, %v1117_v26, 0.0  ;;  %v1028_v1 = vsub.f32 %v2353_v16, %v2645_v11 }
 0x214   :  { %v1259_v55 = vadd.f32 %v1258_v3, %v1257_v34  ;;  %v1119_v3 = vmul.f32 %v1024_v45, %v1024_v45  ;;  %v1268_v39 = vsel %vm768_vm3, %v1118_v15, 0.0  ;;  %v1029_v45 = vsub.f32 %v2335_v4, %v2645_v11 }
 0x216   :  { %v1261_v30 = vadd.f32 %v1260_v51, %v1259_v55  ;;  %v1120_v51 = vmul.f32 %v1025_v28, %v1025_v28  ;;  %v1270_v49 = vsel %vm768_vm3, %v1119_v3, 0.0  ;;  %v1030_v28 = vsub.f32 %v2347_v12, %v2645_v11 }
 0x218   :  { %v1263_v7 = vadd.f32 %v1262_v50, %v1261_v30  ;;  %v1121_v50 = vmul.f32 %v1026_v18, %v1026_v18  ;;  %v1272_v26 = vsel %vm768_vm3, %v1120_v51, 0.0  ;;  %v1031_v18 = vsub.f32 %v2365_v32, %v2645_v11 }
 0x21a   :  { %v1265_v34 = vadd.f32 %v1264_v2, %v1263_v7  ;;  %v1122_v2 = vmul.f32 %v1027_v63, %v1027_v63  ;;  %v1274_v15 = vsel %vm768_vm3, %v1121_v50, 0.0  ;;  %v1032_v63 = vsub.f32 %v2377_v46, %v2645_v11 }
 0x21c   :  { %v1267_v55 = vadd.f32 %v1266_v24, %v1265_v34  ;;  %v1123_v24 = vmul.f32 %v1028_v1, %v1028_v1  ;;  %v1276_v3 = vsel %vm768_vm3, %v1122_v2, 0.0  ;;  %v1033_v1 = vsub.f32 %v2359_v20, %v2645_v11 }
 0x21e   :  { %v1269_v30 = vadd.f32 %v1268_v39, %v1267_v55  ;;  %v1124_v39 = vmul.f32 %v1029_v45, %v1029_v45  ;;  %v1278_v51 = vsel %vm768_vm3, %v1123_v24, 0.0  ;;  %v1034_v45 = vsub.f32 %v2371_v38, %v2645_v11 }
 0x220   :  { %v1271_v7 = vadd.f32 %v1270_v49, %v1269_v30  ;;  %v1125_v49 = vmul.f32 %v1030_v28, %v1030_v28  ;;  %v1280_v50 = vsel %vm768_vm3, %v1124_v39, 0.0  ;;  %v1035_v28 = vsub.f32 %v2389_v62, %v2645_v11 }
 0x222   :  { %v1273_v34 = vadd.f32 %v1272_v26, %v1271_v7  ;;  %v1126_v26 = vmul.f32 %v1031_v18, %v1031_v18  ;;  %v1282_v2 = vsel %vm768_vm3, %v1125_v49, 0.0  ;;  %v1036_v18 = vsub.f32 %v2401_v14, %v2645_v11 }
 0x224   :  { %v1275_v55 = vadd.f32 %v1274_v15, %v1273_v34  ;;  %v1127_v15 = vmul.f32 %v1032_v63, %v1032_v63  ;;  %v1284_v24 = vsel %vm768_vm3, %v1126_v26, 0.0  ;;  %v1037_v63 = vsub.f32 %v2383_v54, %v2645_v11 }
 0x226   :  { %v1277_v30 = vadd.f32 %v1276_v3, %v1275_v55  ;;  %v1128_v3 = vmul.f32 %v1033_v1, %v1033_v1  ;;  %v1286_v39 = vsel %vm768_vm3, %v1127_v15, 0.0  ;;  %v1038_v1 = vsub.f32 %v2395_v6, %v2645_v11 }
 0x228   :  { %v1279_v7 = vadd.f32 %v1278_v51, %v1277_v30  ;;  %v1129_v51 = vmul.f32 %v1034_v45, %v1034_v45  ;;  %v1288_v49 = vsel %vm768_vm3, %v1128_v3, 0.0  ;;  %v1039_v45 = vsub.f32 %v2413_v42, %v2645_v11 }
 0x22a   :  { %v1281_v34 = vadd.f32 %v1280_v50, %v1279_v7  ;;  %v1130_v50 = vmul.f32 %v1035_v28, %v1035_v28  ;;  %v1290_v26 = vsel %vm768_vm3, %v1129_v51, 0.0  ;;  %v1040_v28 = vsub.f32 %v2425_v10, %v2645_v11 }
 0x22c   :  { %v1283_v55 = vadd.f32 %v1282_v2, %v1281_v34  ;;  %v1131_v2 = vmul.f32 %v1036_v18, %v1036_v18  ;;  %v1292_v15 = vsel %vm768_vm3, %v1130_v50, 0.0  ;;  %v1041_v18 = vsub.f32 %v2407_v22, %v2645_v11 }
 0x22e   :  { %v1285_v30 = vadd.f32 %v1284_v24, %v1283_v55  ;;  %v1132_v24 = vmul.f32 %v1037_v63, %v1037_v63  ;;  %v1294_v3 = vsel %vm768_vm3, %v1131_v2, 0.0  ;;  %v1042_v63 = vsub.f32 %v2419_v58, %v2645_v11 }
 0x230   :  { %v1287_v7 = vadd.f32 %v1286_v39, %v1285_v30  ;;  %v1133_v39 = vmul.f32 %v1038_v1, %v1038_v1  ;;  %v1296_v51 = vsel %vm768_vm3, %v1132_v24, 0.0  ;;  %v1043_v1 = vsub.f32 %v2437_v41, %v2645_v11 }
 0x232   :  { %v1289_v34 = vadd.f32 %v1288_v49, %v1287_v7  ;;  %v1134_v49 = vmul.f32 %v1039_v45, %v1039_v45  ;;  %v1298_v50 = vsel %vm768_vm3, %v1133_v39, 0.0  ;;  %v1044_v45 = vsub.f32 %v2449_v21, %v2645_v11 }
 0x234   :  { %v1291_v55 = vadd.f32 %v1290_v26, %v1289_v34  ;;  %v1135_v26 = vmul.f32 %v1040_v28, %v1040_v28  ;;  %v1300_v2 = vsel %vm768_vm3, %v1134_v49, 0.0  ;;  %v1045_v28 = vsub.f32 %v2431_v5, %v2645_v11 }
 0x236   :  { %v1293_v30 = vadd.f32 %v1292_v15, %v1291_v55  ;;  %v1136_v15 = vmul.f32 %v1041_v18, %v1041_v18  ;;  %v1302_v24 = vsel %vm768_vm3, %v1135_v26, 0.0  ;;  %v1046_v18 = vsub.f32 %v2443_v9, %v2645_v11 }
 0x238   :  { %v1295_v7 = vadd.f32 %v1294_v3, %v1293_v30  ;;  %v1137_v3 = vmul.f32 %v1042_v63, %v1042_v63  ;;  %v1304_v39 = vsel %vm768_vm3, %v1136_v15, 0.0  ;;  %v1047_v63 = vsub.f32 %v2461_v53, %v2645_v11 }
 0x23a   :  { %v1297_v34 = vadd.f32 %v1296_v51, %v1295_v7  ;;  %v1138_v51 = vmul.f32 %v1043_v1, %v1043_v1  ;;  %v1306_v49 = vsel %vm768_vm3, %v1137_v3, 0.0  ;;  %v1048_v1 = vsub.f32 %v2473_v33, %v2645_v11 }
 0x23c   :  { %v1299_v55 = vadd.f32 %v1298_v50, %v1297_v34  ;;  %v1139_v50 = vmul.f32 %v1044_v45, %v1044_v45  ;;  %v1308_v26 = vsel %vm768_vm3, %v1138_v51, 0.0  ;;  %v1049_v45 = vsub.f32 %v2455_v57, %v2645_v11 }
 0x23e   :  { %v1301_v30 = vadd.f32 %v1300_v2, %v1299_v55  ;;  %v1140_v2 = vmul.f32 %v1045_v28, %v1045_v28  ;;  %v1310_v15 = vsel %vm768_vm3, %v1139_v50, 0.0  ;;  %v1050_v28 = vsub.f32 %v2467_v61, %v2645_v11 }
 0x240   :  { %v1303_v7 = vadd.f32 %v1302_v24, %v1301_v30  ;;  %v1141_v24 = vmul.f32 %v1046_v18, %v1046_v18  ;;  %v1312_v3 = vsel %vm768_vm3, %v1140_v2, 0.0  ;;  %v1051_v18 = vsub.f32 %v2485_v19, %v2645_v11 }
 0x242   :  { %v1305_v34 = vadd.f32 %v1304_v39, %v1303_v7  ;;  %v1142_v39 = vmul.f32 %v1047_v63, %v1047_v63  ;;  %v1314_v51 = vsel %vm768_vm3, %v1141_v24, 0.0  ;;  %v1052_v63 = vsub.f32 %v2497_v37, %v2645_v11 }
 0x244   :  { %v1307_v55 = vadd.f32 %v1306_v49, %v1305_v34  ;;  %v1143_v49 = vmul.f32 %v1048_v1, %v1048_v1  ;;  %v1316_v50 = vsel %vm768_vm3, %v1142_v39, 0.0  ;;  %v1053_v1 = vsub.f32 %v2479_v13, %v2645_v11 }
 0x245   :  { %v1147_v19 = vmul.f32 %v1052_v63, %v1052_v63 }
 0x246   :  { %v1309_v30 = vadd.f32 %v1308_v26, %v1307_v55  ;;  %v1144_v26 = vmul.f32 %v1049_v45, %v1049_v45  ;;  %v1318_v2 = vsel %vm768_vm3, %v1143_v49, 0.0  ;;  %v1148_v37 = vmul.f32 %v1053_v1, %v1053_v1 }
 0x248   :  { %v1311_v7 = vadd.f32 %v1310_v15, %v1309_v30  ;;  %v1145_v15 = vmul.f32 %v1050_v28, %v1050_v28  ;;  %v1320_v24 = vsel %vm768_vm3, %v1144_v26, 0.0  ;;  %v1326_v26 = vsel %vm768_vm3, %v1147_v19, 0.0 }
 0x24a   :  { %v1313_v34 = vadd.f32 %v1312_v3, %v1311_v7  ;;  %v1146_v3 = vmul.f32 %v1051_v18, %v1051_v18  ;;  %v1322_v39 = vsel %vm768_vm3, %v1145_v15, 0.0  ;;  %v1328_v15 = vsel %vm768_vm3, %v1148_v37, 0.0 }
 0x24c   :  { %v1315_v55 = vadd.f32 %v1314_v51, %v1313_v34  ;;  %v4115_v51 = vld [vmem:[#allocation44_spill] sm:$0xff]  ;;  %v1324_v49 = vsel %vm768_vm3, %v1146_v3, 0.0 }
 0x24d   :  { %v1054_v45 = vsub.f32 %v4115_v51, %v2645_v11 }
 0x24e   :  { %v1317_v30 = vadd.f32 %v1316_v50, %v1315_v55  ;;  %v4116_v50 = vld [vmem:[#allocation50_spill] sm:$0xff] }
 0x24f   :  { %v1055_v28 = vsub.f32 %v4116_v50, %v2645_v11  ;;  %v1149_v13 = vmul.f32 %v1054_v45, %v1054_v45 }
 0x250   :  { %v1319_v7 = vadd.f32 %v1318_v2, %v1317_v30  ;;  %v4117_v2 = vld [vmem:[#allocation54_spill] sm:$0xff] }
 0x251   :  { %v1056_v18 = vsub.f32 %v4117_v2, %v2645_v11  ;;  %v1150_v51 = vmul.f32 %v1055_v28, %v1055_v28  ;;  %v1330_v3 = vsel %vm768_vm3, %v1149_v13, 0.0 }
 0x252   :  { %v1321_v34 = vadd.f32 %v1320_v24, %v1319_v7  ;;  %v4118_v24 = vld [vmem:[#allocation48_spill] sm:$0xff] }
 0x253   :  { %v1057_v63 = vsub.f32 %v4118_v24, %v2645_v11  ;;  %v1151_v50 = vmul.f32 %v1056_v18, %v1056_v18  ;;  %v1332_v19 = vsel %vm768_vm3, %v1150_v51, 0.0 }
 0x254   :  { %v1323_v55 = vadd.f32 %v1322_v39, %v1321_v34  ;;  %v4119_v39 = vld [vmem:[#allocation52_spill] sm:$0xff] }
 0x255   :  { %v1058_v1 = vsub.f32 %v4119_v39, %v2645_v11  ;;  %v1152_v2 = vmul.f32 %v1057_v63, %v1057_v63  ;;  %v1334_v37 = vsel %vm768_vm3, %v1151_v50, 0.0 }
 0x256   :  { %v1325_v30 = vadd.f32 %v1324_v49, %v1323_v55  ;;  %v4120_v49 = vld [vmem:[#allocation56_spill] sm:$0xff] }
 0x257   :  { %v1059_v45 = vsub.f32 %v4120_v49, %v2645_v11  ;;  %v1153_v24 = vmul.f32 %v1058_v1, %v1058_v1  ;;  %v1336_v13 = vsel %vm768_vm3, %v1152_v2, 0.0 }
 0x258   :  { %v1327_v7 = vadd.f32 %v1326_v26, %v1325_v30  ;;  %v4121_v26 = vld [vmem:[#allocation58_spill] sm:$0xff] }
 0x259   :  { %v1060_v28 = vsub.f32 %v4121_v26, %v2645_v11  ;;  %v1154_v39 = vmul.f32 %v1059_v45, %v1059_v45  ;;  %v1338_v63 = vsel %vm768_vm3, %v1153_v24, 0.0  ;;  %v1358_v24 = vlaneseq }
 0x25a   :  { %v1329_v34 = vadd.f32 %v1328_v15, %v1327_v7  ;;  %v4122_v15 = vld [vmem:[#allocation55_spill] sm:$0xff] }
 0x25b   :  { %v1061_v18 = vsub.f32 %v4122_v15, %v2645_v11 }
 0x25c   :  { %v1331_v55 = vadd.f32 %v1330_v3, %v1329_v34  ;;  %v1155_v3 = vmul.f32 %v1060_v28, %v1060_v28 }
 0x25d   :  { %v1156_v51 = vmul.f32 %v1061_v18, %v1061_v18  ;;  %v2932_v18 = vshrl.u32 %v1358_v24, 7 }
 0x25e   :  { %v1333_v30 = vadd.f32 %v1332_v19, %v1331_v55  ;;  %v1340_v55 = vsel %vm768_vm3, %v1154_v39, 0.0  ;;  %v1342_v1 = vsel %vm768_vm3, %v1155_v3, 0.0  ;;  %v1353_v39 = vld [vmem:[%s3905_s2] sm:$0x1] }
 0x25f   :  { %v1344_v50 = vsel %vm956_vm4, %v1156_v51, 0.0  ;;  %v4124_v51 = vld [vmem:[#allocation5_spill] sm:$0xff] }
 0x260   :  { %v1335_v7 = vadd.f32 %v1334_v37, %v1333_v30 }
 0x262   :  { %v1337_v34 = vadd.f32 %v1336_v13, %v1335_v7 }
 0x264   :  { %v1339_v49 = vadd.f32 %v1338_v63, %v1337_v34 }
 0x266   :  { %v1341_v19 = vadd.f32 %v1340_v55, %v1339_v49  ;;  %v4015_v49 = vsub.s32 0, %v2932_v18 }
 0x268   :  { %v1343_v26 = vadd.f32 %v1342_v1, %v1341_v19  ;;  %v4125_v19 = vld [vmem:[#allocation2_spill] sm:$0xff] }
 0x26a   :  { %v1345_v30 = vadd.f32 %v1344_v50, %v1343_v26  ;;  %v4126_v50 = vld [vmem:[#allocation4_spill] sm:$0xff] }
 0x26c   :  { %v1346_v37 = vrot.slane %v1345_v30, 4 }
 0x26e   :  { %v1347_v15 = vadd.f32 %v1346_v37, %v1345_v30  ;;  %v4127_v37 = vld [vmem:[#allocation7_spill] sm:$0xff] }
 0x270   :  { %v1348_v45 = vrot.slane %v1347_v15, 2 }
 0x272   :  { %v1349_v61 = vadd.f32 %v1348_v45, %v1347_v15  ;;  %v4123_v15 = vld [vmem:[#allocation3_spill] sm:$0xff] }
 0x274   :  { %v1350_v2 = vrot.slane %v1349_v61, 1 }
 0x276   :  { %v1351_v7 = vadd.f32 %v1350_v2, %v1349_v61  ;;  %v4128_v2 = vld [vmem:[#allocation9_spill] sm:$0xff] }
 0x278   :  { %v1352_v28 = vmul.f32 0.0013262599, %v1351_v7  ;;  %v4129_v7 = vld [vmem:[#allocation6_spill] sm:$0xff] }
 0x27a   :  { %v1354_v13 = vadd.f32 1e-05, %v1352_v28 }
 0x27c   :  { %1889 = vrsqrt.f32 %v1354_v13  ;;  %v4130_v13 = vld [vmem:[#allocation8_spill] sm:$0xff] }
 0x289   :  { %v1890_v34 = vpop.eup %1889 }
 0x28a   :  { %v1356_v26 = vmul.f32 %v1890_v34, %v1353_v39  ;;  %v4131_v39 = vld [vmem:[#allocation11_spill] sm:$0xff] }
 0x28c   :  { %v2940_v3 = vrot.slane %v1356_v26, %v4015_v49  ;;  %v2947_v63 = vmul.f32 %v1356_v26, %v2645_v11  ;;  %v4132_v26 = vld [vmem:[#allocation13_spill] sm:$0xff]  ;;  %v4142_v49 = vld [vmem:[#allocation14_spill] sm:$0xff] }
 0x28e   :  { %v2944_v61 = vmul.f32 %v2940_v3, %v4123_v15  ;;  %v2951_v55 = vmul.f32 %v2940_v3, %v4124_v51  ;;  %v2955_v1 = vmul.f32 %v4125_v19, %v2940_v3  ;;  %v2959_v30 = vmul.f32 %v4126_v50, %v2940_v3  ;;  %v4134_v51 = vld [vmem:[#allocation10_spill] sm:$0xff]  ;;  %v4136_v50 = vld [vmem:[#allocation12_spill] sm:$0xff] }
 0x28f   :  { %v2963_v45 = vmul.f32 %v2940_v3, %v4127_v37  ;;  %v2967_v11 = vmul.f32 %v2940_v3, %v4128_v2  ;;  %v2971_v28 = vmul.f32 %v4129_v7, %v2940_v3  ;;  %v2975_v24 = vmul.f32 %v4130_v13, %v2940_v3  ;;  %v4138_v2 = vld [vmem:[#allocation15_spill] sm:$0xff]  ;;  %v4140_v13 = vld [vmem:[#allocation17_spill] sm:$0xff] }
 0x290   :  { %v2979_v34 = vmul.f32 %v2940_v3, %v4131_v39  ;;  %v2983_v15 = vmul.f32 %v2940_v3, %v4132_v26  ;;  %v2987_v19 = vmul.f32 %v4134_v51, %v2940_v3  ;;  %v2991_v37 = vmul.f32 %v4136_v50, %v2940_v3 }
 0x291   :  { %v2995_v7 = vmul.f32 %v2940_v3, %v4138_v2  ;;  %v2999_v39 = vmul.f32 %v2940_v3, %v4140_v13  ;;  %v3003_v26 = vmul.f32 %v4142_v49, %v2940_v3 }
 0x292   :  { %4133 = vst [vmem:[#allocation53_spill] sm:$0xff] %v2983_v15  ;;  %4135 = vst [vmem:[#allocation51_spill] sm:$0xff] %v2987_v19  ;;  %v4144_v15 = vld [vmem:[#allocation16_spill] sm:$0xff]  ;;  %v4146_v19 = vld [vmem:[#allocation19_spill] sm:$0xff] }
 0x293   :  { %4137 = vst [vmem:[#allocation57_spill] sm:$0xff] %v2991_v37  ;;  %4139 = vst [vmem:[#allocation3_spill] sm:$0xff] %v2995_v7  ;;  %v3007_v51 = vmul.f32 %v4144_v15, %v2940_v3  ;;  %v3011_v50 = vmul.f32 %v2940_v3, %v4146_v19  ;;  %v4148_v37 = vld [vmem:[#allocation21_spill] sm:$0xff]  ;;  %v4150_v7 = vld [vmem:[#allocation18_spill] sm:$0xff] }
 0x294   :  { %4141 = vst [vmem:[#allocation5_spill] sm:$0xff] %v2999_v39  ;;  %4143 = vst [vmem:[#allocation2_spill] sm:$0xff] %v3003_v26  ;;  %v3015_v2 = vmul.f32 %v2940_v3, %v4148_v37  ;;  %v3019_v13 = vmul.f32 %v4150_v7, %v2940_v3  ;;  %v4152_v39 = vld [vmem:[#allocation20_spill] sm:$0xff]  ;;  %v4154_v26 = vld [vmem:[#allocation23_spill] sm:$0xff] }
 0x295   :  { %4145 = vst [vmem:[#allocation4_spill] sm:$0xff] %v3007_v51  ;;  %4147 = vst [vmem:[#allocation7_spill] sm:$0xff] %v3011_v50  ;;  %v3023_v49 = vmul.f32 %v4152_v39, %v2940_v3  ;;  %v3027_v15 = vmul.f32 %v2940_v3, %v4154_v26  ;;  %v4156_v51 = vld [vmem:[#allocation25_spill] sm:$0xff]  ;;  %v4158_v50 = vld [vmem:[#allocation22_spill] sm:$0xff] }
 0x296   :  { %4149 = vst [vmem:[#allocation9_spill] sm:$0xff] %v3015_v2  ;;  %4151 = vst [vmem:[#allocation6_spill] sm:$0xff] %v3019_v13  ;;  %v3031_v19 = vmul.f32 %v2940_v3, %v4156_v51  ;;  %v3035_v37 = vmul.f32 %v4158_v50, %v2940_v3  ;;  %v4160_v2 = vld [vmem:[#allocation24_spill] sm:$0xff]  ;;  %v4162_v13 = vld [vmem:[#allocation27_spill] sm:$0xff] }
 0x297   :  { %4153 = vst [vmem:[#allocation8_spill] sm:$0xff] %v3023_v49  ;;  %4155 = vst [vmem:[#allocation11_spill] sm:$0xff] %v3027_v15  ;;  %v3039_v7 = vmul.f32 %v4160_v2, %v2940_v3  ;;  %v3043_v39 = vmul.f32 %v2940_v3, %v4162_v13  ;;  %v4164_v49 = vld [vmem:[#allocation29_spill] sm:$0xff]  ;;  %v4166_v15 = vld [vmem:[#allocation26_spill] sm:$0xff] }
 0x298   :  { %4157 = vst [vmem:[#allocation13_spill] sm:$0xff] %v3031_v19  ;;  %4159 = vst [vmem:[#allocation10_spill] sm:$0xff] %v3035_v37  ;;  %v3047_v26 = vmul.f32 %v2940_v3, %v4164_v49  ;;  %v3051_v51 = vmul.f32 %v4166_v15, %v2940_v3  ;;  %v4168_v19 = vld [vmem:[#allocation28_spill] sm:$0xff]  ;;  %v4170_v37 = vld [vmem:[#allocation31_spill] sm:$0xff] }
 0x299   :  { %4161 = vst [vmem:[#allocation12_spill] sm:$0xff] %v3039_v7  ;;  %4163 = vst [vmem:[#allocation15_spill] sm:$0xff] %v3043_v39  ;;  %v3055_v50 = vmul.f32 %v4168_v19, %v2940_v3  ;;  %v3059_v2 = vmul.f32 %v2940_v3, %v4170_v37  ;;  %v4172_v7 = vld [vmem:[#allocation33_spill] sm:$0xff]  ;;  %v4174_v39 = vld [vmem:[#allocation30_spill] sm:$0xff] }
 0x29a   :  { %4165 = vst [vmem:[#allocation17_spill] sm:$0xff] %v3047_v26  ;;  %4167 = vst [vmem:[#allocation14_spill] sm:$0xff] %v3051_v51  ;;  %v3063_v13 = vmul.f32 %v2940_v3, %v4172_v7  ;;  %v3067_v49 = vmul.f32 %v4174_v39, %v2940_v3  ;;  %v4176_v26 = vld [vmem:[#allocation32_spill] sm:$0xff]  ;;  %v4178_v51 = vld [vmem:[#allocation35_spill] sm:$0xff] }
 0x29b   :  { %4169 = vst [vmem:[#allocation16_spill] sm:$0xff] %v3055_v50  ;;  %4171 = vst [vmem:[#allocation19_spill] sm:$0xff] %v3059_v2  ;;  %v3071_v15 = vmul.f32 %v4176_v26, %v2940_v3  ;;  %v3075_v19 = vmul.f32 %v2940_v3, %v4178_v51  ;;  %v4180_v50 = vld [vmem:[#allocation38_spill] sm:$0xff] }
 0x29c   :  { %4173 = vst [vmem:[#allocation21_spill] sm:$0xff] %v3063_v13  ;;  %4175 = vst [vmem:[#allocation18_spill] sm:$0xff] %v3067_v49  ;;  %v3079_v37 = vmul.f32 %v2940_v3, %v4180_v50  ;;  %v4182_v2 = vld [vmem:[#allocation34_spill] sm:$0xff]  ;;  %v4184_v13 = vld [vmem:[#allocation36_spill] sm:$0xff] }
 0x29d   :  { %4177 = vst [vmem:[#allocation20_spill] sm:$0xff] %v3071_v15  ;;  %4179 = vst [vmem:[#allocation23_spill] sm:$0xff] %v3075_v19  ;;  %v3083_v7 = vmul.f32 %v4182_v2, %v2940_v3  ;;  %v3087_v39 = vmul.f32 %v4184_v13, %v2940_v3  ;;  %v4185_v49 = vld [vmem:[#allocation41_spill] sm:$0xff]  ;;  %v4188_v19 = vld [vmem:[#allocation39_spill] sm:$0xff] }
 0x29e   :  { %4181 = vst [vmem:[#allocation25_spill] sm:$0xff] %v3079_v37  ;;  %v3091_v26 = vmul.f32 %v2940_v3, %v4185_v49  ;;  %v4187_v15 = vld [vmem:[#allocation45_spill] sm:$0xff]  ;;  %v3099_v50 = vmul.f32 %v4188_v19, %v2940_v3  ;;  %v4189_v37 = vld [vmem:[#allocation43_spill] sm:$0xff]  ;;  %v3111_v49 = vmul.f32 %v2940_v3, %v4111_v23  ;;  %v3119_v19 = vmul.f32 %v4113_v59, %v2940_v3 }
 0x29f   :  { %4183 = vst [vmem:[#allocation22_spill] sm:$0xff] %v3083_v7  ;;  %v3095_v51 = vmul.f32 %v2940_v3, %v4187_v15  ;;  %v3103_v2 = vmul.f32 %v4189_v37, %v2940_v3  ;;  %v4190_v7 = vld [vmem:[#allocation49_spill] sm:$0xff]  ;;  %v3123_v37 = vmul.f32 %v2940_v3, %v2531_v35  ;;  %v3131_v23 = vmul.f32 %v2525_v43, %v2940_v3 }
 0x2a0   :  { %4186 = vst [vmem:[#allocation24_spill] sm:$0xff] %v3091_v26  ;;  %v3107_v13 = vmul.f32 %v2940_v3, %v4190_v7  ;;  %v4191_v26 = vld [vmem:[#allocation47_spill] sm:$0xff]  ;;  %v3127_v7 = vmul.f32 %v2940_v3, %v4114_v17  ;;  %v3139_v59 = vmul.f32 %v2940_v3, %v2271_v27  ;;  %v3143_v35 = vmul.f32 %v2940_v3, %v2279_v31 }
 0x2a1   :  { %v3115_v15 = vmul.f32 %v4191_v26, %v2940_v3  ;;  %v3135_v26 = vmul.f32 %v2537_v47, %v2940_v3  ;;  %v3147_v17 = vmul.f32 %v2267_v25, %v2940_v3  ;;  %v3151_v43 = vmul.f32 %v2275_v29, %v2940_v3 }
 0x2a2   :  { %v3155_v47 = vmul.f32 %v2940_v3, %v2293_v40  ;;  %v3159_v27 = vmul.f32 %v2940_v3, %v2305_v48  ;;  %v3163_v31 = vmul.f32 %v2287_v36, %v2940_v3  ;;  %v3167_v25 = vmul.f32 %v2299_v44, %v2940_v3 }
 0x2a3   :  { %v3171_v29 = vmul.f32 %v2940_v3, %v2317_v56  ;;  %v3175_v40 = vmul.f32 %v2940_v3, %v2329_v0  ;;  %v3179_v48 = vmul.f32 %v2311_v52, %v2940_v3  ;;  %v3183_v36 = vmul.f32 %v2323_v60, %v2940_v3 }
 0x2a4   :  { %v3187_v44 = vmul.f32 %v2940_v3, %v2341_v8  ;;  %v3191_v56 = vmul.f32 %v2940_v3, %v2353_v16  ;;  %v3195_v0 = vmul.f32 %v2335_v4, %v2940_v3  ;;  %v3199_v52 = vmul.f32 %v2347_v12, %v2940_v3 }
 0x2a5   :  { %v3203_v60 = vmul.f32 %v2940_v3, %v2365_v32  ;;  %v3207_v8 = vmul.f32 %v2940_v3, %v2377_v46  ;;  %v3211_v16 = vmul.f32 %v2359_v20, %v2940_v3  ;;  %v3215_v4 = vmul.f32 %v2371_v38, %v2940_v3 }
 0x2a6   :  { %v3219_v12 = vmul.f32 %v2940_v3, %v2389_v62  ;;  %v3223_v32 = vmul.f32 %v2940_v3, %v2401_v14  ;;  %v3227_v46 = vmul.f32 %v2383_v54, %v2940_v3  ;;  %v3231_v20 = vmul.f32 %v2395_v6, %v2940_v3  ;;  %v1458_v62 = vld [vmem:[%s3906_s3] sm:$0x1] }
 0x2a7   :  { %v3235_v38 = vmul.f32 %v2940_v3, %v2413_v42  ;;  %v3242_v14 = vmul.f32 %v2940_v3, %v2425_v10  ;;  %v3246_v54 = vmul.f32 %v2407_v22, %v2940_v3  ;;  %v3250_v6 = vmul.f32 %v2419_v58, %v2940_v3 }
 0x2a8   :  { %v3254_v42 = vmul.f32 %v2940_v3, %v2437_v41  ;;  %v3262_v10 = vmul.f32 %v2431_v5, %v2940_v3  ;;  %v3266_v22 = vmul.f32 %v2443_v9, %v2940_v3  ;;  %v3270_v58 = vmul.f32 %v2940_v3, %v2461_v53  ;;  %v4201_v9 = vld [vmem:[#allocation42_spill] sm:$0xff] }
 0x2a9   :  { %4192 = vst [vmem:[#allocation27_spill] sm:$0xff] %v3235_v38  ;;  %v3258_v38 = vmul.f32 %v2940_v3, %v2449_v21  ;;  %v3274_v41 = vmul.f32 %v2940_v3, %v2473_v33  ;;  %v3278_v21 = vmul.f32 %v2455_v57, %v2940_v3  ;;  %v4202_v53 = vld [vmem:[#allocation46_spill] sm:$0xff]  ;;  %v4204_v33 = vld [vmem:[#allocation40_spill] sm:$0xff] }
 0x2aa   :  { %4194 = vst [vmem:[#allocation26_spill] sm:$0xff] %v3262_v10  ;;  %4195 = vst [vmem:[#allocation28_spill] sm:$0xff] %v3266_v22  ;;  %v1460_v10 = vsub.f32 %v1458_v62, %v2947_v63  ;;  %v3287_v22 = vmul.f32 %v2940_v3, %v4201_v9  ;;  %v4206_v57 = vld [vmem:[#allocation44_spill] sm:$0xff]  ;;  %v4210_v63 = vld [vmem:[#allocation54_spill] sm:$0xff] }
 0x2ab   :  { %4193 = vst [vmem:[#allocation29_spill] sm:$0xff] %v3258_v38  ;;  %4196 = vst [vmem:[#allocation31_spill] sm:$0xff] %v3270_v58  ;;  %v4199_v38 = vld [vmem:[#allocation37_spill] sm:$0xff]  ;;  %v3291_v58 = vmul.f32 %v2940_v3, %v4202_v53  ;;  %v3307_v62 = vmul.f32 %v2940_v3, %v4210_v63  ;;  %v4212_v9 = vld [vmem:[#allocation48_spill] sm:$0xff] }
 0x2ac   :  { %4197 = vst [vmem:[#allocation33_spill] sm:$0xff] %v3274_v41  ;;  %4198 = vst [vmem:[#allocation30_spill] sm:$0xff] %v3278_v21  ;;  %v3282_v5 = vmul.f32 %v4199_v38, %v2940_v3  ;;  %v3295_v41 = vmul.f32 %v4204_v33, %v2940_v3  ;;  %v3299_v21 = vmul.f32 %v4206_v57, %v2940_v3  ;;  %v4208_v38 = vld [vmem:[#allocation50_spill] sm:$0xff] }
 0x2ad   :  { %4203 = vst [vmem:[#allocation35_spill] sm:$0xff] %v3291_v58  ;;  %4211 = vst [vmem:[#allocation41_spill] sm:$0xff] %v3307_v62  ;;  %v3311_v53 = vmul.f32 %v4212_v9, %v2940_v3  ;;  %v4213_v58 = vsub.s32 0, %v2932_v18  ;;  %v4218_v62 = vld [vmem:[#allocation55_spill] sm:$0xff] }
 0x2ae   :  { %4200 = vst [vmem:[#allocation32_spill] sm:$0xff] %v3282_v5  ;;  %4205 = vst [vmem:[#allocation38_spill] sm:$0xff] %v3295_v41  ;;  %v3303_v5 = vmul.f32 %v2940_v3, %v4208_v38  ;;  %v4214_v41 = vld [vmem:[#allocation52_spill] sm:$0xff]  ;;  %v3331_v9 = vmul.f32 %v4218_v62, %v2940_v3  ;;  %v4220_v62 = vld [vmem:[#allocation53_spill] sm:$0xff] }
 0x2af   :  { %4207 = vst [vmem:[#allocation34_spill] sm:$0xff] %v3299_v21  ;;  %v3315_v33 = vrot.slane %v1460_v10, %v4213_v58  ;;  %v3319_v57 = vmul.f32 %v4214_v41, %v2940_v3  ;;  %v4215_v21 = vld [vmem:[#allocation56_spill] sm:$0xff] }
 0x2b0   :  { %4209 = vst [vmem:[#allocation36_spill] sm:$0xff] %v3303_v5  ;;  %v3323_v38 = vmul.f32 %v2940_v3, %v4215_v21  ;;  %v4216_v5 = vld [vmem:[#allocation58_spill] sm:$0xff]  ;;  %4219 = vst [vmem:[#allocation39_spill] sm:$0xff] %v3331_v9  ;;  %v4221_v9 = vld [vmem:[#allocation51_spill] sm:$0xff] }
 0x2b1   :  { %v3327_v63 = vmul.f32 %v2940_v3, %v4216_v5  ;;  %v1467_v18 = vadd.f32 %v3315_v33, %v2944_v61  ;;  %v1468_v10 = vadd.f32 %v3315_v33, %v2951_v55  ;;  %v1469_v58 = vadd.f32 %v3315_v33, %v2955_v1 }
 0x2b2   :  { %v1470_v41 = vadd.f32 %v3315_v33, %v2959_v30  ;;  %v1471_v21 = vadd.f32 %v3315_v33, %v2963_v45  ;;  %v1472_v5 = vadd.f32 %v3315_v33, %v2967_v11  ;;  %v1473_v3 = vadd.f32 %v3315_v33, %v2971_v28  ;;  %v4223_v11 = vld [vmem:[#allocation3_spill] sm:$0xff] }
 0x2b3   :  { %4217 = vst [vmem:[#allocation45_spill] sm:$0xff] %v3327_v63  ;;  %v1474_v61 = vadd.f32 %v3315_v33, %v2975_v24  ;;  %v1475_v55 = vadd.f32 %v3315_v33, %v2979_v34  ;;  %v1476_v1 = vadd.f32 %v3315_v33, %v4220_v62  ;;  %v1477_v30 = vadd.f32 %v3315_v33, %v4221_v9  ;;  %v4222_v63 = vld [vmem:[#allocation57_spill] sm:$0xff] }
 0x2b4   :  { %v1478_v45 = vadd.f32 %v3315_v33, %v4222_v63  ;;  %1562 = vst.msk [vmem:[%s3907_s4] sm:$0xff] %vm768_vm3, %v1467_v18  ;;  %1563 = vst.msk [vmem:[%s3907_s4 + $0x8] sm:$0xff] %vm768_vm3, %v1468_v10  ;;  %v1479_v28 = vadd.f32 %v3315_v33, %v4223_v11  ;;  %v4224_v24 = vld [vmem:[#allocation5_spill] sm:$0xff]  ;;  %v4225_v63 = vld [vmem:[#allocation2_spill] sm:$0xff] }
 0x2b5   :  { %1564 = vst.msk [vmem:[%s3907_s4 + $0x10] sm:$0xff] %vm768_vm3, %v1469_v58  ;;  %1565 = vst.msk [vmem:[%s3907_s4 + $0x18] sm:$0xff] %vm768_vm3, %v1470_v41  ;;  %v1480_v34 = vadd.f32 %v3315_v33, %v4224_v24  ;;  %v1481_v9 = vadd.f32 %v3315_v33, %v4225_v63  ;;  %v4226_v18 = vld [vmem:[#allocation4_spill] sm:$0xff]  ;;  %v4227_v58 = vld [vmem:[#allocation7_spill] sm:$0xff] }
 0x2b6   :  { %v1482_v10 = vadd.f32 %v3315_v33, %v4226_v18  ;;  %1566 = vst.msk [vmem:[%s3907_s4 + $0x20] sm:$0xff] %vm768_vm3, %v1471_v21  ;;  %1567 = vst.msk [vmem:[%s3907_s4 + $0x28] sm:$0xff] %vm768_vm3, %v1472_v5  ;;  %v1483_v41 = vadd.f32 %v3315_v33, %v4227_v58  ;;  %v4228_v62 = vld [vmem:[#allocation9_spill] sm:$0xff]  ;;  %v4229_v11 = vld [vmem:[#allocation6_spill] sm:$0xff] }
 0x2b7   :  { %1568 = vst.msk [vmem:[%s3907_s4 + $0x30] sm:$0xff] %vm768_vm3, %v1473_v3  ;;  %1569 = vst.msk [vmem:[%s3907_s4 + $0x38] sm:$0xff] %vm768_vm3, %v1474_v61  ;;  %v1484_v21 = vadd.f32 %v3315_v33, %v4228_v62  ;;  %v1485_v24 = vadd.f32 %v3315_v33, %v4229_v11  ;;  %v4230_v5 = vld [vmem:[#allocation8_spill] sm:$0xff]  ;;  %v4231_v3 = vld [vmem:[#allocation11_spill] sm:$0xff] }
 0x2b8   :  { %v1486_v63 = vadd.f32 %v3315_v33, %v4230_v5  ;;  %1570 = vst.msk [vmem:[%s3907_s4 + $0x40] sm:$0xff] %vm768_vm3, %v1475_v55  ;;  %1571 = vst.msk [vmem:[%s3907_s4 + $0x48] sm:$0xff] %vm768_vm3, %v1476_v1  ;;  %v1487_v61 = vadd.f32 %v3315_v33, %v4231_v3  ;;  %v4232_v18 = vld [vmem:[#allocation13_spill] sm:$0xff]  ;;  %v4233_v58 = vld [vmem:[#allocation10_spill] sm:$0xff] }
 0x2b9   :  { %1572 = vst.msk [vmem:[%s3907_s4 + $0x50] sm:$0xff] %vm768_vm3, %v1477_v30  ;;  %1573 = vst.msk [vmem:[%s3907_s4 + $0x58] sm:$0xff] %vm768_vm3, %v1478_v45  ;;  %v1488_v55 = vadd.f32 %v3315_v33, %v4232_v18  ;;  %v1489_v62 = vadd.f32 %v3315_v33, %v4233_v58  ;;  %v4234_v1 = vld [vmem:[#allocation12_spill] sm:$0xff]  ;;  %v4235_v30 = vld [vmem:[#allocation15_spill] sm:$0xff] }
 0x2ba   :  { %v1490_v11 = vadd.f32 %v3315_v33, %v4234_v1  ;;  %1574 = vst.msk [vmem:[%s3907_s4 + $0x60] sm:$0xff] %vm768_vm3, %v1479_v28  ;;  %1575 = vst.msk [vmem:[%s3907_s4 + $0x68] sm:$0xff] %vm768_vm3, %v1480_v34  ;;  %v1491_v45 = vadd.f32 %v3315_v33, %v4235_v30  ;;  %v4236_v5 = vld [vmem:[#allocation17_spill] sm:$0xff]  ;;  %v4237_v3 = vld [vmem:[#allocation14_spill] sm:$0xff] }
 0x2bb   :  { %1576 = vst.msk [vmem:[%s3907_s4 + $0x70] sm:$0xff] %vm768_vm3, %v1481_v9  ;;  %1577 = vst.msk [vmem:[%s3907_s4 + $0x78] sm:$0xff] %vm768_vm3, %v1482_v10  ;;  %v1492_v28 = vadd.f32 %v3315_v33, %v4236_v5  ;;  %v1493_v18 = vadd.f32 %v3315_v33, %v4237_v3  ;;  %v4238_v34 = vld [vmem:[#allocation16_spill] sm:$0xff]  ;;  %v4239_v9 = vld [vmem:[#allocation19_spill] sm:$0xff] }
 0x2bc   :  { %v1494_v58 = vadd.f32 %v3315_v33, %v4238_v34  ;;  %1578 = vst.msk [vmem:[%s3907_s4 + $0x80] sm:$0xff] %vm768_vm3, %v1483_v41  ;;  %1579 = vst.msk [vmem:[%s3907_s4 + $0x88] sm:$0xff] %vm768_vm3, %v1484_v21  ;;  %v1495_v10 = vadd.f32 %v3315_v33, %v4239_v9  ;;  %v4240_v1 = vld [vmem:[#allocation21_spill] sm:$0xff]  ;;  %v4241_v30 = vld [vmem:[#allocation18_spill] sm:$0xff] }
 0x2bd   :  { %1580 = vst.msk [vmem:[%s3907_s4 + $0x90] sm:$0xff] %vm768_vm3, %v1485_v24  ;;  %1581 = vst.msk [vmem:[%s3907_s4 + $0x98] sm:$0xff] %vm768_vm3, %v1486_v63  ;;  %v1496_v41 = vadd.f32 %v3315_v33, %v4240_v1  ;;  %v1497_v5 = vadd.f32 %v3315_v33, %v4241_v30  ;;  %v4242_v21 = vld [vmem:[#allocation20_spill] sm:$0xff]  ;;  %v4243_v24 = vld [vmem:[#allocation23_spill] sm:$0xff] }
 0x2be   :  { %v1498_v3 = vadd.f32 %v3315_v33, %v4242_v21  ;;  %1582 = vst.msk [vmem:[%s3907_s4 + $0xa0] sm:$0xff] %vm768_vm3, %v1487_v61  ;;  %1583 = vst.msk [vmem:[%s3907_s4 + $0xa8] sm:$0xff] %vm768_vm3, %v1488_v55  ;;  %v1499_v63 = vadd.f32 %v3315_v33, %v4243_v24  ;;  %v4244_v34 = vld [vmem:[#allocation25_spill] sm:$0xff]  ;;  %v4245_v9 = vld [vmem:[#allocation22_spill] sm:$0xff]  ;;  %v1502_v55 = vadd.f32 %v3315_v33, %v3087_v39 }
 0x2bf   :  { %1584 = vst.msk [vmem:[%s3907_s4 + $0xb0] sm:$0xff] %vm768_vm3, %v1489_v62  ;;  %1585 = vst.msk [vmem:[%s3907_s4 + $0xb8] sm:$0xff] %vm768_vm3, %v1490_v11  ;;  %v1500_v61 = vadd.f32 %v3315_v33, %v4244_v34  ;;  %v1501_v1 = vadd.f32 %v3315_v33, %v4245_v9  ;;  %v4246_v39 = vld [vmem:[#allocation24_spill] sm:$0xff]  ;;  %v1504_v11 = vadd.f32 %v3315_v33, %v3095_v51 }
 0x2c0   :  { %1586 = vst.msk [vmem:[%s3907_s4 + $0xc0] sm:$0xff] %vm768_vm3, %v1491_v45  ;;  %1587 = vst.msk [vmem:[%s3907_s4 + $0xc8] sm:$0xff] %vm768_vm3, %v1492_v28  ;;  %v1503_v62 = vadd.f32 %v3315_v33, %v4246_v39  ;;  %v1505_v45 = vadd.f32 %v3315_v33, %v3099_v50  ;;  %v1506_v28 = vadd.f32 %v3315_v33, %v3103_v2  ;;  %v4250_v30 = vld [vmem:[#allocation28_spill] sm:$0xff] }
 0x2c1   :  { %1588 = vst.msk [vmem:[%s3907_s4 + $0xd0] sm:$0xff] %vm768_vm3, %v1493_v18  ;;  %1589 = vst.msk [vmem:[%s3907_s4 + $0xd8] sm:$0xff] %vm768_vm3, %v1494_v58  ;;  %v1507_v51 = vadd.f32 %v3315_v33, %v3107_v13  ;;  %v1508_v50 = vadd.f32 %v3315_v33, %v3111_v49  ;;  %v1509_v2 = vadd.f32 %v3315_v33, %v3115_v15 }
 0x2c2   :  { %1590 = vst.msk [vmem:[%s3907_s4 + $0xe0] sm:$0xff] %vm768_vm3, %v1495_v10  ;;  %1591 = vst.msk [vmem:[%s3907_s4 + $0xe8] sm:$0xff] %vm768_vm3, %v1496_v41  ;;  %v1510_v18 = vadd.f32 %v3315_v33, %v3119_v19  ;;  %v1511_v13 = vadd.f32 %v3315_v33, %v3123_v37  ;;  %v1512_v49 = vadd.f32 %v3315_v33, %v3127_v7  ;;  %v4249_v10 = vld [vmem:[#allocation26_spill] sm:$0xff] }
 0x2c3   :  { %1592 = vst.msk [vmem:[%s3907_s4 + $0xf0] sm:$0xff] %vm768_vm3, %v1497_v5  ;;  %1593 = vst.msk [vmem:[%s3907_s4 + $0xf8] sm:$0xff] %vm768_vm3, %v1498_v3  ;;  %v1513_v15 = vadd.f32 %v3315_v33, %v3131_v23  ;;  %v1514_v19 = vadd.f32 %v3315_v33, %v3135_v26  ;;  %v1515_v37 = vadd.f32 %v3315_v33, %v3139_v59  ;;  %v4252_v3 = vld [vmem:[#allocation33_spill] sm:$0xff] }
 0x2c4   :  { %1594 = vst.msk [vmem:[%s3907_s4 + $0x100] sm:$0xff] %vm768_vm3, %v1499_v63  ;;  %1595 = vst.msk [vmem:[%s3907_s4 + $0x108] sm:$0xff] %vm768_vm3, %v1500_v61  ;;  %v1516_v7 = vadd.f32 %v3315_v33, %v3143_v35  ;;  %v1517_v23 = vadd.f32 %v3315_v33, %v3147_v17  ;;  %v1518_v26 = vadd.f32 %v3315_v33, %v3151_v43  ;;  %v4253_v63 = vld [vmem:[#allocation30_spill] sm:$0xff]  ;;  %v4254_v61 = vld [vmem:[#allocation32_spill] sm:$0xff] }
 0x2c5   :  { %1596 = vst.msk [vmem:[%s3907_s4 + $0x110] sm:$0xff] %vm768_vm3, %v1501_v1  ;;  %1597 = vst.msk [vmem:[%s3907_s4 + $0x118] sm:$0xff] %vm768_vm3, %v1502_v55  ;;  %v1519_v59 = vadd.f32 %v3315_v33, %v3155_v47  ;;  %v1520_v35 = vadd.f32 %v3315_v33, %v3159_v27  ;;  %v1521_v17 = vadd.f32 %v3315_v33, %v3163_v31  ;;  %v4255_v55 = vld [vmem:[#allocation35_spill] sm:$0xff] }
 0x2c6   :  { %1598 = vst.msk [vmem:[%s3907_s4 + $0x120] sm:$0xff] %vm768_vm3, %v1503_v62  ;;  %1599 = vst.msk [vmem:[%s3907_s4 + $0x128] sm:$0xff] %vm768_vm3, %v1504_v11  ;;  %v1522_v43 = vadd.f32 %v3315_v33, %v3167_v25  ;;  %v1523_v47 = vadd.f32 %v3315_v33, %v3171_v29  ;;  %v1524_v27 = vadd.f32 %v3315_v33, %v3175_v40  ;;  %v4256_v62 = vld [vmem:[#allocation38_spill] sm:$0xff] }
 0x2c7   :  { %1600 = vst.msk [vmem:[%s3907_s4 + $0x130] sm:$0xff] %vm768_vm3, %v1505_v45  ;;  %1601 = vst.msk [vmem:[%s3907_s4 + $0x138] sm:$0xff] %vm768_vm3, %v1506_v28  ;;  %v1525_v31 = vadd.f32 %v3315_v33, %v3179_v48  ;;  %v1526_v25 = vadd.f32 %v3315_v33, %v3183_v36  ;;  %v1527_v29 = vadd.f32 %v3315_v33, %v3187_v44  ;;  %v4257_v45 = vld [vmem:[#allocation34_spill] sm:$0xff] }
 0x2c8   :  { %1602 = vst.msk [vmem:[%s3907_s4 + $0x140] sm:$0xff] %vm768_vm3, %v1507_v51  ;;  %1603 = vst.msk [vmem:[%s3907_s4 + $0x148] sm:$0xff] %vm768_vm3, %v1508_v50  ;;  %v1528_v40 = vadd.f32 %v3315_v33, %v3191_v56  ;;  %v1529_v48 = vadd.f32 %v3315_v33, %v3195_v0  ;;  %v1530_v36 = vadd.f32 %v3315_v33, %v3199_v52  ;;  %v4259_v50 = vld [vmem:[#allocation41_spill] sm:$0xff] }
 0x2c9   :  { %1604 = vst.msk [vmem:[%s3907_s4 + $0x150] sm:$0xff] %vm768_vm3, %v1509_v2  ;;  %1605 = vst.msk [vmem:[%s3907_s4 + $0x158] sm:$0xff] %vm768_vm3, %v1510_v18  ;;  %v1531_v44 = vadd.f32 %v3315_v33, %v3203_v60  ;;  %v1532_v56 = vadd.f32 %v3315_v33, %v3207_v8  ;;  %v1533_v0 = vadd.f32 %v3315_v33, %v3211_v16 }
 0x2ca   :  { %1606 = vst.msk [vmem:[%s3907_s4 + $0x160] sm:$0xff] %vm768_vm3, %v1511_v13  ;;  %1607 = vst.msk [vmem:[%s3907_s4 + $0x168] sm:$0xff] %vm768_vm3, %v1512_v49  ;;  %v1534_v52 = vadd.f32 %v3315_v33, %v3215_v4  ;;  %v1535_v60 = vadd.f32 %v3315_v33, %v3219_v12  ;;  %v1536_v8 = vadd.f32 %v3315_v33, %v3223_v32  ;;  %v4247_v12 = vld [vmem:[#allocation27_spill] sm:$0xff] }
 0x2cb   :  { %1608 = vst.msk [vmem:[%s3907_s4 + $0x170] sm:$0xff] %vm768_vm3, %v1513_v15  ;;  %1609 = vst.msk [vmem:[%s3907_s4 + $0x178] sm:$0xff] %vm768_vm3, %v1514_v19  ;;  %v1537_v16 = vadd.f32 %v3315_v33, %v3227_v46  ;;  %v1538_v4 = vadd.f32 %v3315_v33, %v3231_v20  ;;  %v1539_v32 = vadd.f32 %v3315_v33, %v4247_v12  ;;  %v4261_v15 = vld [vmem:[#allocation39_spill] sm:$0xff] }
 0x2cc   :  { %1610 = vst.msk [vmem:[%s3907_s4 + $0x180] sm:$0xff] %vm768_vm3, %v1515_v37  ;;  %1611 = vst.msk [vmem:[%s3907_s4 + $0x188] sm:$0xff] %vm768_vm3, %v1516_v7  ;;  %v1540_v46 = vadd.f32 %v3315_v33, %v3242_v14  ;;  %v1541_v20 = vadd.f32 %v3315_v33, %v3246_v54  ;;  %v1542_v58 = vadd.f32 %v3315_v33, %v3250_v6  ;;  %v4248_v54 = vld [vmem:[#allocation29_spill] sm:$0xff] }
 0x2cd   :  { %1612 = vst.msk [vmem:[%s3907_s4 + $0x190] sm:$0xff] %vm768_vm3, %v1517_v23  ;;  %1613 = vst.msk [vmem:[%s3907_s4 + $0x198] sm:$0xff] %vm768_vm3, %v1518_v26  ;;  %v1543_v14 = vadd.f32 %v3315_v33, %v3254_v42  ;;  %v1544_v6 = vadd.f32 %v3315_v33, %v4248_v54  ;;  %v1545_v41 = vadd.f32 %v3315_v33, %v4249_v10  ;;  %v4251_v42 = vld [vmem:[#allocation31_spill] sm:$0xff] }
 0x2ce   :  { %1614 = vst.msk [vmem:[%s3907_s4 + $0x1a0] sm:$0xff] %vm768_vm3, %v1519_v59  ;;  %1615 = vst.msk [vmem:[%s3907_s4 + $0x1a8] sm:$0xff] %vm768_vm3, %v1520_v35  ;;  %v1546_v5 = vadd.f32 %v3315_v33, %v4250_v30  ;;  %v1547_v21 = vadd.f32 %v3315_v33, %v4251_v42  ;;  %v1548_v24 = vadd.f32 %v3315_v33, %v4252_v3 }
 0x2cf   :  { %1616 = vst.msk [vmem:[%s3907_s4 + $0x1b0] sm:$0xff] %vm768_vm3, %v1521_v17  ;;  %1617 = vst.msk [vmem:[%s3907_s4 + $0x1b8] sm:$0xff] %vm768_vm3, %v1522_v43  ;;  %v1549_v34 = vadd.f32 %v3315_v33, %v4253_v63  ;;  %v1550_v9 = vadd.f32 %v3315_v33, %v4254_v61  ;;  %v1551_v1 = vadd.f32 %v3315_v33, %v3287_v22  ;;  %v4258_v22 = vld [vmem:[#allocation36_spill] sm:$0xff] }
 0x2d0   :  { %1618 = vst.msk [vmem:[%s3907_s4 + $0x1c0] sm:$0xff] %vm768_vm3, %v1523_v47  ;;  %1619 = vst.msk [vmem:[%s3907_s4 + $0x1c8] sm:$0xff] %vm768_vm3, %v1524_v27  ;;  %v1552_v39 = vadd.f32 %v3315_v33, %v4255_v55  ;;  %v1553_v11 = vadd.f32 %v3315_v33, %v4256_v62  ;;  %v1554_v28 = vadd.f32 %v3315_v33, %v4257_v45 }
 0x2d1   :  { %1620 = vst.msk [vmem:[%s3907_s4 + $0x1d0] sm:$0xff] %vm768_vm3, %v1525_v31  ;;  %1621 = vst.msk [vmem:[%s3907_s4 + $0x1d8] sm:$0xff] %vm768_vm3, %v1526_v25  ;;  %v1555_v51 = vadd.f32 %v3315_v33, %v4258_v22  ;;  %v1556_v2 = vadd.f32 %v3315_v33, %v4259_v50  ;;  %v1557_v18 = vadd.f32 %v3315_v33, %v3311_v53 }
 0x2d2   :  { %1622 = vst.msk [vmem:[%s3907_s4 + $0x1e0] sm:$0xff] %vm768_vm3, %v1527_v29  ;;  %1623 = vst.msk [vmem:[%s3907_s4 + $0x1e8] sm:$0xff] %vm768_vm3, %v1528_v40  ;;  %v1558_v13 = vadd.f32 %v3315_v33, %v3319_v57  ;;  %v1559_v53 = vadd.f32 %v3315_v33, %v3323_v38  ;;  %v4260_v57 = vld [vmem:[#allocation45_spill] sm:$0xff]  ;;  %v1561_v19 = vadd.f32 %v3315_v33, %v4261_v15 }
 0x2d3   :  { %1624 = vst.msk [vmem:[%s3907_s4 + $0x1f0] sm:$0xff] %vm768_vm3, %v1529_v48  ;;  %1625 = vst.msk [vmem:[%s3907_s4 + $0x1f8] sm:$0xff] %vm768_vm3, %v1530_v36  ;;  %v1560_v49 = vadd.f32 %v3315_v33, %v4260_v57 }
 0x2d4   :  { %1626 = vst.msk [vmem:[%s3907_s4 + $0x200] sm:$0xff] %vm768_vm3, %v1531_v44  ;;  %1627 = vst.msk [vmem:[%s3907_s4 + $0x208] sm:$0xff] %vm768_vm3, %v1532_v56 }
 0x2d5   :  { %1628 = vst.msk [vmem:[%s3907_s4 + $0x210] sm:$0xff] %vm768_vm3, %v1533_v0  ;;  %1629 = vst.msk [vmem:[%s3907_s4 + $0x218] sm:$0xff] %vm768_vm3, %v1534_v52 }
 0x2d6   :  { %1630 = vst.msk [vmem:[%s3907_s4 + $0x220] sm:$0xff] %vm768_vm3, %v1535_v60  ;;  %1631 = vst.msk [vmem:[%s3907_s4 + $0x228] sm:$0xff] %vm768_vm3, %v1536_v8 }
 0x2d7   :  { %1632 = vst.msk [vmem:[%s3907_s4 + $0x230] sm:$0xff] %vm768_vm3, %v1537_v16  ;;  %1633 = vst.msk [vmem:[%s3907_s4 + $0x238] sm:$0xff] %vm768_vm3, %v1538_v4 }
 0x2d8   :  { %1634 = vst.msk [vmem:[%s3907_s4 + $0x240] sm:$0xff] %vm768_vm3, %v1539_v32  ;;  %1635 = vst.msk [vmem:[%s3907_s4 + $0x248] sm:$0xff] %vm768_vm3, %v1540_v46 }
 0x2d9   :  { %1636 = vst.msk [vmem:[%s3907_s4 + $0x250] sm:$0xff] %vm768_vm3, %v1541_v20  ;;  %1637 = vst.msk [vmem:[%s3907_s4 + $0x258] sm:$0xff] %vm768_vm3, %v1542_v58 }
 0x2da   :  { %1638 = vst.msk [vmem:[%s3907_s4 + $0x260] sm:$0xff] %vm768_vm3, %v1543_v14  ;;  %1639 = vst.msk [vmem:[%s3907_s4 + $0x268] sm:$0xff] %vm768_vm3, %v1544_v6 }
 0x2db   :  { %1640 = vst.msk [vmem:[%s3907_s4 + $0x270] sm:$0xff] %vm768_vm3, %v1545_v41  ;;  %1641 = vst.msk [vmem:[%s3907_s4 + $0x278] sm:$0xff] %vm768_vm3, %v1546_v5 }
 0x2dc   :  { %1642 = vst.msk [vmem:[%s3907_s4 + $0x280] sm:$0xff] %vm768_vm3, %v1547_v21  ;;  %1643 = vst.msk [vmem:[%s3907_s4 + $0x288] sm:$0xff] %vm768_vm3, %v1548_v24 }
 0x2dd   :  { %1644 = vst.msk [vmem:[%s3907_s4 + $0x290] sm:$0xff] %vm768_vm3, %v1549_v34  ;;  %1645 = vst.msk [vmem:[%s3907_s4 + $0x298] sm:$0xff] %vm768_vm3, %v1550_v9 }
 0x2de   :  { %1646 = vst.msk [vmem:[%s3907_s4 + $0x2a0] sm:$0xff] %vm768_vm3, %v1551_v1  ;;  %1647 = vst.msk [vmem:[%s3907_s4 + $0x2a8] sm:$0xff] %vm768_vm3, %v1552_v39 }
 0x2df   :  { %1648 = vst.msk [vmem:[%s3907_s4 + $0x2b0] sm:$0xff] %vm768_vm3, %v1553_v11  ;;  %1649 = vst.msk [vmem:[%s3907_s4 + $0x2b8] sm:$0xff] %vm768_vm3, %v1554_v28 }
 0x2e0   :  { %1650 = vst.msk [vmem:[%s3907_s4 + $0x2c0] sm:$0xff] %vm768_vm3, %v1555_v51  ;;  %1651 = vst.msk [vmem:[%s3907_s4 + $0x2c8] sm:$0xff] %vm768_vm3, %v1556_v2 }
 0x2e1   :  { %1652 = vst.msk [vmem:[%s3907_s4 + $0x2d0] sm:$0xff] %vm768_vm3, %v1557_v18  ;;  %1653 = vst.msk [vmem:[%s3907_s4 + $0x2d8] sm:$0xff] %vm768_vm3, %v1558_v13 }
 0x2e2   :  { %1654 = vst.msk [vmem:[%s3907_s4 + $0x2e0] sm:$0xff] %vm768_vm3, %v1559_v53  ;;  %1655 = vst.msk [vmem:[%s3907_s4 + $0x2e8] sm:$0xff] %vm768_vm3, %v1560_v49 }
 0x2e3   :  { %1656 = vst.msk [vmem:[%s3907_s4 + $0x2f0] sm:$0x3] %vm956_vm4, %v1561_v19 }

// kernel: squeeze.2
= control target key start
LH: loop header
LB: loop body
LE: loop exit
PB: predicated region body
PF: predicated region fallthrough
CT: control target
= control target key end

     0   :  { %s77_s0 = inlined_call_operand.vmem [shape: f32[64], index: 0, kind: input, shape index: {}]   ;;  %s78_s1 = inlined_call_operand.hbm [shape: f32[2,32,1,1], index: 1, kind: output, shape index: {}]  }
   0x1   :  { %v6_v0 = vld [vmem:[%s77_s0] sm:$0x1] }
   0x2   :  { %2 = vsyncpa [#allocation1], 0  ;;  %7 = vst [vmem:[#allocation3] sm:$0x1] %v6_v0  ;;  %vm9_vm0 = vcmask 261120   ;;  %s59_s0 = smov 96  }
   0x3   :  { %s60_s8 = smov [#allocation0]  }
   0x4   :  { %s29_s9 = sshll.u32 %s60_s8, 4  ;;  %s30_s9 = int_to_ptr.vmem [resolvable:$true] %s29_s9 }
   0x5   :  { %s37_s10 = scalar_lea.vmem %s30_s9, 32  ;;  %p42_p1 = scmp.lt.s32.totalorder %s30_s9, %s30_s9 }
   0x6   :  { %p38_p0 = scmp.ne.s32.totalorder %s30_s9, %s37_s10  ;;  %p43_p2 = scmp.lt.s32.totalorder %s37_s10, %s37_s10 }
   0x8   :  { %p44_p3 = por %p43_p2, %p42_p1 }
   0x9   :  { %v11_v1 = vld [vmem:[#allocation3] sm:$0x1]  }
   0xa   :  { %v8_v2 = vld [vmem:[#allocation3] sm:$0x1]   ;;  %12 = vrot.lane.b32.xlu0 %v11_v1, %s59_s0  ;;  %p45_p4 = pnand %p44_p3, %p38_p0 }
   0xb   :  { %10 = vst.msk [vmem:[#allocation2] sm:$0x1] %vm9_vm0, %v8_v2  }
  0x7c   :  { %v13_v3 = vpop.permute.xlu0 %12  }
  0x7d   :  { %16 = vst.msk [vmem:[#allocation2 + $0x1] sm:$0x1] %vm9_vm0, %v13_v3  }
  0x84   :  { %v21_v4 = vld [vmem:[#allocation2] sm:$0x3] }
  0x85   :  { %24 = vst [vmem:[#allocation0] sm:$0x3] %v21_v4 }
  0x86   :  { %48 = shalt.err (!%p45_p4)
}
  0x87   :  { %32 = dma.vmem_to_hbm [thread:$0]  %s30_s9, 32, %s78_s1, [#allocation1]  }
  0x88   :  { %57 = dma.done.wait [#allocation1], 32  }
  0x89   :  { %58 = vsyncadd [#allocation1], 4294967264 }
  0x8a   :  { %34 = vsyncpa [#allocation1], 1 }

// kernel: squeeze.3
= control target key start
LH: loop header
LB: loop body
LE: loop exit
PB: predicated region body
PF: predicated region fallthrough
CT: control target
= control target key end

     0   :  { %s77_s0 = inlined_call_operand.vmem [shape: f32[64], index: 0, kind: input, shape index: {}]   ;;  %s78_s1 = inlined_call_operand.hbm [shape: f32[2,32,1], index: 1, kind: output, shape index: {}]  }
   0x1   :  { %v6_v0 = vld [vmem:[%s77_s0] sm:$0x1] }
   0x2   :  { %2 = vsyncpa [#allocation1], 0  ;;  %7 = vst [vmem:[#allocation3] sm:$0x1] %v6_v0  ;;  %vm9_vm0 = vcmask 261120   ;;  %s59_s0 = smov 96  }
   0x3   :  { %s60_s8 = smov [#allocation0]  }
   0x4   :  { %s29_s9 = sshll.u32 %s60_s8, 4  ;;  %s30_s9 = int_to_ptr.vmem [resolvable:$true] %s29_s9 }
   0x5   :  { %s37_s10 = scalar_lea.vmem %s30_s9, 32  ;;  %p42_p1 = scmp.lt.s32.totalorder %s30_s9, %s30_s9 }
   0x6   :  { %p38_p0 = scmp.ne.s32.totalorder %s30_s9, %s37_s10  ;;  %p43_p2 = scmp.lt.s32.totalorder %s37_s10, %s37_s10 }
   0x8   :  { %p44_p3 = por %p43_p2, %p42_p1 }
   0x9   :  { %v11_v1 = vld [vmem:[#allocation3] sm:$0x1]  }
   0xa   :  { %v8_v2 = vld [vmem:[#allocation3] sm:$0x1]   ;;  %12 = vrot.lane.b32.xlu0 %v11_v1, %s59_s0  ;;  %p45_p4 = pnand %p44_p3, %p38_p0 }
   0xb   :  { %10 = vst.msk [vmem:[#allocation2] sm:$0x1] %vm9_vm0, %v8_v2  }
  0x7c   :  { %v13_v3 = vpop.permute.xlu0 %12  }
  0x7d   :  { %16 = vst.msk [vmem:[#allocation2 + $0x1] sm:$0x1] %vm9_vm0, %v13_v3  }
  0x84   :  { %v21_v4 = vld [vmem:[#allocation2] sm:$0x3] }
  0x85   :  { %24 = vst [vmem:[#allocation0] sm:$0x3] %v21_v4 }
  0x86   :  { %48 = shalt.err (!%p45_p4)
}
  0x87   :  { %32 = dma.vmem_to_hbm [thread:$0]  %s30_s9, 32, %s78_s1, [#allocation1]  }
  0x88   :  { %57 = dma.done.wait [#allocation1], 32  }
  0x89   :  { %58 = vsyncadd [#allocation1], 4294967264 }
  0x8a   :  { %34 = vsyncpa [#allocation1], 1 }

// kernel: actor_forward.3
= control target key start
LH: loop header
LB: loop body
LE: loop exit
PB: predicated region body
PF: predicated region fallthrough
CT: control target
= control target key end

     0   :  { %v4364_v0 = vmov 0   ;;  %vm358_vm0 = vcmask 130048   ;;  %vm594_vm1 = vcmask 261120   ;;  %vm626_vm2 = vcmask 254976   ;;  %s5448_s1 = inlined_call_operand.vmem [shape: bf16[400,32], index: 1, kind: input, shape index: {}]   ;;  %s5449_s0 = inlined_call_operand.vmem [shape: f32[130,400], index: 0, kind: input, shape index: {}]   ;;  %s5450_s4 = inlined_call_operand.vmem [shape: bf16[250,130], index: 4, kind: input, shape index: {}]   ;;  %s5451_s2 = inlined_call_operand.vmem [shape: f32[1,32], index: 2, kind: input, shape index: {}]   ;;  %s5452_s3 = inlined_call_operand.vmem [shape: f32[1,32], index: 3, kind: input, shape index: {}]   ;;  %s5453_s5 = inlined_call_operand.vmem [shape: bf16[800,32], index: 5, kind: input, shape index: {}]   ;;  %s5454_s6 = inlined_call_operand.vmem [shape: f32[1,32], index: 6, kind: input, shape index: {}]   ;;  %s5455_s7 = inlined_call_operand.vmem [shape: f32[1,32], index: 7, kind: input, shape index: {}]   ;;  %s5456_s8 = inlined_call_operand.vmem [shape: bf16[32,5], index: 8, kind: input, shape index: {}]   ;;  %s5457_s9 = inlined_call_operand.vmem [shape: f32[32,1], index: 9, kind: input, shape index: {}]   ;;  %s5458_s11 = inlined_call_operand.vmem [shape: f32[32,1], index: 11, kind: input, shape index: {}]   ;;  %s5459_s13 = inlined_call_operand.vmem [shape: f32[2,1], index: 13, kind: input, shape index: {}]   ;;  %s5460_s10 = inlined_call_operand.vmem [shape: bf16[32,32], index: 10, kind: input, shape index: {}]   ;;  %s5461_s12 = inlined_call_operand.vmem [shape: bf16[2,32], index: 12, kind: input, shape index: {}]   ;;  %s5462_s14 = inlined_call_operand.vmem [shape: f32[64,64], index: 14, kind: input, shape index: {}]   ;;  %s5463_s15 = inlined_call_operand.vmem [shape: f32[1,64], index: 15, kind: input, shape index: {}]   ;;  %s5464_s16 = inlined_call_operand.vmem [shape: f32[2,64], index: 16, kind: output, shape index: {}]  }
   0x1   :  { %5466 = sst [smem:[#allocation5_spill]] %s5448_s1  ;;  %490 = vmatprep.subr.bf16.mxu1 %v4364_v0  ;;  %4199 = vset.pattern.permute.xlu1 %v4364_v0  ;;  %v55_v22 = vld [vmem:[%s5449_s0 + $0x8] sm:$0xff]  ;;  %v57_v26 = vld [vmem:[%s5449_s0 + $0x18] sm:$0xff]  ;;  %v54_v31 = vld [vmem:[%s5449_s0] sm:$0xff]  ;;  %vm949_vm3 = vcmask 15360   ;;  %vm998_vm4 = vcmask 1040384  }
   0x2   :  { %s5467_s23 = sld [smem:[#allocation5_spill]]  ;;  %4198 = vset.pattern.permute.xlu0 %v4364_v0  ;;  %v59_v23 = vld [vmem:[%s5449_s0 + $0x28] sm:$0xff]  ;;  %v61_v27 = vld [vmem:[%s5449_s0 + $0x38] sm:$0xff]  ;;  %v58_v32 = vld [vmem:[%s5449_s0 + $0x20] sm:$0xff]  ;;  %vm4366_vm5 = vmmov 0   ;;  %vm1291_vm6 = vcmask 257024  }
   0x3   :  { %v123_v25 = vpack.c.bf16 %v59_v23, %v55_v22  ;;  %v125_v29 = vpack.c.bf16 %v61_v27, %v57_v26  ;;  %v63_v33 = vld [vmem:[%s5449_s0 + $0x48] sm:$0xff]  ;;  %v122_v35 = vpack.c.bf16 %v58_v32, %v54_v31  ;;  %v56_v37 = vld [vmem:[%s5449_s0 + $0x10] sm:$0xff]  ;;  %v65_v40 = vld [vmem:[%s5449_s0 + $0x58] sm:$0xff]  ;;  %vm1323_vm7 = vcmask 253952  }
   0x4   :  { %v67_v34 = vld [vmem:[%s5449_s0 + $0x68] sm:$0xff]  ;;  %v60_v38 = vld [vmem:[%s5449_s0 + $0x30] sm:$0xff]  ;;  %v69_v41 = vld [vmem:[%s5449_s0 + $0x78] sm:$0xff]  ;;  %vm3115_vm8 = vcmask 258048   ;;  %vm3164_vm9 = vcmask 39936   ;;  %vm3122_vm10 = vcmask 520448  }
   0x5   :  { %418 = vmatprep.mubr.bf16.mxu0 %v123_v25  ;;  %3555 = vmatprep.mubr.msk.bf16.mxu1 %vm358_vm0, %v125_v29  ;;  %v127_v39 = vpack.c.bf16 %v67_v34, %v63_v33  ;;  %v124_v42 = vpack.c.bf16 %v60_v38, %v56_v37  ;;  %v129_v43 = vpack.c.bf16 %v69_v41, %v65_v40  ;;  %v62_v44 = vld [vmem:[%s5449_s0 + $0x40] sm:$0xff]  ;;  %v71_v46 = vld [vmem:[%s5449_s0 + $0x88] sm:$0xff]  ;;  %v64_v49 = vld [vmem:[%s5449_s0 + $0x50] sm:$0xff]  ;;  %vm3171_vm11 = vcmask 1041408  }
   0x6   :  { %v66_v45 = vld [vmem:[%s5449_s0 + $0x60] sm:$0xff]  ;;  %v75_v47 = vld [vmem:[%s5449_s0 + $0xa8] sm:$0xff]  ;;  %v68_v50 = vld [vmem:[%s5449_s0 + $0x70] sm:$0xff]  ;;  %vm3172_vm12 = vcmask 1042432   ;;  %vm3522_vm13 = vcmask 516096   ;;  %vm3446_vm15 = vcmask 523264  }
   0x7   :  { %v126_v48 = vpack.c.bf16 %v66_v45, %v62_v44  ;;  %v131_v51 = vpack.c.bf16 %v75_v47, %v71_v46  ;;  %v73_v52 = vld [vmem:[%s5449_s0 + $0x98] sm:$0xff]  ;;  %v128_v54 = vpack.c.bf16 %v68_v50, %v64_v49  ;;  %v70_v56 = vld [vmem:[%s5449_s0 + $0x80] sm:$0xff]  ;;  %v79_v58 = vld [vmem:[%s5449_s0 + $0xc8] sm:$0xff] }
   0x8   :  { %v4200_v1 = vld [vmem:[%s5467_s23 + $0x78] sm:$0xff]   ;;  %v4203_v4 = vld [vmem:[%s5467_s23 + $0x70] sm:$0xff]   ;;  %v4206_v7 = vld [vmem:[%s5467_s23 + $0x68] sm:$0xff]  }
   0x9   :  { %v4201_v2 = vld [vmem:[%s5467_s23 + $0xb8] sm:$0xff]   ;;  %3787 = vmatprep.subr.bf16.mxu0 %v4200_v1  ;;  %v4204_v5 = vld [vmem:[%s5467_s23 + $0xb0] sm:$0xff]   ;;  %v4207_v8 = vld [vmem:[%s5467_s23 + $0xa8] sm:$0xff]  }
   0xa   :  { %v4202_v3 = vld [vmem:[%s5467_s23 + $0x38] sm:$0xff]   ;;  %491 = vmatpush1.bf16.msra.mxu1 %v4201_v2  ;;  %v4205_v6 = vld [vmem:[%s5467_s23 + $0x30] sm:$0xff]   ;;  %v4208_v9 = vld [vmem:[%s5467_s23 + $0x28] sm:$0xff]  }
   0xb   :  { %3788 = vmatpush3.bf16.msra.mxu0 %v4202_v3  ;;  %492 = vmatprep.subr.bf16.mxu1 %v4364_v0  ;;  %v4209_v10 = vld [vmem:[%s5467_s23 + $0x60] sm:$0xff]   ;;  %v4212_v13 = vld [vmem:[%s5467_s23 + $0x58] sm:$0xff]   ;;  %v4215_v16 = vld [vmem:[%s5467_s23 + $0x50] sm:$0xff]  }
   0xc   :  { %3789 = vmatprep.subr.bf16.mxu0 %v4203_v4  ;;  %v4210_v11 = vld [vmem:[%s5467_s23 + $0xa0] sm:$0xff]   ;;  %v4213_v14 = vld [vmem:[%s5467_s23 + $0x98] sm:$0xff]   ;;  %v4216_v17 = vld [vmem:[%s5467_s23 + $0x90] sm:$0xff]  }
   0xd   :  { %v4211_v12 = vld [vmem:[%s5467_s23 + $0x20] sm:$0xff]   ;;  %v4214_v15 = vld [vmem:[%s5467_s23 + $0x18] sm:$0xff]   ;;  %v4217_v18 = vld [vmem:[%s5467_s23 + $0x10] sm:$0xff]  }
   0xe   :  { %493 = vmatpush1.bf16.msra.mxu1 %v4204_v5  ;;  %v4218_v19 = vld [vmem:[%s5467_s23 + $0x48] sm:$0xff]   ;;  %v4221_v24 = vld [vmem:[%s5467_s23 + $0x40] sm:$0xff]   ;;  %v77_v53 = vld [vmem:[%s5449_s0 + $0xb8] sm:$0xff] }
   0xf   :  { %3790 = vmatpush3.bf16.msra.mxu0 %v4205_v6  ;;  %494 = vmatprep.subr.bf16.mxu1 %v4364_v0  ;;  %v4219_v20 = vld [vmem:[%s5467_s23 + $0x88] sm:$0xff]   ;;  %v4222_v28 = vld [vmem:[%s5467_s23 + $0x80] sm:$0xff]   ;;  %v133_v55 = vpack.c.bf16 %v77_v53, %v73_v52  ;;  %v72_v61 = vld [vmem:[%s5449_s0 + $0x90] sm:$0xff] }
  0x10   :  { %3791 = vmatprep.subr.bf16.mxu0 %v4206_v7  ;;  %v4220_v21 = vld [vmem:[%s5467_s23 + $0x8] sm:$0xff]   ;;  %v4223_v30 = vld [vmem:[%s5467_s23] sm:$0xff]   ;;  %v76_v62 = vld [vmem:[%s5449_s0 + $0xb0] sm:$0xff] }
  0x11   :  { %v4224_v36 = vld [vmem:[%s5467_s23 + $0xc0] sm:$0xff]   ;;  %v83_v59 = vld [vmem:[%s5449_s0 + $0xe8] sm:$0xff]  ;;  %v81_v1 = vld [vmem:[%s5449_s0 + $0xd8] sm:$0xff]  ;;  %v132_v3 = vpack.c.bf16 %v76_v62, %v72_v61 }
  0x12   :  { %495 = vmatpush1.bf16.msra.mxu1 %v4207_v8  ;;  %v74_v57 = vld [vmem:[%s5449_s0 + $0xa0] sm:$0xff]  ;;  %v135_v63 = vpack.c.bf16 %v83_v59, %v79_v58  ;;  %v85_v2 = vld [vmem:[%s5449_s0 + $0xf8] sm:$0xff]  ;;  %v87_v7 = vld [vmem:[%s5449_s0 + $0x108] sm:$0xff] }
  0x13   :  { %3792 = vmatpush3.bf16.msra.mxu0 %v4208_v9  ;;  %496 = vmatprep.subr.bf16.mxu1 %v4364_v0  ;;  %v130_v60 = vpack.c.bf16 %v74_v57, %v70_v56  ;;  %v137_v4 = vpack.c.bf16 %v85_v2, %v81_v1  ;;  %v78_v5 = vld [vmem:[%s5449_s0 + $0xc0] sm:$0xff]  ;;  %v91_v8 = vld [vmem:[%s5449_s0 + $0x128] sm:$0xff]  ;;  %v88_v22 = vld [vmem:[%s5449_s0 + $0x110] sm:$0xff] }
  0x14   :  { %3793 = vmatprep.subr.bf16.mxu0 %v4209_v10  ;;  %v82_v6 = vld [vmem:[%s5449_s0 + $0xe0] sm:$0xff]  ;;  %v80_v10 = vld [vmem:[%s5449_s0 + $0xd0] sm:$0xff]  ;;  %v97_v25 = vld [vmem:[%s5449_s0 + $0x158] sm:$0xff] }
  0x15   :  { %v134_v9 = vpack.c.bf16 %v82_v6, %v78_v5  ;;  %v92_v23 = vld [vmem:[%s5449_s0 + $0x130] sm:$0xff]  ;;  %v101_v26 = vld [vmem:[%s5449_s0 + $0x178] sm:$0xff]  ;;  %v94_v29 = vld [vmem:[%s5449_s0 + $0x140] sm:$0xff] }
  0x16   :  { %497 = vmatpush1.bf16.msra.mxu1 %v4210_v11  ;;  %v84_v11 = vld [vmem:[%s5449_s0 + $0xf0] sm:$0xff]  ;;  %v140_v27 = vpack.c.bf16 %v92_v23, %v88_v22  ;;  %v103_v31 = vld [vmem:[%s5449_s0 + $0x188] sm:$0xff]  ;;  %v105_v37 = vld [vmem:[%s5449_s0 + $0x198] sm:$0xff] }
  0x17   :  { %3794 = vmatpush3.bf16.msra.mxu0 %v4211_v12  ;;  %498 = vmatprep.subr.bf16.mxu1 %v4364_v0  ;;  %v139_v12 = vpack.c.bf16 %v91_v8, %v87_v7  ;;  %v107_v32 = vld [vmem:[%s5449_s0 + $0x1a8] sm:$0xff]  ;;  %v96_v34 = vld [vmem:[%s5449_s0 + $0x150] sm:$0xff]  ;;  %v109_v38 = vld [vmem:[%s5449_s0 + $0x1b8] sm:$0xff] }
  0x18   :  { %3795 = vmatprep.subr.bf16.mxu0 %v4212_v13  ;;  %v89_v13 = vld [vmem:[%s5449_s0 + $0x118] sm:$0xff]  ;;  %v149_v40 = vpack.c.bf16 %v109_v38, %v105_v37  ;;  %v102_v41 = vld [vmem:[%s5449_s0 + $0x180] sm:$0xff]  ;;  %v115_v44 = vld [vmem:[%s5449_s0 + $0x1e8] sm:$0xff] }
  0x19   :  { %v104_v46 = vld [vmem:[%s5449_s0 + $0x190] sm:$0xff]  ;;  %v113_v49 = vld [vmem:[%s5449_s0 + $0x1d8] sm:$0xff]  ;;  %v110_v53 = vld [vmem:[%s5449_s0 + $0x1c0] sm:$0xff] }
  0x1a   :  { %499 = vmatpush1.bf16.msra.mxu1 %v4213_v14  ;;  %v93_v14 = vld [vmem:[%s5449_s0 + $0x138] sm:$0xff]  ;;  %v108_v47 = vld [vmem:[%s5449_s0 + $0x1b0] sm:$0xff] }
  0x1b   :  { %3796 = vmatpush3.bf16.msra.mxu0 %v4214_v15  ;;  %500 = vmatprep.subr.bf16.mxu1 %v4364_v0  ;;  %v136_v15 = vpack.c.bf16 %v84_v11, %v80_v10  ;;  %v117_v50 = vld [vmem:[%s5449_s0 + $0x1f8] sm:$0xff]  ;;  %v112_v57 = vld [vmem:[%s5449_s0 + $0x1d0] sm:$0xff] }
  0x1c   :  { %3797 = vmatprep.subr.bf16.mxu0 %v4215_v16  ;;  %v141_v16 = vpack.c.bf16 %v93_v14, %v89_v13  ;;  %v153_v52 = vpack.c.bf16 %v117_v50, %v113_v49  ;;  %v116_v58 = vld [vmem:[%s5449_s0 + $0x1f0] sm:$0xff] }
  0x1d   :  { %v152_v61 = vpack.c.bf16 %v116_v58, %v112_v57  ;;  %v120_v2 = vld [vmem:[%s5449_s0 + $0x210] sm:$0x3] }
  0x1e   :  { %501 = vmatpush1.bf16.msra.mxu1 %v4216_v17  ;;  %v86_v17 = vld [vmem:[%s5449_s0 + $0x100] sm:$0xff] }
  0x1f   :  { %3798 = vmatpush3.bf16.msra.mxu0 %v4217_v18  ;;  %502 = vmatprep.subr.bf16.mxu1 %v4364_v0  ;;  %v90_v18 = vld [vmem:[%s5449_s0 + $0x120] sm:$0xff] }
  0x20   :  { %3799 = vmatprep.subr.bf16.mxu0 %v4218_v19  ;;  %v95_v19 = vld [vmem:[%s5449_s0 + $0x148] sm:$0xff] }
  0x22   :  { %503 = vmatpush1.bf16.msra.mxu1 %v4219_v20  ;;  %v99_v20 = vld [vmem:[%s5449_s0 + $0x168] sm:$0xff] }
  0x23   :  { %3800 = vmatpush3.bf16.msra.mxu0 %v4220_v21  ;;  %504 = vmatprep.subr.bf16.mxu1 %v4364_v0  ;;  %v138_v21 = vpack.c.bf16 %v90_v18, %v86_v17 }
  0x24   :  { %3801 = vmatprep.subr.bf16.mxu0 %v4221_v24  ;;  %v143_v24 = vpack.c.bf16 %v99_v20, %v95_v19 }
  0x26   :  { %505 = vmatpush1.bf16.msra.mxu1 %v4222_v28  ;;  %v145_v28 = vpack.c.bf16 %v101_v26, %v97_v25 }
  0x27   :  { %3802 = vmatpush3.bf16.msra.mxu0 %v4223_v30  ;;  %520 = vmatprep.subr.bf16.mxu1 %v4364_v0  ;;  %v98_v30 = vld [vmem:[%s5449_s0 + $0x160] sm:$0xff] }
  0x28   :  { %1002 = vmatprep.subr.bf16.mxu0 %v4364_v0  ;;  %v142_v33 = vpack.c.bf16 %v98_v30, %v94_v29 }
  0x2a   :  { %419 = vmatmul.mubr.bf16.vlgmr.msra.gmra.mxu0 %v122_v35  ;;  %521 = vmatpush2.bf16.msra.mxu1 %v4224_v36  ;;  %v100_v35 = vld [vmem:[%s5449_s0 + $0x170] sm:$0xff]  ;;  %v147_v36 = vpack.c.bf16 %v107_v32, %v103_v31 }
  0x2b   :  { %426 = vmatprep.mubr.bf16.mxu0 %v127_v39  ;;  %v144_v39 = vpack.c.bf16 %v100_v35, %v96_v34 }
  0x2d   :  { %523 = vmatmul.mubr.bf16.vlgmr.msra.gmra.mxu1 %v124_v42  ;;  %v106_v42 = vld [vmem:[%s5449_s0 + $0x1a0] sm:$0xff] }
  0x2e   :  { %3556 = vmatprep.mubr.msk.bf16.mxu1 %vm358_vm0, %v129_v43  ;;  %v111_v43 = vld [vmem:[%s5449_s0 + $0x1c8] sm:$0xff]  ;;  %v146_v45 = vpack.c.bf16 %v106_v42, %v102_v41 }
  0x32   :  { %427 = vmatmul.mubr.bf16.gmra.mxu0 %v126_v48  ;;  %v151_v48 = vpack.c.bf16 %v115_v44, %v111_v43 }
  0x33   :  { %434 = vmatprep.mubr.bf16.mxu0 %v131_v51  ;;  %v148_v51 = vpack.c.bf16 %v108_v47, %v104_v46 }
  0x35   :  { %531 = vmatmul.mubr.bf16.gmra.mxu1 %v128_v54  ;;  %v114_v54 = vld [vmem:[%s5449_s0 + $0x1e0] sm:$0xff] }
  0x36   :  { %3557 = vmatprep.mubr.msk.bf16.mxu1 %vm358_vm0, %v133_v55  ;;  %v119_v55 = vld [vmem:[%s5449_s0 + $0x208] sm:$0x3]  ;;  %v150_v56 = vpack.c.bf16 %v114_v54, %v110_v53 }
  0x37   :  { %v155_v59 = vpack.c.bf16 %v119_v55, %v119_v55 }
  0x3a   :  { %435 = vmatmul.mubr.bf16.gmra.mxu0 %v130_v60  ;;  %v121_v60 = vld [vmem:[%s5449_s0 + $0x218] sm:$0x3] }
  0x3b   :  { %442 = vmatprep.mubr.bf16.mxu0 %v135_v63  ;;  %v157_v62 = vpack.c.bf16 %v121_v60, %v121_v60  ;;  %v118_v63 = vld [vmem:[%s5449_s0 + $0x200] sm:$0x3] }
  0x3c   :  { %v154_v1 = vpack.c.bf16 %v118_v63, %v118_v63 }
  0x3d   :  { %539 = vmatmul.mubr.bf16.gmra.mxu1 %v132_v3  ;;  %v156_v3 = vpack.c.bf16 %v120_v2, %v120_v2 }
  0x3e   :  { %3558 = vmatprep.mubr.msk.bf16.mxu1 %vm358_vm0, %v137_v4 }
  0x42   :  { %443 = vmatmul.mubr.bf16.gmra.mxu0 %v134_v9 }
  0x43   :  { %450 = vmatprep.mubr.bf16.mxu0 %v139_v12 }
  0x45   :  { %547 = vmatmul.mubr.bf16.gmra.mxu1 %v136_v15 }
  0x46   :  { %3559 = vmatprep.mubr.msk.bf16.mxu1 %vm358_vm0, %v141_v16 }
  0x4a   :  { %451 = vmatmul.mubr.bf16.gmra.mxu0 %v138_v21 }
  0x4b   :  { %458 = vmatprep.mubr.bf16.mxu0 %v143_v24 }
  0x4d   :  { %555 = vmatmul.mubr.bf16.gmra.mxu1 %v140_v27 }
  0x4e   :  { %3560 = vmatprep.mubr.msk.bf16.mxu1 %vm358_vm0, %v145_v28 }
  0x52   :  { %459 = vmatmul.mubr.bf16.gmra.mxu0 %v142_v33 }
  0x53   :  { %466 = vmatprep.mubr.bf16.mxu0 %v147_v36 }
  0x55   :  { %563 = vmatmul.mubr.bf16.gmra.mxu1 %v144_v39 }
  0x56   :  { %3561 = vmatprep.mubr.msk.bf16.mxu1 %vm358_vm0, %v149_v40 }
  0x5a   :  { %467 = vmatmul.mubr.bf16.gmra.mxu0 %v146_v45 }
  0x5b   :  { %474 = vmatprep.mubr.bf16.mxu0 %v151_v48 }
  0x5d   :  { %571 = vmatmul.mubr.bf16.gmra.mxu1 %v148_v51 }
  0x5e   :  { %3562 = vmatprep.mubr.msk.bf16.mxu1 %vm358_vm0, %v153_v52 }
  0x62   :  { %475 = vmatmul.mubr.bf16.gmra.mxu0 %v150_v56 }
  0x63   :  { %482 = vmatprep.mubr.bf16.mxu0 %v155_v59 }
  0x65   :  { %579 = vmatmul.mubr.bf16.gmra.mxu1 %v152_v61 }
  0x66   :  { %3563 = vmatprep.mubr.msk.bf16.mxu1 %vm358_vm0, %v157_v62 }
  0x6a   :  { %483 = vmatmul.mubr.bf16.gmra.mxu0 %v154_v1 }
  0x6d   :  { %587 = vmatmul.mubr.bf16.gmra.mxu1 %v156_v3 }
  0xea   :  { %v3803_v4 = vpop.f32.mrf.mxu0 }
  0xec   :  { %v3804_v5 = vpop.f32.mrf.mxu0 }
  0xed   :  { %v524_v6 = vpop.f32.mrf.mxu1  ;;  %v3805_v37 = vadd.f32 %v3804_v5, %v3803_v4 }
  0xee   :  { %v3806_v7 = vpop.f32.mrf.mxu0 }
  0xef   :  { %v526_v8 = vpop.f32.mrf.mxu1  ;;  %v4757_v45 = vadd.f32 %v3805_v37, %v524_v6 }
  0xf0   :  { %v3807_v9 = vpop.f32.mrf.mxu0 }
  0xf1   :  { %v527_v10 = vpop.f32.mrf.mxu1  ;;  %v3808_v34 = vadd.f32 %v3807_v9, %v3806_v7  ;;  %v595_v55 = vsel %vm594_vm1, %v4757_v45, 0.0 }
  0xf2   :  { %v3809_v11 = vpop.f32.mrf.mxu0 }
  0xf3   :  { %v529_v12 = vpop.f32.mrf.mxu1  ;;  %v4755_v41 = vadd.f32 %v3808_v34, %v527_v10 }
  0xf4   :  { %v3810_v13 = vpop.f32.mrf.mxu0 }
  0xf5   :  { %v532_v14 = vpop.f32.mrf.mxu1  ;;  %v3811_v38 = vadd.f32 %v3810_v13, %v3809_v11  ;;  %v596_v50 = vsel %vm594_vm1, %v4755_v41, 0.0 }
  0xf6   :  { %v3812_v15 = vpop.f32.mrf.mxu0  ;;  %v597_v60 = vadd.f32 %v596_v50, %v595_v55 }
  0xf7   :  { %v534_v16 = vpop.f32.mrf.mxu1  ;;  %v4759_v46 = vadd.f32 %v3811_v38, %v532_v14 }
  0xf8   :  { %v3813_v17 = vpop.f32.mrf.mxu0 }
  0xf9   :  { %v535_v18 = vpop.f32.mrf.mxu1  ;;  %v3814_v42 = vadd.f32 %v3813_v17, %v3812_v15  ;;  %v598_v56 = vsel %vm594_vm1, %v4759_v46, 0.0 }
  0xfa   :  { %v3815_v19 = vpop.f32.mrf.mxu0  ;;  %v599_v3 = vadd.f32 %v598_v56, %v597_v60 }
  0xfb   :  { %v537_v20 = vpop.f32.mrf.mxu1  ;;  %v4763_v51 = vadd.f32 %v3814_v42, %v535_v18 }
  0xfc   :  { %v3816_v21 = vpop.f32.mrf.mxu0 }
  0xfd   :  { %v540_v22 = vpop.f32.mrf.mxu1  ;;  %v3817_v47 = vadd.f32 %v3816_v21, %v3815_v19  ;;  %v600_v62 = vsel %vm594_vm1, %v4763_v51, 0.0 }
  0xfe   :  { %v3818_v23 = vpop.f32.mrf.mxu0  ;;  %v601_v9 = vadd.f32 %v600_v62, %v599_v3 }
  0xff   :  { %v542_v24 = vpop.f32.mrf.mxu1  ;;  %v4769_v57 = vadd.f32 %v3817_v47, %v540_v22 }
 0x100   :  { %v3819_v25 = vpop.f32.mrf.mxu0 }
 0x101   :  { %v543_v26 = vpop.f32.mrf.mxu1  ;;  %v3820_v52 = vadd.f32 %v3819_v25, %v3818_v23  ;;  %v602_v5 = vsel %vm594_vm1, %v4769_v57, 0.0 }
 0x102   :  { %v3821_v27 = vpop.f32.mrf.mxu0  ;;  %v603_v15 = vadd.f32 %v602_v5, %v601_v9 }
 0x103   :  { %v545_v28 = vpop.f32.mrf.mxu1  ;;  %v4773_v63 = vadd.f32 %v3820_v52, %v543_v26 }
 0x104   :  { %v3822_v29 = vpop.f32.mrf.mxu0 }
 0x105   :  { %v548_v30 = vpop.f32.mrf.mxu1  ;;  %v3823_v58 = vadd.f32 %v3822_v29, %v3821_v27  ;;  %v604_v11 = vsel %vm594_vm1, %v4773_v63, 0.0 }
 0x106   :  { %v3824_v31 = vpop.f32.mrf.mxu0  ;;  %v605_v21 = vadd.f32 %v604_v11, %v603_v15 }
 0x107   :  { %v550_v32 = vpop.f32.mrf.mxu1  ;;  %v4777_v6 = vadd.f32 %v3823_v58, %v548_v30 }
 0x108   :  { %v3825_v33 = vpop.f32.mrf.mxu0 }
 0x109   :  { %v551_v35 = vpop.f32.mrf.mxu1  ;;  %v3826_v1 = vadd.f32 %v3825_v33, %v3824_v31  ;;  %v606_v17 = vsel %vm594_vm1, %v4777_v6, 0.0 }
 0x10a   :  { %v3827_v36 = vpop.f32.mrf.mxu0  ;;  %v607_v27 = vadd.f32 %v606_v17, %v605_v21 }
 0x10b   :  { %v553_v39 = vpop.f32.mrf.mxu1  ;;  %v4781_v12 = vadd.f32 %v3826_v1, %v551_v35 }
 0x10c   :  { %v3828_v40 = vpop.f32.mrf.mxu0 }
 0x10d   :  { %v556_v43 = vpop.f32.mrf.mxu1  ;;  %v3829_v7 = vadd.f32 %v3828_v40, %v3827_v36  ;;  %v608_v23 = vsel %vm594_vm1, %v4781_v12, 0.0 }
 0x10e   :  { %v3830_v44 = vpop.f32.mrf.mxu0  ;;  %v609_v33 = vadd.f32 %v608_v23, %v607_v27 }
 0x10f   :  { %v558_v48 = vpop.f32.mrf.mxu1  ;;  %v4785_v18 = vadd.f32 %v3829_v7, %v556_v43 }
 0x110   :  { %v3831_v49 = vpop.f32.mrf.mxu0 }
 0x111   :  { %v559_v53 = vpop.f32.mrf.mxu1  ;;  %v3832_v13 = vadd.f32 %v3831_v49, %v3830_v44  ;;  %v610_v29 = vsel %vm594_vm1, %v4785_v18, 0.0 }
 0x112   :  { %v3833_v54 = vpop.f32.mrf.mxu0  ;;  %v611_v39 = vadd.f32 %v610_v29, %v609_v33  ;;  %v4227_v29 = vld [vmem:[%s5450_s4 + $0x4] ss:$8 sps:$4 sm:$0xff]  }
 0x113   :  { %v561_v59 = vpop.f32.mrf.mxu1  ;;  %v4789_v24 = vadd.f32 %v3832_v13, %v559_v53  ;;  %3596 = vmatprep.mubr.msk.bf16.mxu0 %vm949_vm3, %v4227_v29 }
 0x114   :  { %v3834_v61 = vpop.f32.mrf.mxu0 }
 0x115   :  { %v564_v2 = vpop.f32.mrf.mxu1  ;;  %v3835_v19 = vadd.f32 %v3834_v61, %v3833_v54  ;;  %v612_v35 = vsel %vm594_vm1, %v4789_v24, 0.0 }
 0x116   :  { %v3836_v4 = vpop.f32.mrf.mxu0  ;;  %v613_v47 = vadd.f32 %v612_v35, %v611_v39 }
 0x117   :  { %v566_v8 = vpop.f32.mrf.mxu1  ;;  %v4793_v30 = vadd.f32 %v3835_v19, %v564_v2 }
 0x118   :  { %v3837_v10 = vpop.f32.mrf.mxu0 }
 0x119   :  { %v567_v14 = vpop.f32.mrf.mxu1  ;;  %v3838_v25 = vadd.f32 %v3837_v10, %v3836_v4  ;;  %v614_v42 = vsel %vm594_vm1, %v4793_v30, 0.0 }
 0x11a   :  { %v3839_v16 = vpop.f32.mrf.mxu0  ;;  %v615_v54 = vadd.f32 %v614_v42, %v613_v47 }
 0x11b   :  { %v569_v20 = vpop.f32.mrf.mxu1  ;;  %v4797_v36 = vadd.f32 %v3838_v25, %v567_v14 }
 0x11c   :  { %v3840_v22 = vpop.f32.mrf.mxu0 }
 0x11d   :  { %v572_v26 = vpop.f32.mrf.mxu1  ;;  %v3841_v31 = vadd.f32 %v3840_v22, %v3839_v16  ;;  %v616_v49 = vsel %vm594_vm1, %v4797_v36, 0.0 }
 0x11e   :  { %v3842_v28 = vpop.f32.mrf.mxu0  ;;  %v617_v60 = vadd.f32 %v616_v49, %v615_v54 }
 0x11f   :  { %v574_v32 = vpop.f32.mrf.mxu1  ;;  %v4801_v43 = vadd.f32 %v3841_v31, %v572_v26 }
 0x120   :  { %v3843_v34 = vpop.f32.mrf.mxu0 }
 0x121   :  { %v3844_v37 = vadd.f32 %v3843_v34, %v3842_v28  ;;  %v575_v38 = vpop.f32.mrf.mxu1  ;;  %v618_v56 = vsel %vm594_vm1, %v4801_v43, 0.0 }
 0x122   :  { %v3845_v40 = vpop.f32.mrf.mxu0  ;;  %v619_v3 = vadd.f32 %v618_v56, %v617_v60 }
 0x123   :  { %v577_v44 = vpop.f32.mrf.mxu1  ;;  %v4805_v50 = vadd.f32 %v3844_v37, %v575_v38 }
 0x124   :  { %v3846_v48 = vpop.f32.mrf.mxu0 }
 0x125   :  { %v3847_v52 = vadd.f32 %v3846_v48, %v3845_v40  ;;  %v580_v53 = vpop.f32.mrf.mxu1  ;;  %v620_v62 = vsel %vm594_vm1, %v4805_v50, 0.0 }
 0x126   :  { %v3848_v55 = vpop.f32.mrf.mxu0  ;;  %v621_v9 = vadd.f32 %v620_v62, %v619_v3 }
 0x127   :  { %v4809_v58 = vadd.f32 %v3847_v52, %v580_v53  ;;  %v582_v59 = vpop.f32.mrf.mxu1 }
 0x128   :  { %v3849_v61 = vpop.f32.mrf.mxu0 }
 0x129   :  { %v3850_v1 = vadd.f32 %v3849_v61, %v3848_v55  ;;  %v583_v2 = vpop.f32.mrf.mxu1  ;;  %v622_v5 = vsel %vm594_vm1, %v4809_v58, 0.0 }
 0x12a   :  { %v3851_v4 = vpop.f32.mrf.mxu0  ;;  %v623_v15 = vadd.f32 %v622_v5, %v621_v9 }
 0x12b   :  { %v4815_v7 = vadd.f32 %v3850_v1, %v583_v2  ;;  %v585_v8 = vpop.f32.mrf.mxu1 }
 0x12c   :  { %v3852_v10 = vpop.f32.mrf.mxu0 }
 0x12d   :  { %v624_v11 = vsel %vm594_vm1, %v4815_v7, 0.0  ;;  %v3853_v13 = vadd.f32 %v3852_v10, %v3851_v4  ;;  %v588_v14 = vpop.f32.mrf.mxu1 }
 0x12e   :  { %v3854_v16 = vpop.f32.mrf.mxu0  ;;  %v625_v20 = vadd.f32 %v624_v11, %v623_v15 }
 0x12f   :  { %v4819_v17 = vadd.f32 %v3853_v13, %v588_v14  ;;  %v590_v19 = vpop.f32.mrf.mxu1 }
 0x130   :  { %v3855_v21 = vpop.f32.mrf.mxu0 }
 0x131   :  { %v627_v22 = vsel %vm626_vm2, %v4819_v17, 0.0  ;;  %v591_v23 = vpop.f32.mrf.mxu1 }
 0x132   :  { %v628_v25 = vadd.f32 %v627_v22, %v625_v20 }
 0x133   :  { %v592_v26 = vpop.f32.mrf.mxu1 }
 0x134   :  { %v629_v27 = vrot.slane %v628_v25, 4 }
 0x136   :  { %v630_v28 = vadd.f32 %v629_v27, %v628_v25 }
 0x138   :  { %v631_v31 = vrot.slane %v630_v28, 2 }
 0x13a   :  { %v632_v32 = vadd.f32 %v631_v31, %v630_v28 }
 0x13c   :  { %v633_v33 = vrot.slane %v632_v32, 1 }
 0x13e   :  { %v634_v34 = vadd.f32 %v633_v33, %v632_v32 }
 0x140   :  { %v4827_v35 = vmul.f32 0.0076923077, %v634_v34 }
 0x142   :  { %v637_v37 = vsub.f32 %v4757_v45, %v4827_v35  ;;  %v638_v38 = vsub.f32 %v4755_v41, %v4827_v35  ;;  %v639_v39 = vsub.f32 %v4759_v46, %v4827_v35  ;;  %v640_v40 = vsub.f32 %v4763_v51, %v4827_v35 }
 0x143   :  { %v641_v47 = vsub.f32 %v4769_v57, %v4827_v35  ;;  %v642_v49 = vsub.f32 %v4773_v63, %v4827_v35  ;;  %v643_v56 = vsub.f32 %v4777_v6, %v4827_v35  ;;  %v644_v62 = vsub.f32 %v4781_v12, %v4827_v35 }
 0x144   :  { %v654_v42 = vmul.f32 %v637_v37, %v637_v37  ;;  %v655_v44 = vmul.f32 %v638_v38, %v638_v38  ;;  %v656_v48 = vmul.f32 %v639_v39, %v639_v39  ;;  %v657_v52 = vmul.f32 %v640_v40, %v640_v40 }
 0x145   :  { %v658_v59 = vmul.f32 %v641_v47, %v641_v47  ;;  %v659_v1 = vmul.f32 %v642_v49, %v642_v49  ;;  %v645_v4 = vsub.f32 %v4785_v18, %v4827_v35  ;;  %v660_v5 = vmul.f32 %v643_v56, %v643_v56 }
 0x146   :  { %v671_v53 = vsel %vm594_vm1, %v654_v42, 0.0  ;;  %v672_v54 = vsel %vm594_vm1, %v655_v44, 0.0  ;;  %v674_v60 = vsel %vm594_vm1, %v656_v48, 0.0  ;;  %v676_v2 = vsel %vm594_vm1, %v657_v52, 0.0 }
 0x147   :  { %v673_v55 = vadd.f32 %v672_v54, %v671_v53  ;;  %v678_v8 = vsel %vm594_vm1, %v658_v59, 0.0  ;;  %v646_v10 = vsub.f32 %v4789_v24, %v4827_v35  ;;  %v661_v11 = vmul.f32 %v644_v62, %v644_v62 }
 0x148   :  { %v680_v13 = vsel %vm594_vm1, %v659_v1, 0.0  ;;  %v647_v15 = vsub.f32 %v4793_v30, %v4827_v35  ;;  %v662_v16 = vmul.f32 %v645_v4, %v645_v4  ;;  %v682_v19 = vsel %vm594_vm1, %v660_v5, 0.0 }
 0x149   :  { %v675_v61 = vadd.f32 %v674_v60, %v673_v55  ;;  %v648_v21 = vsub.f32 %v4797_v36, %v4827_v35  ;;  %v663_v22 = vmul.f32 %v646_v10, %v646_v10  ;;  %v684_v23 = vsel %vm594_vm1, %v661_v11, 0.0 }
 0x14a   :  { %v649_v26 = vsub.f32 %v4801_v43, %v4827_v35  ;;  %v664_v27 = vmul.f32 %v647_v15, %v647_v15  ;;  %v686_v28 = vsel %vm594_vm1, %v662_v16, 0.0  ;;  %v650_v31 = vsub.f32 %v4805_v50, %v4827_v35 }
 0x14b   :  { %v677_v3 = vadd.f32 %v676_v2, %v675_v61  ;;  %v665_v32 = vmul.f32 %v648_v21, %v648_v21  ;;  %v688_v33 = vsel %vm594_vm1, %v663_v22, 0.0  ;;  %v651_v37 = vsub.f32 %v4809_v58, %v4827_v35 }
 0x14c   :  { %v666_v38 = vmul.f32 %v649_v26, %v649_v26  ;;  %v690_v39 = vsel %vm594_vm1, %v664_v27, 0.0  ;;  %v652_v42 = vsub.f32 %v4815_v7, %v4827_v35  ;;  %v667_v44 = vmul.f32 %v650_v31, %v650_v31 }
 0x14d   :  { %v679_v9 = vadd.f32 %v678_v8, %v677_v3  ;;  %v692_v47 = vsel %vm594_vm1, %v665_v32, 0.0  ;;  %v653_v49 = vsub.f32 %v4819_v17, %v4827_v35  ;;  %v668_v52 = vmul.f32 %v651_v37, %v651_v37 }
 0x14e   :  { %v694_v53 = vsel %vm594_vm1, %v666_v38, 0.0  ;;  %v669_v55 = vmul.f32 %v652_v42, %v652_v42  ;;  %v696_v56 = vsel %vm594_vm1, %v667_v44, 0.0  ;;  %v716_v16 = vlaneseq }
 0x14f   :  { %v681_v14 = vadd.f32 %v680_v13, %v679_v9  ;;  %v670_v60 = vmul.f32 %v653_v49, %v653_v49  ;;  %v698_v61 = vsel %vm594_vm1, %v668_v52, 0.0 }
 0x150   :  { %v700_v1 = vsel %vm594_vm1, %v669_v55, 0.0 }
 0x151   :  { %v683_v20 = vadd.f32 %v682_v19, %v681_v14  ;;  %v702_v3 = vsel %vm626_vm2, %v670_v60, 0.0  ;;  %v4880_v19 = vshrl.u32 %v716_v16, 7  ;;  %v4237_v16 = vld [vmem:[%s5450_s4 + $0x44] ss:$8 sps:$4 sm:$0xff]  }
 0x153   :  { %v685_v25 = vadd.f32 %v684_v23, %v683_v20  ;;  %v711_v20 = vld [vmem:[%s5451_s2] sm:$0x1]  ;;  %v4886_v21 = vsub.s32 0, %v4880_v19 }
 0x155   :  { %v687_v29 = vadd.f32 %v686_v28, %v685_v25  ;;  %v738_v25 = vld [vmem:[%s5452_s3] sm:$0x1] }
 0x157   :  { %v689_v34 = vadd.f32 %v688_v33, %v687_v29 }
 0x159   :  { %v691_v40 = vadd.f32 %v690_v39, %v689_v34 }
 0x15b   :  { %v693_v48 = vadd.f32 %v692_v47, %v691_v40 }
 0x15d   :  { %v695_v54 = vadd.f32 %v694_v53, %v693_v48 }
 0x15f   :  { %v697_v59 = vadd.f32 %v696_v56, %v695_v54 }
 0x161   :  { %v699_v62 = vadd.f32 %v698_v61, %v697_v59 }
 0x163   :  { %v701_v2 = vadd.f32 %v700_v1, %v699_v62 }
 0x165   :  { %v703_v4 = vadd.f32 %v702_v3, %v701_v2 }
 0x167   :  { %v704_v5 = vrot.slane %v703_v4, 4 }
 0x169   :  { %v705_v8 = vadd.f32 %v704_v5, %v703_v4 }
 0x16b   :  { %v706_v9 = vrot.slane %v705_v8, 2 }
 0x16d   :  { %v707_v10 = vadd.f32 %v706_v9, %v705_v8  ;;  %v4365_v9 = vmov 0.0  }
 0x16e   :  { %3951 = vmatprep.subr.bf16.mxu1 %v4365_v9  ;;  %3955 = vmatprep.mubr.msk.bf16.mxu1 %vm4366_vm5, %v4365_v9 }
 0x16f   :  { %v708_v11 = vrot.slane %v707_v10, 1 }
 0x171   :  { %v709_v13 = vadd.f32 %v708_v11, %v707_v10  ;;  %v4228_v10 = vld [vmem:[%s5450_s4 + $0x14] ss:$8 sps:$4 sm:$0xff]   ;;  %v4231_v11 = vld [vmem:[%s5450_s4 + $0x24] ss:$8 sps:$4 sm:$0xff]  }
 0x173   :  { %v710_v14 = vmul.f32 0.0076923077, %v709_v13  ;;  %v4233_v13 = vld [vmem:[%s5450_s4 + $0x20] ss:$8 sps:$4 sm:$0xff]  }
 0x175   :  { %v712_v15 = vadd.f32 1e-05, %v710_v14  ;;  %v4234_v14 = vld [vmem:[%s5450_s4 + $0x34] ss:$8 sps:$4 sm:$0xff]  }
 0x177   :  { %4352 = vrsqrt.f32 %v712_v15  ;;  %v4236_v15 = vld [vmem:[%s5450_s4 + $0x30] ss:$8 sps:$4 sm:$0xff]  }
 0x184   :  { %v4353_v22 = vpop.eup %4352 }
 0x185   :  { %v714_v23 = vmul.f32 %v4353_v22, %v711_v20  ;;  %v4239_v20 = vld [vmem:[%s5450_s4 + $0x40] ss:$8 sps:$4 sm:$0xff]   ;;  %v4240_v22 = vld [vmem:[%s5450_s4 + $0x54] ss:$8 sps:$4 sm:$0xff]  }
 0x187   :  { %v719_v26 = vrot.slane %v714_v23, %v4886_v21  ;;  %v739_v27 = vmul.f32 %v714_v23, %v4827_v35  ;;  %v4242_v23 = vld [vmem:[%s5450_s4 + $0x50] ss:$8 sps:$4 sm:$0xff]  }
 0x189   :  { %v740_v28 = vsub.f32 %v738_v25, %v739_v27  ;;  %v735_v31 = vmul.f32 %v719_v26, %v4809_v58  ;;  %v736_v32 = vmul.f32 %v719_v26, %v4815_v7  ;;  %v733_v37 = vmul.f32 %v719_v26, %v4801_v43  ;;  %v4243_v25 = vld [vmem:[%s5450_s4 + $0x64] ss:$8 sps:$4 sm:$0xff]   ;;  %v4246_v27 = vld [vmem:[%s5450_s4 + $0x74] ss:$8 sps:$4 sm:$0xff]  }
 0x18a   :  { %v734_v38 = vmul.f32 %v719_v26, %v4805_v50  ;;  %v731_v44 = vmul.f32 %v719_v26, %v4793_v30  ;;  %v732_v35 = vmul.f32 %v719_v26, %v4797_v36  ;;  %v729_v7 = vmul.f32 %v719_v26, %v4785_v18 }
 0x18b   :  { %v745_v29 = vrot.slane %v740_v28, %v4886_v21  ;;  %v730_v43 = vmul.f32 %v719_v26, %v4789_v24  ;;  %v727_v30 = vmul.f32 %v719_v26, %v4777_v6  ;;  %v728_v36 = vmul.f32 %v719_v26, %v4781_v12  ;;  %v4248_v28 = vld [vmem:[%s5450_s4 + $0x70] ss:$8 sps:$4 sm:$0xff]  }
 0x18c   :  { %v725_v18 = vmul.f32 %v719_v26, %v4769_v57  ;;  %v726_v24 = vmul.f32 %v719_v26, %v4773_v63  ;;  %v723_v6 = vmul.f32 %v719_v26, %v4759_v46  ;;  %v724_v12 = vmul.f32 %v719_v26, %v4763_v51 }
 0x18d   :  { %v761_v33 = vadd.f32 %v745_v29, %v735_v31  ;;  %v762_v34 = vadd.f32 %v745_v29, %v736_v32  ;;  %v759_v40 = vadd.f32 %v745_v29, %v733_v37  ;;  %v760_v42 = vadd.f32 %v745_v29, %v734_v38  ;;  %v4251_v31 = vld [vmem:[%s5450_s4 + $0x80] ss:$8 sps:$4 sm:$0xff]   ;;  %v4252_v32 = vld [vmem:[%s5450_s4 + $0x94] ss:$8 sps:$4 sm:$0xff]  }
 0x18e   :  { %v757_v58 = vadd.f32 %v745_v29, %v731_v44  ;;  %v758_v48 = vadd.f32 %v745_v29, %v732_v35  ;;  %v755_v49 = vadd.f32 %v745_v29, %v729_v7  ;;  %v756_v52 = vadd.f32 %v745_v29, %v730_v43  ;;  %v4274_v37 = vld [vmem:[%s5453_s5 + $0x10] sm:$0xff]   ;;  %v4257_v38 = vld [vmem:[%s5450_s4 + $0xa0] ss:$8 sps:$4 sm:$0xff]  }
 0x18f   :  { %v803_v39 = vpack.c.bf16 %v762_v34, %v761_v33  ;;  %v802_v47 = vpack.c.bf16 %v760_v42, %v759_v40  ;;  %v753_v54 = vadd.f32 %v745_v29, %v727_v30  ;;  %v754_v55 = vadd.f32 %v745_v29, %v728_v36  ;;  %v4254_v33 = vld [vmem:[%s5450_s4 + $0x90] ss:$8 sps:$4 sm:$0xff]   ;;  %v4255_v34 = vld [vmem:[%s5450_s4 + $0xa4] ss:$8 sps:$4 sm:$0xff]   ;;  %v4263_v44 = vld [vmem:[%s5450_s4 + $0xc0] ss:$8 sps:$4 sm:$0xff]  }
 0x190   :  { %v801_v50 = vpack.c.bf16 %v758_v48, %v757_v58  ;;  %v800_v53 = vpack.c.bf16 %v756_v52, %v755_v49  ;;  %v751_v59 = vadd.f32 %v745_v29, %v725_v18  ;;  %v752_v60 = vadd.f32 %v745_v29, %v726_v24  ;;  %v4260_v40 = vld [vmem:[%s5450_s4 + $0xb0] ss:$8 sps:$4 sm:$0xff]   ;;  %v4261_v42 = vld [vmem:[%s5450_s4 + $0xc4] ss:$8 sps:$4 sm:$0xff]   ;;  %v4264_v35 = vld [vmem:[%s5450_s4 + $0xd4] ss:$8 sps:$4 sm:$0xff]  }
 0x191   :  { %1003 = vmatpush1.bf16.msra.mxu0 %v803_v39  ;;  %v799_v56 = vpack.c.bf16 %v754_v55, %v753_v54  ;;  %v737_v61 = vmul.f32 %v719_v26, %v4819_v17  ;;  %v749_v1 = vadd.f32 %v745_v29, %v723_v6  ;;  %v750_v2 = vadd.f32 %v745_v29, %v724_v12  ;;  %v4258_v39 = vld [vmem:[%s5450_s4 + $0xb4] ss:$8 sps:$4 sm:$0xff]   ;;  %v4267_v58 = vld [vmem:[%s5450_s4 + $0xe4] ss:$8 sps:$4 sm:$0xff]   ;;  %v4269_v48 = vld [vmem:[%s5450_s4 + $0xe0] ss:$8 sps:$4 sm:$0xff]  }
 0x192   :  { %1004 = vmatprep.subr.bf16.mxu0 %v4364_v0  ;;  %v798_v62 = vpack.c.bf16 %v752_v60, %v751_v59  ;;  %v721_v57 = vmul.f32 %v719_v26, %v4757_v45  ;;  %v722_v63 = vmul.f32 %v719_v26, %v4755_v41  ;;  %v4273_v41 = vld [vmem:[%s5453_s5 + $0x18] sm:$0xff]   ;;  %v4225_v45 = vld [vmem:[%s5450_s4] ss:$8 sps:$4 sm:$0xff]  }
 0x193   :  { %v763_v3 = vadd.f32 %v745_v29, %v737_v61  ;;  %v797_v4 = vpack.c.bf16 %v750_v2, %v749_v1  ;;  %3952 = vmatpush3.bf16.msra.mxu1 %v4273_v41  ;;  %v4245_v26 = vld [vmem:[%s5450_s4 + $0x60] ss:$8 sps:$4 sm:$0xff]   ;;  %v4270_v7 = vld [vmem:[%s5450_s4 + $0xf4] ss:$8 sps:$4 sm:$0x1f]  }
 0x194   :  { %v747_v5 = vadd.f32 %v745_v29, %v721_v57  ;;  %v748_v46 = vadd.f32 %v745_v29, %v722_v63  ;;  %3953 = vmatprep.subr.bf16.mxu1 %v4365_v9  ;;  %v4249_v29 = vld [vmem:[%s5450_s4 + $0x84] ss:$8 sps:$4 sm:$0xff]  }
 0x195   :  { %1005 = vmatpush1.bf16.msra.mxu0 %v802_v47  ;;  %v804_v51 = vpack.c.bf16 %v763_v3, %v763_v3  ;;  %v4266_v47 = vld [vmem:[%s5450_s4 + $0xd0] ss:$8 sps:$4 sm:$0xff]   ;;  %v4287_v43 = vld [vmem:[%s5453_s5 + $0x108] sm:$0xff]   ;;  %v4312_v49 = vld [vmem:[%s5453_s5 + $0x100] sm:$0xff]  }
 0x196   :  { %1006 = vmatprep.subr.bf16.mxu0 %v4364_v0  ;;  %v796_v17 = vpack.c.bf16 %v748_v46, %v747_v5  ;;  %v4276_v2 = vld [vmem:[%s5453_s5 + $0x8] sm:$0xff]   ;;  %v4277_v5 = vld [vmem:[%s5453_s5] sm:$0xff]  }
 0x197   :  { %v1000_v8 = vsel %vm998_vm4, %v804_v51, 0  ;;  %3954 = vmatpush3.bf16.msra.mxu1 %v4274_v37 }
 0x198   :  { %3959 = vmatprep.subr.bf16.mxu1 %v4365_v9 }
 0x199   :  { %1007 = vmatpush1.bf16.msra.mxu0 %v801_v50  ;;  %v4272_v50 = vld [vmem:[%s5450_s4 + $0xf0] ss:$8 sps:$4 sm:$0x1f]  }
 0x19a   :  { %1008 = vmatprep.subr.bf16.mxu0 %v4364_v0 }
 0x19d   :  { %1009 = vmatpush1.bf16.msra.mxu0 %v800_v53 }
 0x19e   :  { %1010 = vmatprep.subr.bf16.mxu0 %v4364_v0 }
 0x1a1   :  { %1011 = vmatpush1.bf16.msra.mxu0 %v799_v56 }
 0x1a2   :  { %1012 = vmatprep.subr.bf16.mxu0 %v4364_v0 }
 0x1a5   :  { %1013 = vmatpush1.bf16.msra.mxu0 %v798_v62 }
 0x1a6   :  { %1014 = vmatprep.subr.bf16.mxu0 %v4364_v0 }
 0x1a9   :  { %1015 = vmatpush1.bf16.msra.mxu0 %v797_v4 }
 0x1aa   :  { %1016 = vmatprep.subr.bf16.mxu0 %v4364_v0 }
 0x1ad   :  { %1017 = vmatpush1.bf16.msra.mxu0 %v796_v17 }
 0x1ae   :  { %1032 = vmatprep.subr.bf16.mxu0 %v4364_v0  ;;  %v4230_v0 = vld [vmem:[%s5450_s4 + $0x10] ss:$8 sps:$4 sm:$0xff]  }
 0x1b1   :  { %1033 = vmatpush2.bf16.msra.mxu0 %v1000_v8  ;;  %v4279_v8 = vld [vmem:[%s5453_s5 + $0x28] sm:$0xff]  }
 0x1b2   :  { %4079 = vmatprep.subr.bf16.mxu0 %v4365_v9 }
 0x1b4   :  { %1035 = vmatmul.mubr.bf16.vlgmr.msra.gmra.mxu0 %v4225_v45 }
 0x1b5   :  { %3597 = vmatprep.mubr.msk.bf16.mxu0 %vm949_vm3, %v4228_v10  ;;  %4080 = vmatpush3.bf16.msra.mxu0 %v4287_v43 }
 0x1b6   :  { %4081 = vmatprep.subr.bf16.mxu0 %v4365_v9 }
 0x1b9   :  { %4082 = vmatpush3.bf16.msra.mxu0 %v4312_v49 }
 0x1ba   :  { %4095 = vmatprep.subr.bf16.mxu0 %v4365_v9 }
 0x1bc   :  { %1043 = vmatmul.mubr.bf16.gmra.mxu0 %v4230_v0 }
 0x1bd   :  { %3598 = vmatprep.mubr.msk.bf16.mxu0 %vm949_vm3, %v4231_v11  ;;  %v4280_v11 = vld [vmem:[%s5453_s5 + $0x20] sm:$0xff]  }
 0x1c4   :  { %1051 = vmatmul.mubr.bf16.gmra.mxu0 %v4233_v13 }
 0x1c5   :  { %3599 = vmatprep.mubr.msk.bf16.mxu0 %vm949_vm3, %v4234_v14 }
 0x1cc   :  { %1059 = vmatmul.mubr.bf16.gmra.mxu0 %v4236_v15 }
 0x1cd   :  { %3600 = vmatprep.mubr.msk.bf16.mxu0 %vm949_vm3, %v4237_v16 }
 0x1d4   :  { %1067 = vmatmul.mubr.bf16.gmra.mxu0 %v4239_v20  ;;  %v4282_v20 = vld [vmem:[%s5453_s5 + $0x38] sm:$0xff]  }
 0x1d5   :  { %3601 = vmatprep.mubr.msk.bf16.mxu0 %vm949_vm3, %v4240_v22 }
 0x1dc   :  { %1075 = vmatmul.mubr.bf16.gmra.mxu0 %v4242_v23 }
 0x1dd   :  { %3602 = vmatprep.mubr.msk.bf16.mxu0 %vm949_vm3, %v4243_v25 }
 0x1e4   :  { %1083 = vmatmul.mubr.bf16.gmra.mxu0 %v4245_v26 }
 0x1e5   :  { %3603 = vmatprep.mubr.msk.bf16.mxu0 %vm949_vm3, %v4246_v27  ;;  %v4283_v27 = vld [vmem:[%s5453_s5 + $0x30] sm:$0xff]  }
 0x1ec   :  { %1091 = vmatmul.mubr.bf16.gmra.mxu0 %v4248_v28 }
 0x1ed   :  { %3604 = vmatprep.mubr.msk.bf16.mxu0 %vm949_vm3, %v4249_v29 }
 0x1f4   :  { %1099 = vmatmul.mubr.bf16.gmra.mxu0 %v4251_v31 }
 0x1f5   :  { %3605 = vmatprep.mubr.msk.bf16.mxu0 %vm949_vm3, %v4252_v32 }
 0x1fc   :  { %1107 = vmatmul.mubr.bf16.gmra.mxu0 %v4254_v33  ;;  %v4285_v33 = vld [vmem:[%s5453_s5 + $0x48] sm:$0xff]  }
 0x1fd   :  { %3606 = vmatprep.mubr.msk.bf16.mxu0 %vm949_vm3, %v4255_v34 }
 0x204   :  { %1115 = vmatmul.mubr.bf16.gmra.mxu0 %v4257_v38 }
 0x205   :  { %3607 = vmatprep.mubr.msk.bf16.mxu0 %vm949_vm3, %v4258_v39 }
 0x20c   :  { %1123 = vmatmul.mubr.bf16.gmra.mxu0 %v4260_v40  ;;  %v4286_v40 = vld [vmem:[%s5453_s5 + $0x40] sm:$0xff]  }
 0x20d   :  { %3608 = vmatprep.mubr.msk.bf16.mxu0 %vm949_vm3, %v4261_v42 }
 0x214   :  { %1131 = vmatmul.mubr.bf16.gmra.mxu0 %v4263_v44 }
 0x215   :  { %3609 = vmatprep.mubr.msk.bf16.mxu0 %vm949_vm3, %v4264_v35 }
 0x21c   :  { %1139 = vmatmul.mubr.bf16.gmra.mxu0 %v4266_v47  ;;  %v4289_v47 = vld [vmem:[%s5453_s5 + $0x58] sm:$0xff]  }
 0x21d   :  { %3610 = vmatprep.mubr.msk.bf16.mxu0 %vm949_vm3, %v4267_v58 }
 0x224   :  { %1147 = vmatmul.mubr.bf16.gmra.mxu0 %v4269_v48 }
 0x225   :  { %3611 = vmatprep.mubr.msk.bf16.mxu0 %vm949_vm3, %v4270_v7 }
 0x22c   :  { %1155 = vmatmul.mubr.bf16.gmra.mxu0 %v4272_v50  ;;  %v4290_v50 = vld [vmem:[%s5453_s5 + $0x50] sm:$0xff]  }
 0x22d   :  { %4083 = vmatprep.mubr.msk.bf16.mxu0 %vm4366_vm5, %v4365_v9 }
 0x274   :  { %v1036_v52 = vpop.f32.mrf.mxu0 }
 0x275   :  { %v3755_v30 = vpack.c.bf16 %v1036_v52, %v1036_v52 }
 0x276   :  { %v1038_v36 = vpop.f32.mrf.mxu0 }
 0x277   :  { %1292 = vst.msk [vmem:[#allocation2] sm:$0xf] %vm1291_vm6, %v3755_v30 }
 0x278   :  { %v1039_v53 = vpop.f32.mrf.mxu0 }
 0x279   :  { %v3756_v54 = vpack.c.bf16 %v1039_v53, %v1039_v53  ;;  %v4292_v53 = vld [vmem:[%s5453_s5 + $0x68] sm:$0xff]  }
 0x27a   :  { %v1041_v55 = vpop.f32.mrf.mxu0 }
 0x27b   :  { %1293 = vst.msk [vmem:[#allocation2 + $0x4] sm:$0xf] %vm1291_vm6, %v3756_v54 }
 0x27c   :  { %v1044_v18 = vpop.f32.mrf.mxu0 }
 0x27d   :  { %v3757_v24 = vpack.c.bf16 %v1044_v18, %v1044_v18 }
 0x27e   :  { %v1046_v56 = vpop.f32.mrf.mxu0 }
 0x27f   :  { %1294 = vst.msk [vmem:[#allocation2 + $0x8] sm:$0xf] %vm1291_vm6, %v3757_v24  ;;  %v4293_v56 = vld [vmem:[%s5453_s5 + $0x60] sm:$0xff]  }
 0x280   :  { %v1047_v59 = vpop.f32.mrf.mxu0 }
 0x281   :  { %v3758_v60 = vpack.c.bf16 %v1047_v59, %v1047_v59 }
 0x282   :  { %v1049_v6 = vpop.f32.mrf.mxu0  ;;  %v4278_v41 = vld [vmem:[#allocation2] sm:$0x1f]  }
 0x283   :  { %1295 = vst.msk [vmem:[#allocation2 + $0xc] sm:$0xf] %vm1291_vm6, %v3758_v60 }
 0x284   :  { %v1052_v12 = vpop.f32.mrf.mxu0 }
 0x285   :  { %v3759_v61 = vpack.c.bf16 %v1052_v12, %v1052_v12 }
 0x286   :  { %v4275_v62 = vld [vmem:[#allocation2 + $0x4] sm:$0x3e]   ;;  %v1054_v1 = vpop.f32.mrf.mxu0 }
 0x287   :  { %1296 = vst.msk [vmem:[#allocation2 + $0x10] sm:$0xf] %vm1291_vm6, %v3759_v61  ;;  %v1342_v57 = vrot.slane %v4275_v62, 1  ;;  %v4295_v61 = vld [vmem:[%s5453_s5 + $0x78] sm:$0xff]  }
 0x288   :  { %v1055_v63 = vpop.f32.mrf.mxu0 }
 0x289   :  { %v3760_v3 = vpack.c.bf16 %v1055_v63, %v1055_v63  ;;  %3956 = vmatmul.mubr.msk.bf16.vlgmr.msra.gmra.mxu1 %vm594_vm1, %v1342_v57  ;;  %v4296_v63 = vld [vmem:[%s5453_s5 + $0x70] sm:$0xff]  }
 0x28a   :  { %v1057_v4 = vpop.f32.mrf.mxu0  ;;  %3960 = vmatpush3.bf16.msra.mxu1 %v4276_v2  ;;  %3963 = vmatprep.mubr.msk.bf16.mxu1 %vm4366_vm5, %v4365_v9  ;;  %v4281_v13 = vld [vmem:[#allocation2 + $0x8] sm:$0x7c]  }
 0x28b   :  { %1297 = vst.msk [vmem:[#allocation2 + $0x14] sm:$0xf] %vm1291_vm6, %v3760_v3  ;;  %3961 = vmatprep.subr.bf16.mxu1 %v4365_v9  ;;  %v1471_v22 = vrot.slane %v4281_v13, 2 }
 0x28c   :  { %v1060_v46 = vpop.f32.mrf.mxu0 }
 0x28d   :  { %v3761_v51 = vpack.c.bf16 %v1060_v46, %v1060_v46 }
 0x28e   :  { %v1062_v17 = vpop.f32.mrf.mxu0  ;;  %3962 = vmatpush3.bf16.msra.mxu1 %v4277_v5  ;;  %v4284_v28 = vld [vmem:[#allocation2 + $0xc] sm:$0xf8]  }
 0x28f   :  { %1298 = vst.msk [vmem:[#allocation2 + $0x18] sm:$0xf] %vm1291_vm6, %v3761_v51  ;;  %3967 = vmatprep.subr.bf16.mxu1 %v4365_v9  ;;  %v1541_v34 = vrot.slane %v4284_v28, 3  ;;  %v4298_v51 = vld [vmem:[%s5453_s5 + $0x88] sm:$0xff]  }
 0x290   :  { %v1063_v45 = vpop.f32.mrf.mxu0 }
 0x291   :  { %v3762_v10 = vpack.c.bf16 %v1063_v45, %v1063_v45  ;;  %3964 = vmatmul.mubr.msk.bf16.vlgmr.msra.gmra.mxu1 %vm594_vm1, %v4278_v41 }
 0x292   :  { %v1065_v0 = vpop.f32.mrf.mxu0  ;;  %3968 = vmatpush3.bf16.msra.mxu1 %v4279_v8  ;;  %3971 = vmatprep.mubr.msk.bf16.mxu1 %vm4366_vm5, %v4365_v9 }
 0x293   :  { %1299 = vst.msk [vmem:[#allocation2 + $0x1c] sm:$0xf] %vm1291_vm6, %v3762_v10  ;;  %3969 = vmatprep.subr.bf16.mxu1 %v4365_v9  ;;  %v4299_v10 = vld [vmem:[%s5453_s5 + $0x80] sm:$0xff]  }
 0x294   :  { %v1068_v14 = vpop.f32.mrf.mxu0 }
 0x295   :  { %v3763_v15 = vpack.c.bf16 %v1068_v14, %v1068_v14  ;;  %v4301_v14 = vld [vmem:[%s5453_s5 + $0x98] sm:$0xff]  }
 0x296   :  { %v1070_v16 = vpop.f32.mrf.mxu0  ;;  %3970 = vmatpush3.bf16.msra.mxu1 %v4280_v11  ;;  %v4288_v58 = vld [vmem:[#allocation2 + $0x14] sm:$0x1f]  }
 0x297   :  { %1300 = vst.msk [vmem:[#allocation2 + $0x20] sm:$0xf] %vm1291_vm6, %v3763_v15  ;;  %3975 = vmatprep.subr.bf16.mxu1 %v4365_v9 }
 0x298   :  { %v1071_v23 = vpop.f32.mrf.mxu0 }
 0x299   :  { %v3764_v25 = vpack.c.bf16 %v1071_v23, %v1071_v23  ;;  %3972 = vmatmul.mubr.msk.bf16.vlgmr.msra.gmra.mxu1 %vm594_vm1, %v1471_v22  ;;  %v4302_v23 = vld [vmem:[%s5453_s5 + $0x90] sm:$0xff]  }
 0x29a   :  { %v1073_v26 = vpop.f32.mrf.mxu0  ;;  %3976 = vmatpush3.bf16.msra.mxu1 %v4282_v20  ;;  %3979 = vmatprep.mubr.msk.bf16.mxu1 %vm4366_vm5, %v4365_v9  ;;  %v4291_v49 = vld [vmem:[#allocation2 + $0x18] sm:$0x3e]  }
 0x29b   :  { %1301 = vst.msk [vmem:[#allocation2 + $0x24] sm:$0xf] %vm1291_vm6, %v3764_v25  ;;  %3977 = vmatprep.subr.bf16.mxu1 %v4365_v9  ;;  %v1680_v54 = vrot.slane %v4291_v49, 1 }
 0x29c   :  { %v1076_v29 = vpop.f32.mrf.mxu0 }
 0x29d   :  { %v3765_v31 = vpack.c.bf16 %v1076_v29, %v1076_v29  ;;  %v4304_v29 = vld [vmem:[%s5453_s5 + $0xa8] sm:$0xff]  }
 0x29e   :  { %v1078_v32 = vpop.f32.mrf.mxu0  ;;  %3978 = vmatpush3.bf16.msra.mxu1 %v4283_v27  ;;  %v4294_v59 = vld [vmem:[#allocation2 + $0x1c] sm:$0x7c]  }
 0x29f   :  { %1302 = vst.msk [vmem:[#allocation2 + $0x28] sm:$0xf] %vm1291_vm6, %v3765_v31  ;;  %3983 = vmatprep.subr.bf16.mxu1 %v4365_v9  ;;  %v1750_v62 = vrot.slane %v4294_v59, 2 }
 0x2a0   :  { %v1079_v37 = vpop.f32.mrf.mxu0 }
 0x2a1   :  { %v3766_v38 = vpack.c.bf16 %v1079_v37, %v1079_v37  ;;  %3980 = vmatmul.mubr.msk.bf16.vlgmr.msra.gmra.mxu1 %vm594_vm1, %v1541_v34  ;;  %v4325_v34 = vld [vmem:[%s5453_s5 + $0x128] sm:$0xff]  }
 0x2a2   :  { %v1081_v39 = vpop.f32.mrf.mxu0  ;;  %3984 = vmatpush3.bf16.msra.mxu1 %v4285_v33  ;;  %3987 = vmatprep.mubr.msk.bf16.mxu1 %vm4366_vm5, %v4365_v9  ;;  %v4297_v3 = vld [vmem:[#allocation2 + $0x20] sm:$0xf8]  }
 0x2a3   :  { %1303 = vst.msk [vmem:[#allocation2 + $0x2c] sm:$0xf] %vm1291_vm6, %v3766_v38  ;;  %3985 = vmatprep.subr.bf16.mxu1 %v4365_v9  ;;  %v1820_v17 = vrot.slane %v4297_v3, 3  ;;  %v4305_v39 = vld [vmem:[%s5453_s5 + $0xa0] sm:$0xff]   ;;  %v4314_v3 = vld [vmem:[%s5453_s5 + $0xd8] sm:$0xff]  }
 0x2a4   :  { %v1084_v42 = vpop.f32.mrf.mxu0 }
 0x2a5   :  { %v3767_v44 = vpack.c.bf16 %v1084_v42, %v1084_v42 }
 0x2a6   :  { %v1086_v35 = vpop.f32.mrf.mxu0  ;;  %3986 = vmatpush3.bf16.msra.mxu1 %v4286_v40 }
 0x2a7   :  { %1304 = vst.msk [vmem:[#allocation2 + $0x30] sm:$0xf] %vm1291_vm6, %v3767_v44  ;;  %3991 = vmatprep.subr.bf16.mxu1 %v4365_v9  ;;  %v4327_v35 = vld [vmem:[%s5453_s5 + $0x120] sm:$0xff]  }
 0x2a8   :  { %v1087_v48 = vpop.f32.mrf.mxu0 }
 0x2a9   :  { %v3768_v7 = vpack.c.bf16 %v1087_v48, %v1087_v48  ;;  %3988 = vmatmul.mubr.msk.bf16.vlgmr.msra.gmra.mxu1 %vm594_vm1, %v4288_v58  ;;  %v4307_v58 = vld [vmem:[%s5453_s5 + $0xb8] sm:$0xff]  }
 0x2aa   :  { %v1089_v43 = vpop.f32.mrf.mxu0  ;;  %3992 = vmatpush3.bf16.msra.mxu1 %v4289_v47  ;;  %3995 = vmatprep.mubr.msk.bf16.mxu1 %vm4366_vm5, %v4365_v9  ;;  %v4300_v15 = vld [vmem:[#allocation2 + $0x28] sm:$0x1f]  }
 0x2ab   :  { %1305 = vst.msk [vmem:[#allocation2 + $0x34] sm:$0xf] %vm1291_vm6, %v3768_v7  ;;  %3993 = vmatprep.subr.bf16.mxu1 %v4365_v9 }
 0x2ac   :  { %v1092_v52 = vpop.f32.mrf.mxu0 }
 0x2ad   :  { %v3769_v30 = vpack.c.bf16 %v1092_v52, %v1092_v52  ;;  %v4308_v52 = vld [vmem:[%s5453_s5 + $0xb0] sm:$0xff]  }
 0x2ae   :  { %v1094_v36 = vpop.f32.mrf.mxu0  ;;  %3994 = vmatpush3.bf16.msra.mxu1 %v4290_v50  ;;  %v4303_v25 = vld [vmem:[#allocation2 + $0x2c] sm:$0x3e]  }
 0x2af   :  { %1306 = vst.msk [vmem:[#allocation2 + $0x38] sm:$0xf] %vm1291_vm6, %v3769_v30  ;;  %3999 = vmatprep.subr.bf16.mxu1 %v4365_v9  ;;  %v1959_v31 = vrot.slane %v4303_v25, 1  ;;  %v4331_v30 = vld [vmem:[%s5453_s5 + $0x148] sm:$0xff]   ;;  %v4318_v25 = vld [vmem:[%s5453_s5 + $0xe0] sm:$0xff]  }
 0x2b0   :  { %v1095_v55 = vpop.f32.mrf.mxu0 }
 0x2b1   :  { %v3770_v18 = vpack.c.bf16 %v1095_v55, %v1095_v55  ;;  %3996 = vmatmul.mubr.msk.bf16.vlgmr.msra.gmra.mxu1 %vm594_vm1, %v1680_v54 }
 0x2b2   :  { %v1097_v24 = vpop.f32.mrf.mxu0  ;;  %4000 = vmatpush3.bf16.msra.mxu1 %v4292_v53  ;;  %4003 = vmatprep.mubr.msk.bf16.mxu1 %vm4366_vm5, %v4365_v9  ;;  %v4306_v40 = vld [vmem:[#allocation2 + $0x30] sm:$0x7c]  }
 0x2b3   :  { %1307 = vst.msk [vmem:[#allocation2 + $0x3c] sm:$0xf] %vm1291_vm6, %v3770_v18  ;;  %4001 = vmatprep.subr.bf16.mxu1 %v4365_v9  ;;  %v2029_v48 = vrot.slane %v4306_v40, 2  ;;  %v4310_v24 = vld [vmem:[%s5453_s5 + $0xc8] sm:$0xff]   ;;  %v4329_v40 = vld [vmem:[%s5453_s5 + $0x138] sm:$0xff]  }
 0x2b4   :  { %v1100_v60 = vpop.f32.mrf.mxu0 }
 0x2b5   :  { %v3771_v6 = vpack.c.bf16 %v1100_v60, %v1100_v60  ;;  %v4333_v60 = vld [vmem:[%s5453_s5 + $0x140] sm:$0xff]  }
 0x2b6   :  { %v1102_v12 = vpop.f32.mrf.mxu0  ;;  %4002 = vmatpush3.bf16.msra.mxu1 %v4293_v56  ;;  %v4309_v36 = vld [vmem:[#allocation2 + $0x34] sm:$0xf8]  }
 0x2b7   :  { %1308 = vst.msk [vmem:[#allocation2 + $0x40] sm:$0xf] %vm1291_vm6, %v3771_v6  ;;  %4007 = vmatprep.subr.bf16.mxu1 %v4365_v9  ;;  %v2099_v56 = vrot.slane %v4309_v36, 3 }
 0x2b8   :  { %v1103_v1 = vpop.f32.mrf.mxu0 }
 0x2b9   :  { %v3772_v2 = vpack.c.bf16 %v1103_v1, %v1103_v1  ;;  %4004 = vmatmul.mubr.msk.bf16.vlgmr.msra.gmra.mxu1 %vm594_vm1, %v1750_v62 }
 0x2ba   :  { %v1105_v57 = vpop.f32.mrf.mxu0  ;;  %4008 = vmatpush3.bf16.msra.mxu1 %v4295_v61  ;;  %4011 = vmatprep.mubr.msk.bf16.mxu1 %vm4366_vm5, %v4365_v9  ;;  %v4311_v61 = vld [vmem:[%s5453_s5 + $0xc0] sm:$0xff]  }
 0x2bb   :  { %1309 = vst.msk [vmem:[#allocation2 + $0x44] sm:$0xf] %vm1291_vm6, %v3772_v2  ;;  %4009 = vmatprep.subr.bf16.mxu1 %v4365_v9  ;;  %v4337_v2 = vld [vmem:[%s5453_s5 + $0x168] sm:$0xff]  }
 0x2bc   :  { %v1108_v4 = vpop.f32.mrf.mxu0 }
 0x2bd   :  { %v3773_v5 = vpack.c.bf16 %v1108_v4, %v1108_v4 }
 0x2be   :  { %v1110_v46 = vpop.f32.mrf.mxu0  ;;  %4010 = vmatpush3.bf16.msra.mxu1 %v4296_v63  ;;  %v4313_v4 = vld [vmem:[#allocation2 + $0x3c] sm:$0x1f]  }
 0x2bf   :  { %1310 = vst.msk [vmem:[#allocation2 + $0x48] sm:$0xf] %vm1291_vm6, %v3773_v5  ;;  %4015 = vmatprep.subr.bf16.mxu1 %v4365_v9 }
 0x2c0   :  { %v1111_v8 = vpop.f32.mrf.mxu0 }
 0x2c1   :  { %v3774_v41 = vpack.c.bf16 %v1111_v8, %v1111_v8  ;;  %4012 = vmatmul.mubr.msk.bf16.vlgmr.msra.gmra.mxu1 %vm594_vm1, %v1820_v17  ;;  %v4315_v8 = vld [vmem:[%s5453_s5 + $0xd0] sm:$0xff]  }
 0x2c2   :  { %v1113_v45 = vpop.f32.mrf.mxu0  ;;  %4016 = vmatpush3.bf16.msra.mxu1 %v4298_v51  ;;  %4019 = vmatprep.mubr.msk.bf16.mxu1 %vm4366_vm5, %v4365_v9  ;;  %v4339_v51 = vld [vmem:[%s5453_s5 + $0x160] sm:$0xff]  }
 0x2c3   :  { %1311 = vst.msk [vmem:[#allocation2 + $0x4c] sm:$0xf] %vm1291_vm6, %v3774_v41  ;;  %4017 = vmatprep.subr.bf16.mxu1 %v4365_v9  ;;  %v4316_v41 = vld [vmem:[#allocation2 + $0x40] sm:$0x3e]  }
 0x2c4   :  { %v1116_v0 = vpop.f32.mrf.mxu0 }
 0x2c5   :  { %v3775_v11 = vpack.c.bf16 %v1116_v0, %v1116_v0 }
 0x2c6   :  { %v1118_v13 = vpop.f32.mrf.mxu0  ;;  %4018 = vmatpush3.bf16.msra.mxu1 %v4299_v10 }
 0x2c7   :  { %1312 = vst.msk [vmem:[#allocation2 + $0x50] sm:$0xf] %vm1291_vm6, %v3775_v11  ;;  %4023 = vmatprep.subr.bf16.mxu1 %v4365_v9  ;;  %v4317_v13 = vld [vmem:[%s5453_s5 + $0xe8] sm:$0xff]  }
 0x2c8   :  { %v1119_v16 = vpop.f32.mrf.mxu0 }
 0x2c9   :  { %v3776_v20 = vpack.c.bf16 %v1119_v16, %v1119_v16  ;;  %4020 = vmatmul.mubr.msk.bf16.vlgmr.msra.gmra.mxu1 %vm594_vm1, %v4300_v15 }
 0x2ca   :  { %v1121_v22 = vpop.f32.mrf.mxu0  ;;  %4024 = vmatpush3.bf16.msra.mxu1 %v4301_v14  ;;  %4027 = vmatprep.mubr.msk.bf16.mxu1 %vm4366_vm5, %v4365_v9  ;;  %v2238_v14 = vrot.slane %v4316_v41, 1 }
 0x2cb   :  { %1313 = vst.msk [vmem:[#allocation2 + $0x54] sm:$0xf] %vm1291_vm6, %v3776_v20  ;;  %4025 = vmatprep.subr.bf16.mxu1 %v4365_v9  ;;  %v4343_v20 = vld [vmem:[%s5453_s5 + $0x188] sm:$0xff]  }
 0x2cc   :  { %v1124_v26 = vpop.f32.mrf.mxu0 }
 0x2cd   :  { %v3777_v27 = vpack.c.bf16 %v1124_v26, %v1124_v26  ;;  %v4319_v26 = vld [vmem:[#allocation2 + $0x44] sm:$0x7c]  }
 0x2ce   :  { %v1126_v28 = vpop.f32.mrf.mxu0  ;;  %4026 = vmatpush3.bf16.msra.mxu1 %v4302_v23 }
 0x2cf   :  { %1314 = vst.msk [vmem:[#allocation2 + $0x58] sm:$0xf] %vm1291_vm6, %v3777_v27  ;;  %4031 = vmatprep.subr.bf16.mxu1 %v4365_v9  ;;  %v4345_v27 = vld [vmem:[%s5453_s5 + $0x180] sm:$0xff]   ;;  %v4320_v28 = vld [vmem:[%s5453_s5 + $0xf8] sm:$0xff]  }
 0x2d0   :  { %v1127_v32 = vpop.f32.mrf.mxu0 }
 0x2d1   :  { %v3778_v33 = vpack.c.bf16 %v1127_v32, %v1127_v32  ;;  %4028 = vmatmul.mubr.msk.bf16.vlgmr.msra.gmra.mxu1 %vm594_vm1, %v1959_v31  ;;  %v4321_v32 = vld [vmem:[%s5453_s5 + $0xf0] sm:$0xff]  }
 0x2d2   :  { %v1129_v37 = vpop.f32.mrf.mxu0  ;;  %v4324_v38 = vld [vmem:[#allocation2 + $0x50] sm:$0x1f]   ;;  %4032 = vmatpush3.bf16.msra.mxu1 %v4304_v29  ;;  %4035 = vmatprep.mubr.msk.bf16.mxu1 %vm4366_vm5, %v4365_v9  ;;  %v2308_v29 = vrot.slane %v4319_v26, 2 }
 0x2d3   :  { %1315 = vst.msk [vmem:[#allocation2 + $0x5c] sm:$0xf] %vm1291_vm6, %v3778_v33  ;;  %4033 = vmatprep.subr.bf16.mxu1 %v4365_v9  ;;  %4084 = vmatmul.mubr.msk.bf16.vlgmr.msra.gmra.mxu0 %vm594_vm1, %v4324_v38  ;;  %v4322_v33 = vld [vmem:[#allocation2 + $0x48] sm:$0xf8]   ;;  %v4326_v38 = vld [vmem:[%s5453_s5 + $0x110] sm:$0xff]  }
 0x2d4   :  { %v1132_v42 = vpop.f32.mrf.mxu0  ;;  %4096 = vmatpush3.bf16.msra.mxu0 %v4325_v34  ;;  %4099 = vmatprep.mubr.msk.bf16.mxu0 %vm4366_vm5, %v4365_v9  ;;  %v4323_v34 = vld [vmem:[%s5453_s5 + $0x118] sm:$0xff]   ;;  %v2378_v37 = vrot.slane %v4322_v33, 3 }
 0x2d5   :  { %v3779_v44 = vpack.c.bf16 %v1132_v42, %v1132_v42  ;;  %4097 = vmatprep.subr.bf16.mxu0 %v4365_v9 }
 0x2d6   :  { %v1134_v47 = vpop.f32.mrf.mxu0  ;;  %4034 = vmatpush3.bf16.msra.mxu1 %v4305_v39  ;;  %v4328_v39 = vld [vmem:[#allocation2 + $0x54] sm:$0x3e]  }
 0x2d7   :  { %1316 = vst.msk [vmem:[#allocation2 + $0x60] sm:$0xf] %vm1291_vm6, %v3779_v44  ;;  %4039 = vmatprep.subr.bf16.mxu1 %v4365_v9  ;;  %v2517_v42 = vrot.slane %v4328_v39, 1  ;;  %v4332_v44 = vld [vmem:[%s5453_s5 + $0x130] sm:$0xff]   ;;  %v4335_v47 = vld [vmem:[%s5453_s5 + $0x158] sm:$0xff]  }
 0x2d8   :  { %v1135_v7 = vpop.f32.mrf.mxu0  ;;  %4098 = vmatpush3.bf16.msra.mxu0 %v4327_v35 }
 0x2d9   :  { %v3780_v43 = vpack.c.bf16 %v1135_v7, %v1135_v7  ;;  %4036 = vmatmul.mubr.msk.bf16.vlgmr.msra.gmra.mxu1 %vm594_vm1, %v2029_v48  ;;  %4111 = vmatprep.subr.bf16.mxu0 %v4365_v9  ;;  %v4338_v48 = vld [vmem:[%s5453_s5 + $0x150] sm:$0xff]  }
 0x2da   :  { %v1137_v50 = vpop.f32.mrf.mxu0  ;;  %v4330_v49 = vld [vmem:[#allocation2 + $0x58] sm:$0x7c]   ;;  %4040 = vmatpush3.bf16.msra.mxu1 %v4307_v58  ;;  %4043 = vmatprep.mubr.msk.bf16.mxu1 %vm4366_vm5, %v4365_v9 }
 0x2db   :  { %1317 = vst.msk [vmem:[#allocation2 + $0x64] sm:$0xf] %vm1291_vm6, %v3780_v43  ;;  %4041 = vmatprep.subr.bf16.mxu1 %v4365_v9  ;;  %v2587_v54 = vrot.slane %v4330_v49, 2  ;;  %v4341_v43 = vld [vmem:[%s5453_s5 + $0x178] sm:$0xff]   ;;  %v4344_v49 = vld [vmem:[%s5453_s5 + $0x170] sm:$0xff]  }
 0x2dc   :  { %v1140_v53 = vpop.f32.mrf.mxu0 }
 0x2dd   :  { %v3781_v55 = vpack.c.bf16 %v1140_v53, %v1140_v53  ;;  %4100 = vmatmul.mubr.msk.bf16.vlgmr.msra.gmra.mxu0 %vm594_vm1, %v2587_v54 }
 0x2de   :  { %v1142_v18 = vpop.f32.mrf.mxu0  ;;  %4042 = vmatpush3.bf16.msra.mxu1 %v4308_v52  ;;  %4112 = vmatpush3.bf16.msra.mxu0 %v4331_v30  ;;  %v4334_v35 = vld [vmem:[#allocation2 + $0x5c] sm:$0xf8]  }
 0x2df   :  { %1318 = vst.msk [vmem:[#allocation2 + $0x68] sm:$0xf] %vm1291_vm6, %v3781_v55  ;;  %4047 = vmatprep.subr.bf16.mxu1 %v4365_v9  ;;  %4113 = vmatprep.subr.bf16.mxu0 %v4365_v9  ;;  %v2657_v58 = vrot.slane %v4334_v35, 3 }
 0x2e0   :  { %v1143_v59 = vpop.f32.mrf.mxu0  ;;  %4115 = vmatprep.mubr.msk.bf16.mxu0 %vm4366_vm5, %v4365_v9 }
 0x2e1   :  { %v3782_v6 = vpack.c.bf16 %v1143_v59, %v1143_v59  ;;  %4044 = vmatmul.mubr.msk.bf16.vlgmr.msra.gmra.mxu1 %vm594_vm1, %v2099_v56 }
 0x2e2   :  { %v1145_v12 = vpop.f32.mrf.mxu0  ;;  %4048 = vmatpush3.bf16.msra.mxu1 %v4310_v24  ;;  %4051 = vmatprep.mubr.msk.bf16.mxu1 %vm4366_vm5, %v4365_v9 }
 0x2e3   :  { %1319 = vst.msk [vmem:[#allocation2 + $0x6c] sm:$0xf] %vm1291_vm6, %v3782_v6  ;;  %4049 = vmatprep.subr.bf16.mxu1 %v4365_v9  ;;  %4114 = vmatpush3.bf16.msra.mxu0 %v4333_v60 }
 0x2e4   :  { %v1148_v62 = vpop.f32.mrf.mxu0  ;;  %4127 = vmatprep.subr.bf16.mxu0 %v4365_v9 }
 0x2e5   :  { %v3783_v1 = vpack.c.bf16 %v1148_v62, %v1148_v62 }
 0x2e6   :  { %v1150_v57 = vpop.f32.mrf.mxu0  ;;  %v4336_v63 = vld [vmem:[#allocation2 + $0x64] sm:$0x1f]   ;;  %4050 = vmatpush3.bf16.msra.mxu1 %v4311_v61 }
 0x2e7   :  { %1320 = vst.msk [vmem:[#allocation2 + $0x70] sm:$0xf] %vm1291_vm6, %v3783_v1  ;;  %4055 = vmatprep.subr.bf16.mxu1 %v4365_v9  ;;  %4116 = vmatmul.mubr.msk.bf16.vlgmr.msra.gmra.mxu0 %vm594_vm1, %v4336_v63 }
 0x2e8   :  { %v1151_v5 = vpop.f32.mrf.mxu0  ;;  %4128 = vmatpush3.bf16.msra.mxu0 %v4337_v2  ;;  %4131 = vmatprep.mubr.msk.bf16.mxu0 %vm4366_vm5, %v4365_v9 }
 0x2e9   :  { %v3784_v46 = vpack.c.bf16 %v1151_v5, %v1151_v5  ;;  %4052 = vmatmul.mubr.msk.bf16.vlgmr.msra.gmra.mxu1 %vm594_vm1, %v4313_v4  ;;  %4129 = vmatprep.subr.bf16.mxu0 %v4365_v9 }
 0x2ea   :  { %v1153_v17 = vpop.f32.mrf.mxu0  ;;  %4056 = vmatpush3.bf16.msra.mxu1 %v4314_v3  ;;  %4059 = vmatprep.mubr.msk.bf16.mxu1 %vm4366_vm5, %v4365_v9  ;;  %v4340_v7 = vld [vmem:[#allocation2 + $0x68] sm:$0x3e]  }
 0x2eb   :  { %1321 = vst.msk [vmem:[#allocation2 + $0x74] sm:$0xf] %vm1291_vm6, %v3784_v46  ;;  %4057 = vmatprep.subr.bf16.mxu1 %v4365_v9  ;;  %v2796_v50 = vrot.slane %v4340_v7, 1 }
 0x2ec   :  { %v1156_v45 = vpop.f32.mrf.mxu0  ;;  %4130 = vmatpush3.bf16.msra.mxu0 %v4339_v51 }
 0x2ed   :  { %v3785_v10 = vpack.c.bf16 %v1156_v45, %v1156_v45  ;;  %4143 = vmatprep.subr.bf16.mxu0 %v4365_v9 }
 0x2ee   :  { %v1158_v0 = vpop.f32.mrf.mxu0  ;;  %v4342_v11 = vld [vmem:[#allocation2 + $0x6c] sm:$0x7c]   ;;  %4058 = vmatpush3.bf16.msra.mxu1 %v4315_v8 }
 0x2ef   :  { %1322 = vst.msk [vmem:[#allocation2 + $0x78] sm:$0xf] %vm1291_vm6, %v3785_v10  ;;  %4063 = vmatprep.subr.bf16.mxu1 %v4365_v9  ;;  %v2866_v16 = vrot.slane %v4342_v11, 2 }
 0x2f0   :  { %v1159_v15 = vpop.f32.mrf.mxu0 }
 0x2f1   :  { %v3786_v22 = vpack.c.bf16 %v1159_v15, %v1159_v15  ;;  %4060 = vmatmul.mubr.msk.bf16.vlgmr.msra.gmra.mxu1 %vm594_vm1, %v2238_v14  ;;  %4132 = vmatmul.mubr.msk.bf16.vlgmr.msra.gmra.mxu0 %vm594_vm1, %v2866_v16 }
 0x2f2   :  { %v1161_v23 = vpop.f32.mrf.mxu0  ;;  %4064 = vmatpush3.bf16.msra.mxu1 %v4317_v13  ;;  %4067 = vmatprep.mubr.msk.bf16.mxu1 %vm4366_vm5, %v4365_v9  ;;  %v4346_v52 = vld [vmem:[#allocation2 + $0x70] sm:$0xf8]  }
 0x2f3   :  { %1324 = vst.msk [vmem:[#allocation2 + $0x7c] sm:$0x1] %vm1323_vm7, %v3786_v22  ;;  %4065 = vmatprep.subr.bf16.mxu1 %v4365_v9  ;;  %4144 = vmatpush3.bf16.msra.mxu0 %v4343_v20  ;;  %v2936_v30 = vrot.slane %v4346_v52, 3 }
 0x2f4   :  { %4145 = vmatprep.subr.bf16.mxu0 %v4365_v9  ;;  %4147 = vmatprep.mubr.msk.bf16.mxu0 %vm4366_vm5, %v4365_v9 }
 0x2f6   :  { %4066 = vmatpush3.bf16.msra.mxu1 %v4318_v25 }
 0x2f7   :  { %4071 = vmatprep.subr.bf16.mxu1 %v4365_v9  ;;  %4146 = vmatpush3.bf16.msra.mxu0 %v4345_v27 }
 0x2f9   :  { %4068 = vmatmul.mubr.msk.bf16.vlgmr.msra.gmra.mxu1 %vm594_vm1, %v2308_v29 }
 0x2fa   :  { %v4347_v31 = vld [vmem:[#allocation2 + $0x78] sm:$0x1f]   ;;  %4072 = vmatpush3.bf16.msra.mxu1 %v4320_v28  ;;  %4075 = vmatprep.mubr.msk.bf16.mxu1 %vm4366_vm5, %v4365_v9 }
 0x2fb   :  { %4073 = vmatprep.subr.bf16.mxu1 %v4365_v9  ;;  %4148 = vmatmul.mubr.msk.bf16.vlgmr.msra.gmra.mxu0 %vm594_vm1, %v4347_v31 }
 0x2fe   :  { %4074 = vmatpush3.bf16.msra.mxu1 %v4321_v32 }
 0x2ff   :  { %4087 = vmatprep.subr.bf16.mxu1 %v4365_v9 }
 0x301   :  { %4076 = vmatmul.mubr.msk.bf16.vlgmr.msra.gmra.mxu1 %vm594_vm1, %v2378_v37 }
 0x302   :  { %4088 = vmatpush3.bf16.msra.mxu1 %v4323_v34  ;;  %4091 = vmatprep.mubr.msk.bf16.mxu1 %vm4366_vm5, %v4365_v9 }
 0x303   :  { %4089 = vmatprep.subr.bf16.mxu1 %v4365_v9 }
 0x306   :  { %4090 = vmatpush3.bf16.msra.mxu1 %v4326_v38 }
 0x307   :  { %4103 = vmatprep.subr.bf16.mxu1 %v4365_v9 }
 0x309   :  { %4092 = vmatmul.mubr.msk.bf16.vlgmr.msra.gmra.mxu1 %vm594_vm1, %v2517_v42 }
 0x30a   :  { %4104 = vmatpush3.bf16.msra.mxu1 %v4329_v40  ;;  %4107 = vmatprep.mubr.msk.bf16.mxu1 %vm4366_vm5, %v4365_v9 }
 0x30b   :  { %4105 = vmatprep.subr.bf16.mxu1 %v4365_v9 }
 0x30e   :  { %4106 = vmatpush3.bf16.msra.mxu1 %v4332_v44 }
 0x30f   :  { %4119 = vmatprep.subr.bf16.mxu1 %v4365_v9 }
 0x311   :  { %4108 = vmatmul.mubr.msk.bf16.vlgmr.msra.gmra.mxu1 %vm594_vm1, %v2657_v58 }
 0x312   :  { %4120 = vmatpush3.bf16.msra.mxu1 %v4335_v47  ;;  %4123 = vmatprep.mubr.msk.bf16.mxu1 %vm4366_vm5, %v4365_v9 }
 0x313   :  { %4121 = vmatprep.subr.bf16.mxu1 %v4365_v9 }
 0x316   :  { %4122 = vmatpush3.bf16.msra.mxu1 %v4338_v48 }
 0x317   :  { %4135 = vmatprep.subr.bf16.mxu1 %v4365_v9 }
 0x319   :  { %4124 = vmatmul.mubr.msk.bf16.vlgmr.msra.gmra.mxu1 %vm594_vm1, %v2796_v50 }
 0x31a   :  { %4136 = vmatpush3.bf16.msra.mxu1 %v4341_v43  ;;  %4139 = vmatprep.mubr.msk.bf16.mxu1 %vm4366_vm5, %v4365_v9 }
 0x31b   :  { %4137 = vmatprep.subr.bf16.mxu1 %v4365_v9 }
 0x31e   :  { %4138 = vmatpush3.bf16.msra.mxu1 %v4344_v49 }
 0x321   :  { %4140 = vmatmul.mubr.msk.bf16.vlgmr.msra.gmra.mxu1 %vm594_vm1, %v2936_v30 }
 0x349   :  { %v1392_v36 = vpop.f32.mrf.mxu1 }
 0x34b   :  { %v3957_v53 = vpop.f32.mrf.mxu1 }
 0x34d   :  { %v1395_v54 = vpop.f32.mrf.mxu1 }
 0x34f   :  { %v3958_v55 = vpop.f32.mrf.mxu1 }
 0x351   :  { %v1453_v18 = vpop.f32.mrf.mxu1 }
 0x352   :  { %v1454_v24 = vadd.f32 %v1453_v18, %v1392_v36 }
 0x353   :  { %v3965_v56 = vpop.f32.mrf.mxu1 }
 0x355   :  { %v1456_v59 = vpop.f32.mrf.mxu1 }
 0x356   :  { %v1457_v60 = vadd.f32 %v1456_v59, %v1395_v54 }
 0x357   :  { %v3966_v6 = vpop.f32.mrf.mxu1 }
 0x359   :  { %v1521_v12 = vpop.f32.mrf.mxu1 }
 0x35a   :  { %v1528_v61 = vadd.f32 %v1521_v12, %v1454_v24 }
 0x35b   :  { %v3973_v62 = vpop.f32.mrf.mxu1 }
 0x35d   :  { %v1524_v1 = vpop.f32.mrf.mxu1 }
 0x35e   :  { %v1529_v2 = vadd.f32 %v1524_v1, %v1457_v60 }
 0x35f   :  { %v3974_v57 = vpop.f32.mrf.mxu1 }
 0x361   :  { %v1591_v63 = vpop.f32.mrf.mxu1 }
 0x362   :  { %v1598_v3 = vadd.f32 %v1591_v63, %v1528_v61 }
 0x363   :  { %v3981_v4 = vpop.f32.mrf.mxu1 }
 0x365   :  { %v1594_v5 = vpop.f32.mrf.mxu1 }
 0x366   :  { %v1599_v46 = vadd.f32 %v1594_v5, %v1529_v2 }
 0x367   :  { %v3982_v51 = vpop.f32.mrf.mxu1 }
 0x369   :  { %v1660_v17 = vpop.f32.mrf.mxu1 }
 0x36a   :  { %v1667_v8 = vadd.f32 %v1660_v17, %v1598_v3 }
 0x36b   :  { %v3989_v41 = vpop.f32.mrf.mxu1 }
 0x36d   :  { %v1663_v45 = vpop.f32.mrf.mxu1 }
 0x36e   :  { %v1668_v10 = vadd.f32 %v1663_v45, %v1599_v46 }
 0x36f   :  { %v3990_v0 = vpop.f32.mrf.mxu1 }
 0x371   :  { %v1730_v11 = vpop.f32.mrf.mxu1 }
 0x372   :  { %v1737_v13 = vadd.f32 %v1730_v11, %v1667_v8 }
 0x373   :  { %v3997_v14 = vpop.f32.mrf.mxu1 }
 0x375   :  { %v1733_v15 = vpop.f32.mrf.mxu1 }
 0x376   :  { %v1738_v16 = vadd.f32 %v1733_v15, %v1668_v10 }
 0x377   :  { %v3998_v20 = vpop.f32.mrf.mxu1 }
 0x379   :  { %v1800_v22 = vpop.f32.mrf.mxu1 }
 0x37a   :  { %v1807_v23 = vadd.f32 %v1800_v22, %v1737_v13 }
 0x37b   :  { %v4005_v25 = vpop.f32.mrf.mxu1 }
 0x37d   :  { %v1803_v26 = vpop.f32.mrf.mxu1 }
 0x37e   :  { %v1808_v27 = vadd.f32 %v1803_v26, %v1738_v16 }
 0x37f   :  { %v4006_v28 = vpop.f32.mrf.mxu1 }
 0x381   :  { %v1870_v29 = vpop.f32.mrf.mxu1 }
 0x382   :  { %v1877_v31 = vadd.f32 %v1870_v29, %v1807_v23 }
 0x383   :  { %v4013_v32 = vpop.f32.mrf.mxu1 }
 0x385   :  { %v1873_v33 = vpop.f32.mrf.mxu1 }
 0x386   :  { %v1878_v34 = vadd.f32 %v1873_v33, %v1808_v27 }
 0x387   :  { %v4014_v37 = vpop.f32.mrf.mxu1 }
 0x389   :  { %v1939_v38 = vpop.f32.mrf.mxu1 }
 0x38a   :  { %v1946_v51 = vadd.f32 %v1939_v38, %v1877_v31 }
 0x38b   :  { %v4021_v39 = vpop.f32.mrf.mxu1 }
 0x38d   :  { %v1942_v40 = vpop.f32.mrf.mxu1 }
 0x38e   :  { %v1947_v0 = vadd.f32 %v1942_v40, %v1878_v34 }
 0x38f   :  { %v4022_v42 = vpop.f32.mrf.mxu1 }
 0x391   :  { %v2009_v44 = vpop.f32.mrf.mxu1 }
 0x392   :  { %v2016_v41 = vadd.f32 %v2009_v44, %v1946_v51 }
 0x393   :  { %v4029_v35 = vpop.f32.mrf.mxu1  ;;  %v2497_v47 = vpop.f32.mrf.mxu0 }
 0x395   :  { %v2012_v58 = vpop.f32.mrf.mxu1  ;;  %v4085_v48 = vpop.f32.mrf.mxu0 }
 0x396   :  { %v2017_v14 = vadd.f32 %v2012_v58, %v1947_v0 }
 0x397   :  { %v4030_v7 = vpop.f32.mrf.mxu1  ;;  %v2500_v43 = vpop.f32.mrf.mxu0 }
 0x399   :  { %v2079_v50 = vpop.f32.mrf.mxu1  ;;  %v4086_v49 = vpop.f32.mrf.mxu0 }
 0x39a   :  { %v2086_v11 = vadd.f32 %v2079_v50, %v2016_v41 }
 0x39b   :  { %v4037_v52 = vpop.f32.mrf.mxu1 }
 0x39d   :  { %v2082_v30 = vpop.f32.mrf.mxu1  ;;  %v2637_v36 = vpop.f32.mrf.mxu0 }
 0x39e   :  { %v2087_v22 = vadd.f32 %v2082_v30, %v2017_v14 }
 0x39f   :  { %v4038_v53 = vpop.f32.mrf.mxu1  ;;  %v4101_v54 = vpop.f32.mrf.mxu0 }
 0x3a1   :  { %v2149_v55 = vpop.f32.mrf.mxu1  ;;  %v5333_v18 = vpop.f32.mrf.mxu0 }
 0x3a2   :  { %v2156_v15 = vadd.f32 %v2149_v55, %v2086_v11 }
 0x3a3   :  { %v4045_v24 = vpop.f32.mrf.mxu1  ;;  %v4102_v56 = vpop.f32.mrf.mxu0 }
 0x3a5   :  { %v2152_v59 = vpop.f32.mrf.mxu1 }
 0x3a6   :  { %v2157_v27 = vadd.f32 %v2152_v59, %v2087_v22 }
 0x3a7   :  { %v4046_v60 = vpop.f32.mrf.mxu1  ;;  %v2776_v6 = vpop.f32.mrf.mxu0 }
 0x3a9   :  { %v2218_v12 = vpop.f32.mrf.mxu1  ;;  %v4117_v61 = vpop.f32.mrf.mxu0 }
 0x3aa   :  { %v2225_v23 = vadd.f32 %v2218_v12, %v2156_v15 }
 0x3ab   :  { %v4053_v62 = vpop.f32.mrf.mxu1  ;;  %v2779_v1 = vpop.f32.mrf.mxu0 }
 0x3ad   :  { %v2221_v2 = vpop.f32.mrf.mxu1  ;;  %v4118_v57 = vpop.f32.mrf.mxu0 }
 0x3ae   :  { %v2226_v32 = vadd.f32 %v2221_v2, %v2157_v27 }
 0x3af   :  { %v4054_v63 = vpop.f32.mrf.mxu1 }
 0x3b1   :  { %v2288_v3 = vpop.f32.mrf.mxu1  ;;  %v2916_v4 = vpop.f32.mrf.mxu0 }
 0x3b2   :  { %v2295_v28 = vadd.f32 %v2288_v3, %v2225_v23 }
 0x3b3   :  { %v4061_v5 = vpop.f32.mrf.mxu1  ;;  %v4133_v46 = vpop.f32.mrf.mxu0 }
 0x3b5   :  { %v2291_v17 = vpop.f32.mrf.mxu1  ;;  %v2919_v8 = vpop.f32.mrf.mxu0 }
 0x3b6   :  { %v2296_v39 = vadd.f32 %v2291_v17, %v2226_v32 }
 0x3b7   :  { %v4062_v45 = vpop.f32.mrf.mxu1  ;;  %v4134_v10 = vpop.f32.mrf.mxu0 }
 0x3b9   :  { %v2358_v13 = vpop.f32.mrf.mxu1 }
 0x3ba   :  { %v2365_v33 = vadd.f32 %v2358_v13, %v2295_v28 }
 0x3bb   :  { %v4069_v16 = vpop.f32.mrf.mxu1  ;;  %v3055_v20 = vpop.f32.mrf.mxu0 }
 0x3bd   :  { %v2361_v25 = vpop.f32.mrf.mxu1  ;;  %v4149_v26 = vpop.f32.mrf.mxu0 }
 0x3be   :  { %v2366_v42 = vadd.f32 %v2361_v25, %v2296_v39 }
 0x3bf   :  { %v4070_v29 = vpop.f32.mrf.mxu1  ;;  %v3058_v31 = vpop.f32.mrf.mxu0 }
 0x3c1   :  { %v2428_v37 = vpop.f32.mrf.mxu1  ;;  %v4150_v38 = vpop.f32.mrf.mxu0 }
 0x3c2   :  { %v2435_v34 = vadd.f32 %v2428_v37, %v2365_v33 }
 0x3c3   :  { %v4077_v40 = vpop.f32.mrf.mxu1 }
 0x3c4   :  { %v2504_v44 = vadd.f32 %v2497_v47, %v2435_v34 }
 0x3c5   :  { %v2431_v35 = vpop.f32.mrf.mxu1 }
 0x3c6   :  { %v2436_v58 = vadd.f32 %v2431_v35, %v2366_v42  ;;  %v3089_v35 = vld [vmem:[%s5454_s6] sm:$0x1]  ;;  %s4367_s6 = smov 32  }
 0x3c7   :  { %v4078_v48 = vpop.f32.mrf.mxu1 }
 0x3c8   :  { %v2505_v7 = vadd.f32 %v2500_v43, %v2436_v58 }
 0x3c9   :  { %v2567_v50 = vpop.f32.mrf.mxu1 }
 0x3ca   :  { %v2574_v53 = vadd.f32 %v2567_v50, %v2504_v44 }
 0x3cb   :  { %v4093_v49 = vpop.f32.mrf.mxu1 }
 0x3cc   :  { %v2644_v24 = vadd.f32 %v2637_v36, %v2574_v53 }
 0x3cd   :  { %v2570_v52 = vpop.f32.mrf.mxu1 }
 0x3ce   :  { %v2575_v56 = vadd.f32 %v2570_v52, %v2505_v7  ;;  %v3101_v7 = vld [vmem:[%s5455_s7] sm:$0x1] }
 0x3cf   :  { %v4094_v30 = vpop.f32.mrf.mxu1 }
 0x3d0   :  { %v2645_v61 = vadd.f32 %v5333_v18, %v2575_v56 }
 0x3d1   :  { %v2707_v54 = vpop.f32.mrf.mxu1 }
 0x3d2   :  { %v2714_v60 = vadd.f32 %v2707_v54, %v2644_v24 }
 0x3d3   :  { %v4109_v55 = vpop.f32.mrf.mxu1 }
 0x3d4   :  { %v2783_v47 = vadd.f32 %v2776_v6, %v2714_v60  ;;  %v4348_v60 = vld [vmem:[%s5456_s8] sm:$0xff]  }
 0x3d5   :  { %v2710_v59 = vpop.f32.mrf.mxu1  ;;  %4153 = vmatprep.mubr.msk.bf16.mxu1 %vm3164_vm9, %v4348_v60  ;;  %v3441_v60 = vld [vmem:[%s5462_s14 + $0x18] sm:$0xff] }
 0x3d6   :  { %v2715_v2 = vadd.f32 %v2710_v59, %v2645_v61  ;;  %v3132_v61 = vld [vmem:[%s5457_s9 + $0x10] sm:$0xff] }
 0x3d7   :  { %v4110_v12 = vpop.f32.mrf.mxu1 }
 0x3d8   :  { %v2784_v3 = vadd.f32 %v2779_v1, %v2715_v2  ;;  %v3133_v12 = vld [vmem:[%s5457_s9 + $0x18] sm:$0xff]  ;;  %v3131_v2 = vld [vmem:[%s5457_s9 + $0x8] sm:$0xff] }
 0x3d9   :  { %v2846_v62 = vpop.f32.mrf.mxu1  ;;  %3151 = vperm.xlu1 %4199, %v3133_v12   ;;  %v3440_v12 = vld [vmem:[%s5462_s14 + $0x10] sm:$0xff] }
 0x3da   :  { %v2853_v63 = vadd.f32 %v2846_v62, %v2783_v47  ;;  %v3130_v62 = vld [vmem:[%s5457_s9] sm:$0xff]  ;;  %v3239_v47 = vld [vmem:[%s5458_s11 + $0x10] sm:$0xff] }
 0x3db   :  { %v4125_v57 = vpop.f32.mrf.mxu1 }
 0x3dc   :  { %v2923_v46 = vadd.f32 %v2916_v4, %v2853_v63  ;;  %v3237_v57 = vld [vmem:[%s5458_s11] sm:$0xff]  ;;  %v3240_v63 = vld [vmem:[%s5458_s11 + $0x18] sm:$0xff] }
 0x3dd   :  { %v2849_v43 = vpop.f32.mrf.mxu1  ;;  %3136 = vperm.xlu1 %4199, %v3130_v62   ;;  %v3438_v62 = vld [vmem:[%s5462_s14] sm:$0xff] }
 0x3de   :  { %v2854_v51 = vadd.f32 %v2849_v43, %v2784_v3  ;;  %v3333_v43 = vld [vmem:[%s5459_s13] sm:$0x3]  ;;  %v3238_v3 = vld [vmem:[%s5458_s11 + $0x8] sm:$0xff] }
 0x3df   :  { %v4126_v5 = vpop.f32.mrf.mxu1 }
 0x3e0   :  { %v2924_v36 = vadd.f32 %v2919_v8, %v2854_v51 }
 0x3e1   :  { %v2986_v17 = vpop.f32.mrf.mxu1  ;;  %3141 = vperm.xlu1 %4199, %v3131_v2  }
 0x3e2   :  { %v2993_v41 = vadd.f32 %v2986_v17, %v2923_v46  ;;  %v4368_v46 = vmov 65535  }
 0x3e3   :  { %v4141_v45 = vpop.f32.mrf.mxu1  ;;  %v3173_v51 = vsel %vm3171_vm11, 4294967295, %v4368_v46 }
 0x3e4   :  { %v3062_v0 = vadd.f32 %v3055_v20, %v2993_v41  ;;  %v3174_v41 = vsel %vm3172_vm12, %v3173_v51, 0 }
 0x3e5   :  { %v2989_v10 = vpop.f32.mrf.mxu1  ;;  %3258 = vperm.xlu1 %4199, %v3240_v63  }
 0x3e6   :  { %v2994_v11 = vadd.f32 %v2989_v10, %v2924_v36  ;;  %v3064_v18 = vsel %vm594_vm1, %v3062_v0, 0.0  ;;  %v4349_v10 = vld [vmem:[%s5456_s8 + $0x8] sm:$0xff]  }
 0x3e7   :  { %v4142_v13 = vpop.f32.mrf.mxu1 }
 0x3e8   :  { %v3063_v14 = vadd.f32 %v3058_v31, %v2994_v11 }
 0x3e9   :  { %3248 = vperm.xlu1 %4199, %v3238_v3  }
 0x3ea   :  { %v3065_v6 = vsel %vm626_vm2, %v3063_v14, 0.0 }
 0x3eb   :  { %v3066_v15 = vadd.f32 %v3065_v6, %v3064_v18 }
 0x3ed   :  { %v3067_v16 = vrot.slane %v3066_v15, 4 }
 0x3ef   :  { %v3068_v22 = vadd.f32 %v3067_v16, %v3066_v15 }
 0x3f1   :  { %v3069_v1 = vrot.slane %v3068_v22, 2 }
 0x3f3   :  { %v3070_v23 = vadd.f32 %v3069_v1, %v3068_v22 }
 0x3f5   :  { %v3071_v4 = vrot.slane %v3070_v23, 1 }
 0x3f7   :  { %v3072_v25 = vadd.f32 %v3071_v4, %v3070_v23 }
 0x3f9   :  { %v3074_v26 = vmul.f32 0.1, %v3072_v25 }
 0x3fb   :  { %v3075_v27 = vsub.f32 %v3062_v0, %v3074_v26  ;;  %v3076_v28 = vsub.f32 %v3063_v14, %v3074_v26 }
 0x3fd   :  { %v3077_v8 = vmul.f32 %v3075_v27, %v3075_v27  ;;  %v3078_v29 = vmul.f32 %v3076_v28, %v3076_v28 }
 0x3ff   :  { %v3079_v20 = vsel %vm594_vm1, %v3077_v8, 0.0  ;;  %v3080_v31 = vsel %vm626_vm2, %v3078_v29, 0.0 }
 0x400   :  { %v3081_v32 = vadd.f32 %v3080_v31, %v3079_v20  ;;  %v4351_v31 = vld [vmem:[%s5460_s10 + $0x8] sm:$0xff]  }
 0x402   :  { %v3082_v33 = vrot.slane %v3081_v32, 4 }
 0x404   :  { %v3083_v37 = vadd.f32 %v3082_v33, %v3081_v32 }
 0x406   :  { %v3084_v38 = vrot.slane %v3083_v37, 2 }
 0x408   :  { %v3085_v39 = vadd.f32 %v3084_v38, %v3083_v37 }
 0x40a   :  { %v3086_v34 = vrot.slane %v3085_v39, 1 }
 0x40c   :  { %v3087_v40 = vadd.f32 %v3086_v34, %v3085_v39 }
 0x40e   :  { %v3088_v42 = vmul.f32 0.1, %v3087_v40 }
 0x410   :  { %v3090_v44 = vadd.f32 1e-05, %v3088_v42 }
 0x412   :  { %4354 = vrsqrt.f32 %v3090_v44 }
 0x41f   :  { %v4355_v58 = vpop.eup %4354 }
 0x420   :  { %v3092_v48 = vmul.f32 %v4355_v58, %v3089_v35 }
 0x422   :  { %v3097_v50 = vrot.slane %v3092_v48, %v4886_v21  ;;  %v3102_v49 = vmul.f32 %v3092_v48, %v3074_v26 }
 0x424   :  { %v3099_v52 = vmul.f32 %v3097_v50, %v3062_v0  ;;  %v3100_v30 = vmul.f32 %v3097_v50, %v3063_v14  ;;  %v3103_v53 = vsub.f32 %v3101_v7, %v3102_v49  ;;  %v4350_v0 = vld [vmem:[%s5460_s10] sm:$0xff]  }
 0x425   :  { %4161 = vmatprep.mubr.msk.bf16.mxu0 %vm594_vm1, %v4350_v0 }
 0x426   :  { %v3108_v54 = vrot.slane %v3103_v53, %v4886_v21 }
 0x428   :  { %v3110_v55 = vadd.f32 %v3108_v54, %v3099_v52  ;;  %v3111_v24 = vadd.f32 %v3108_v54, %v3100_v30  ;;  %v3330_v54 = vld [vmem:[%s5461_s12] sm:$0x1] }
 0x42a   :  { %3112 = vst.msk [vmem:[#allocation3] sm:$0xff] %vm594_vm1, %v3110_v55  ;;  %v3445_v55 = vld [vmem:[%s5462_s14 + $0x38] sm:$0xff] }
 0x42b   :  { %3113 = vst.msk [vmem:[#allocation3 + $0x8] sm:$0x3] %vm626_vm2, %v3111_v24  ;;  %v3444_v24 = vld [vmem:[%s5462_s14 + $0x30] sm:$0xff] }
 0x431   :  { %v3114_v59 = vld [vmem:[#allocation3] sm:$0x1f] }
 0x432   :  { %v3117_v56 = vld [vmem:[#allocation3 + $0x5] sm:$0x1f]  ;;  %3116 = vst.msk [vmem:[#allocation4] sm:$0x1f] %vm3115_vm8, %v3114_v59 }
 0x433   :  { %3119 = vrot.lane.b32.xlu0 %v3117_v56, %s4367_s6  ;;  %v3443_v56 = vld [vmem:[%s5462_s14 + $0x28] sm:$0xff]  ;;  %v3442_v59 = vld [vmem:[%s5462_s14 + $0x20] sm:$0xff] }
 0x437   :  { %3146 = vperm.xlu0 %4198, %v3132_v61   ;;  %v3439_v61 = vld [vmem:[%s5462_s14 + $0x8] sm:$0xff] }
 0x43b   :  { %3253 = vperm.xlu0 %4198, %v3239_v47   ;;  %v4369_v47 = vmov 1966171168  }
 0x43c   :  { %v3402_v2 = vunpack.c.l.s4 %v4369_v47 }
 0x43f   :  { %3243 = vperm.xlu0 %4198, %v3237_v57   ;;  %v3403_v57 = vunpack.c.0.s8 %v3402_v2 }
 0x443   :  { %3336 = vperm.xlu0 %4198, %v3333_v43  }
 0x454   :  { %v3152_v11 = vpop.permute.xlu1 %3151 }
 0x458   :  { %v3137_v14 = vpop.permute.xlu1 %3136 }
 0x45c   :  { %v3142_v23 = vpop.permute.xlu1 %3141 }
 0x460   :  { %v3259_v32 = vpop.permute.xlu1 %3258 }
 0x464   :  { %v3249_v40 = vpop.permute.xlu1 %3248 }
 0x4a5   :  { %v3120_v5 = vpop.permute.xlu0 %3119 }
 0x4a6   :  { %3123 = vst.msk [vmem:[#allocation4] sm:$0x1f] %vm3122_vm10, %v3120_v5  ;;  %v3386_v5 = vld [vmem:[%s5463_s15] sm:$0x1] }
 0x4ad   :  { %v3124_v17 = vld [vmem:[#allocation4] sm:$0x1f] }
 0x4ae   :  { %v3125_v45 = vpack.c.bf16 %v3124_v17, %v3124_v17  ;;  %v3406_v17 = vsub.s32 %v3403_v57, %v4880_v19 }
 0x4b0   :  { %v3176_v36 = vand.u32 %v3174_v41, %v3125_v45 }
 0x4b2   :  { %4151 = vmatprep.subr.bf16.mxu1 %v3176_v36  ;;  %v3147_v6 = vpop.permute.xlu0 %3146 }
 0x4b3   :  { %4152 = vmatpush3.bf16.msra.mxu1 %v3176_v36  ;;  %v3398_v36 = vmul.f32 -0.5, %v3386_v5 }
 0x4b4   :  { %4165 = vmatprep.subr.bf16.mxu1 %v4365_v9 }
 0x4b6   :  { %4154 = vmatmul.mubr.msk.bf16.vlgmr.msra.gmra.mxu1 %vm3164_vm9, %v4349_v10  ;;  %v3254_v33 = vpop.permute.xlu0 %3253 }
 0x4b7   :  { %4169 = vmatprep.mubr.msk.bf16.mxu1 %vm4366_vm5, %v4365_v9 }
 0x4ba   :  { %v3244_v44 = vpop.permute.xlu0 %3243 }
 0x4be   :  { %v3337_v63 = vpop.permute.xlu0 %3336 }
 0x576   :  { %v4155_v13 = vpop.f32.mrf.mxu1 }
 0x577   :  { %v3221_v15 = vadd.f32 %v4155_v13, %v3147_v6  ;;  %v3399_v13 = vmul.f32 %v3398_v36, %v3386_v5  ;;  %v3391_v6 = vrot.slane %v3386_v5, %v4886_v21 }
 0x578   :  { %v3212_v18 = vpop.f32.mrf.mxu1 }
 0x579   :  { %v3213_v22 = vadd.f32 %v3212_v18, %v3137_v14  ;;  %v3229_v25 = vmax.f32 %v3221_v15, 0.0 }
 0x57a   :  { %v4156_v16 = vpop.f32.mrf.mxu1 }
 0x57b   :  { %v3224_v1 = vadd.f32 %v4156_v16, %v3152_v11  ;;  %v3227_v28 = vmax.f32 %v3213_v22, 0.0 }
 0x57c   :  { %v3215_v4 = vpop.f32.mrf.mxu1 }
 0x57d   :  { %v3230_v26 = vmax.f32 %v3224_v1, 0.0  ;;  %v3216_v27 = vadd.f32 %v3215_v4, %v3142_v23 }
 0x57f   :  { %v3236_v8 = vpack.c.bf16 %v3230_v26, %v3229_v25  ;;  %v3228_v29 = vmax.f32 %v3216_v27, 0.0 }
 0x581   :  { %v3235_v20 = vpack.c.bf16 %v3228_v29, %v3227_v28  ;;  %4157 = vmatprep.subr.bf16.mxu0 %v3236_v8 }
 0x582   :  { %4158 = vmatpush3.bf16.msra.mxu0 %v3236_v8 }
 0x583   :  { %4159 = vmatprep.subr.bf16.mxu0 %v3235_v20 }
 0x586   :  { %4160 = vmatpush3.bf16.msra.mxu0 %v3235_v20 }
 0x587   :  { %4173 = vmatprep.subr.mxu0 %v4365_v9 }
 0x589   :  { %4162 = vmatmul.mubr.msk.bf16.vlgmr.msra.gmra.mxu0 %vm594_vm1, %v4351_v31 }
 0x58a   :  { %4189 = vmatprep.mubr.msk.f32.mxu0 %vm4366_vm5, %v4365_v9  ;;  %4174 = vmatpush3.msra.mxu0 %v3445_v55 }
 0x58b   :  { %4175 = vmatprep.subr.mxu0 %v4365_v9 }
 0x58c   :  { %4176 = vmatpush3.msra.mxu0 %v3444_v24 }
 0x58d   :  { %4177 = vmatprep.subr.mxu0 %v4365_v9 }
 0x58e   :  { %4178 = vmatpush3.msra.mxu0 %v3443_v56 }
 0x58f   :  { %4179 = vmatprep.subr.mxu0 %v4365_v9 }
 0x590   :  { %4180 = vmatpush3.msra.mxu0 %v3442_v59 }
 0x591   :  { %4181 = vmatprep.subr.mxu0 %v4365_v9 }
 0x592   :  { %4182 = vmatpush3.msra.mxu0 %v3441_v60 }
 0x593   :  { %4183 = vmatprep.subr.mxu0 %v4365_v9 }
 0x594   :  { %4184 = vmatpush3.msra.mxu0 %v3440_v12 }
 0x595   :  { %4185 = vmatprep.subr.mxu0 %v4365_v9 }
 0x596   :  { %4186 = vmatpush3.msra.mxu0 %v3439_v61 }
 0x597   :  { %4187 = vmatprep.subr.mxu0 %v4365_v9 }
 0x598   :  { %4188 = vmatpush3.msra.mxu0 %v3438_v62 }
 0x649   :  { %v4163_v37 = vpop.f32.mrf.mxu0 }
 0x64a   :  { %v3320_v39 = vadd.f32 %v4163_v37, %v3254_v33 }
 0x64b   :  { %v3311_v38 = vpop.f32.mrf.mxu0 }
 0x64c   :  { %v3328_v58 = vmax.f32 %v3320_v39, 0.0  ;;  %v3312_v48 = vadd.f32 %v3311_v38, %v3244_v44 }
 0x64d   :  { %v4164_v34 = vpop.f32.mrf.mxu0 }
 0x64e   :  { %v3323_v42 = vadd.f32 %v4164_v34, %v3259_v32  ;;  %v3326_v30 = vmax.f32 %v3312_v48, 0.0 }
 0x64f   :  { %v3314_v35 = vpop.f32.mrf.mxu0 }
 0x650   :  { %v3329_v7 = vmax.f32 %v3323_v42, 0.0  ;;  %v3315_v50 = vadd.f32 %v3314_v35, %v3249_v40 }
 0x652   :  { %v3332_v49 = vpack.c.bf16 %v3329_v7, %v3328_v58  ;;  %v3327_v52 = vmax.f32 %v3315_v50, 0.0 }
 0x654   :  { %4166 = vmatpush3.bf16.msra.mxu1 %v3332_v49  ;;  %v3331_v53 = vpack.c.bf16 %v3327_v52, %v3326_v30 }
 0x655   :  { %4167 = vmatprep.subr.bf16.mxu1 %v4365_v9 }
 0x658   :  { %4168 = vmatpush3.bf16.msra.mxu1 %v3331_v53 }
 0x65b   :  { %4170 = vmatmul.mubr.msk.bf16.vlgmr.msra.gmra.mxu1 %vm594_vm1, %v3330_v54 }
 0x71b   :  { %v3376_v43 = vpop.f32.mrf.mxu1 }
 0x71c   :  { %v3377_v3 = vadd.f32 %v3376_v43, %v3337_v63 }
 0x71d   :  { %v4171_v46 = vpop.f32.mrf.mxu1 }
 0x71e   :  { %v3382_v51 = vmax.f32 %v3377_v3, -20.0 }
 0x71f   :  { %v3379_v41 = vpop.f32.mrf.mxu1 }
 0x720   :  { %v3383_v45 = vmin.f32 %v3382_v51, 2.0 }
 0x721   :  { %v4172_v10 = vpop.f32.mrf.mxu1 }
 0x722   :  { %v3384_v9 = vmul.f32 1.442695, %v3383_v45  ;;  %v3407_v0 = vrot.slane %v3383_v45, %v3406_v17 }
 0x724   :  { %4356 = vpow2.f32 %v3384_v9  ;;  %v3408_v11 = vcombine.high %v3407_v0, %v3407_v0 }
 0x726   :  { %v3415_v14 = vrot.slane %v3408_v11, %v3406_v17 }
 0x728   :  { %v3417_v18 = vsub.f32 %v3399_v13, %v3415_v14 }
 0x72a   :  { %v3753_v44 = vadd.f32 -0.9189385, %v3417_v18 }
 0x731   :  { %v4357_v15 = vpop.eup %4356 }
 0x732   :  { %v3393_v16 = vmul.f32 %v4357_v15, %v3391_v6 }
 0x734   :  { %v3395_v22 = vrot.slane %v3393_v16, 1 }
 0x736   :  { %v3397_v1 = vadd.f32 %v3395_v22, %v3377_v3 }
 0x738   :  { %v3419_v23 = vmul.f32 -2.0, %v3397_v1  ;;  %4358 = vtanh.f32 %v3397_v1  ;;  %v3435_v34 = vsub.f32 0.6931472, %v3397_v1 }
 0x73a   :  { %v3421_v19 = vand.u32 2147483647, %v3419_v23  ;;  %v3420_v37 = vmax.f32 %v3419_v23, 0.0 }
 0x73c   :  { %v3422_v4 = vsub.f32 0.0, %v3421_v19 }
 0x73e   :  { %v3423_v25 = vmul.f32 1.442695, %v3422_v4 }
 0x740   :  { %4360 = vpow2.f32 %v3423_v25 }
 0x745   :  { %v4359_v26 = vpop.eup %4358 }
 0x746   :  { %v3521_v27 = vmul.f32 2.0, %v4359_v26 }
 0x748   :  { %3523 = vst.msk [vmem:[%s5464_s16] sm:$0x1] %vm3522_vm13, %v3521_v27 }
 0x74d   :  { %v4361_v28 = vpop.eup %4360 }
 0x74e   :  { %v3425_v21 = vadd.f32 1.0, %v4361_v28  ;;  %v3428_v8 = vmul.f32 -0.5, %v4361_v28  ;;  %v3431_v20 = vand.u32 2147483647, %v4361_v28 }
 0x750   :  { %4362 = vlog2.f32 %v3425_v21  ;;  %v3429_v29 = vadd.f32 1.0, %v3428_v8  ;;  %vm3432_vm14 = vcmp.lt.f32.partialorder %v3431_v20, 0.0004427343 }
 0x752   :  { %v3430_v33 = vmul.f32 %v4361_v28, %v3429_v29 }
 0x75d   :  { %v4363_v31 = vpop.eup %4362 }
 0x75e   :  { %v3427_v32 = vmul.f32 0.6931472, %v4363_v31 }
 0x760   :  { %v3433_v38 = vsel %vm3432_vm14, %v3430_v33, %v3427_v32 }
 0x761   :  { %v3434_v39 = vadd.f32 %v3433_v38, %v3420_v37 }
 0x763   :  { %v3436_v40 = vsub.f32 %v3435_v34, %v3434_v39 }
 0x765   :  { %v3437_v42 = vmul.f32 2.0, %v3436_v40 }
 0x767   :  { %4190 = vmatmul.mubr.msk.f32.vlgmr.msra.gmra.mxu0 %vm3446_vm15, %v3437_v42 }
 0x827   :  { %v3516_v35 = vpop.f32.mrf.mxu0 }
 0x828   :  { %v3524_v58 = vsub.f32 %v3753_v44, %v3516_v35 }
 0x829   :  { %v4191_v48 = vpop.f32.mrf.mxu0 }
 0x82a   :  { %3525 = vst.msk [vmem:[%s5464_s16 + $0x1] sm:$0x1] %vm3522_vm13, %v3524_v58 }

</bundles_post_ra>
